<compile_context>
chip_gen: v7x
topology: tpu7x:2x2x1
jax: 0.10.0
libtpu: 0.0.40
codegen_flags: <defaults>
</compile_context>

<pallas_src>
import functools

import jax
import jax.numpy as jnp
from jax.experimental import pallas as pl
from jax.experimental.pallas import tpu as pltpu


def _round_up(n, m):
    return (n + m - 1) // m * m


# ---------------------------------------------------------------------------
# Kernel
# ---------------------------------------------------------------------------
def _speaker_rnn_kernel(
    x_ref,      # (T, Bp, Ip)   time-major, padded input
    wih0_ref,   # (Ip, 4Hp)
    whh0_ref,   # (Hp, 4Hp)
    b0_ref,     # (1, 4Hp)
    wih1_ref,   # (Hp, 4Hp)
    whh1_ref,   # (Hp, 4Hp)
    b1_ref,     # (1, 4Hp)
    wfc_ref,    # (Hp, Op)
    bfc_ref,    # (1, Op)
    out_ref,    # (Bp, Op)
    pre0_ref,   # VMEM scratch (T, Bp, 4Hp): layer-0 input pre-activations
    *, seq_len, batch, hidden,
):
    T, Bp, Hp = seq_len, batch, hidden
    f32 = jnp.float32
    bf16 = jnp.bfloat16

    # ---- One-shot layer-0 input projection for all timesteps (big matmul) ---
    x2d = x_ref[...].reshape(T * Bp, x_ref.shape[2])
    pre0 = (
        jnp.dot(x2d.astype(bf16), wih0_ref[...].astype(bf16),
                preferred_element_type=f32)
        + b0_ref[...]
    )
    pre0_ref[...] = pre0.reshape(T, Bp, 4 * Hp)

    # ---- Hoist recurrent weights / bias broadcast out of the time loop ------
    whh0 = whh0_ref[...].astype(bf16)
    wih1 = wih1_ref[...].astype(bf16)
    whh1 = whh1_ref[...].astype(bf16)
    b1 = jnp.broadcast_to(b1_ref[...], (Bp, 4 * Hp))

    def split_gates(g):
        # PyTorch gate order i, f, g, o; each slice is a full 128-lane block
        # (Hp is a multiple of 128), so no cross-lane relayout.
        i = jax.nn.sigmoid(g[:, 0 * Hp:1 * Hp])
        f = jax.nn.sigmoid(g[:, 1 * Hp:2 * Hp])
        gg = jnp.tanh(g[:, 2 * Hp:3 * Hp])
        o = jax.nn.sigmoid(g[:, 3 * Hp:4 * Hp])
        return i, f, gg, o

    def step(t, carry):
        h1, c1, h2, c2 = carry

        # Layer 0: input projection already precomputed into pre0_ref.
        g0 = pre0_ref[t] + jnp.dot(h1.astype(bf16), whh0,
                                   preferred_element_type=f32)
        i0, f0, gg0, o0 = split_gates(g0)
        c1 = f0 * c1 + i0 * gg0
        h1 = o0 * jnp.tanh(c1)

        # Layer 1: input is layer-0 hidden state (not precomputable).
        g1 = (
            jnp.dot(h1.astype(bf16), wih1, preferred_element_type=f32)
            + jnp.dot(h2.astype(bf16), whh1, preferred_element_type=f32)
            + b1
        )
        i1, f1, gg1, o1 = split_gates(g1)
        c2 = f1 * c2 + i1 * gg1
        h2 = o1 * jnp.tanh(c2)
        return h1, c1, h2, c2

    z = jnp.zeros((Bp, Hp), f32)
    _, _, h2, _ = jax.lax.fori_loop(0, T, step, (z, z, z, z), unroll=True)

    # ---- FC epilogue on the final layer-1 hidden state ----------------------
    out_ref[...] = (
        jnp.dot(h2.astype(bf16), wfc_ref[...].astype(bf16),
                preferred_element_type=f32)
        + bfc_ref[...]
    ).astype(out_ref.dtype)


# ---------------------------------------------------------------------------
# Padding helpers (wrapper side; zero padding keeps the math exact:
# padded hidden lanes stay identically zero through the recurrence).
# ---------------------------------------------------------------------------
def _pad_gate_cols(w, H, Hp):
    """(rows, 4H) -> (rows, 4Hp): pad each of the 4 gate blocks to Hp lanes."""
    rows = w.shape[0]
    w4 = w.reshape(rows, 4, H)
    w4 = jnp.pad(w4, ((0, 0), (0, 0), (0, Hp - H)))
    return w4.reshape(rows, 4 * Hp)


def _pad_rows(w, rows_p):
    return jnp.pad(w, ((0, rows_p - w.shape[0]), (0, 0)))


# ---------------------------------------------------------------------------
# Wrapper
# ---------------------------------------------------------------------------
def speaker_rnn_forward(x, params):
    """x: [B, T, I] float32 (batch_first).  Returns fc(hn[-1]): [B, O]."""
    B, T, I = x.shape
    H = params["whh0"].shape[0]
    O = params["wfc"].shape[1]

    Bp = _round_up(B, 8)      # f32 sublane count
    Ip = _round_up(I, 128)    # lane count
    Hp = _round_up(H, 128)    # each gate block becomes a full 128-lane slab
    Op = _round_up(O, 128)

    # Time-major, (8,128)-padded input slab (tiny one-shot reshuffle in XLA;
    # lets the kernel read pre0_ref[t] as a contiguous (Bp, 4Hp) tile).
    x_p = jnp.pad(jnp.transpose(x, (1, 0, 2)),
                  ((0, 0), (0, Bp - B), (0, Ip - I)))

    wih0 = _pad_rows(_pad_gate_cols(params["wih0"], H, Hp), Ip)
    whh0 = _pad_rows(_pad_gate_cols(params["whh0"], H, Hp), Hp)
    b0 = _pad_gate_cols(params["b0"], H, Hp)
    wih1 = _pad_rows(_pad_gate_cols(params["wih1"], H, Hp), Hp)
    whh1 = _pad_rows(_pad_gate_cols(params["whh1"], H, Hp), Hp)
    b1 = _pad_gate_cols(params["b1"], H, Hp)
    wfc = jnp.pad(params["wfc"], ((0, Hp - H), (0, Op - O)))
    bfc = jnp.pad(params["bfc"], ((0, 0), (0, Op - O)))

    kernel = functools.partial(_speaker_rnn_kernel,
                               seq_len=T, batch=Bp, hidden=Hp)

    def full(shape):
        return pl.BlockSpec(shape, lambda i: (0,) * len(shape))

    out_p = pl.pallas_call(
        kernel,
        out_shape=jax.ShapeDtypeStruct((Bp, Op), jnp.float32),
        grid_spec=pltpu.PrefetchScalarGridSpec(
            num_scalar_prefetch=0,
            grid=(1,),
            in_specs=[
                full((T, Bp, Ip)),
                full((Ip, 4 * Hp)),
                full((Hp, 4 * Hp)),
                full((1, 4 * Hp)),
                full((Hp, 4 * Hp)),
                full((Hp, 4 * Hp)),
                full((1, 4 * Hp)),
                full((Hp, Op)),
                full((1, Op)),
            ],
            out_specs=full((Bp, Op)),
            scratch_shapes=[pltpu.VMEM((T, Bp, 4 * Hp), jnp.float32)],
        ),
        compiler_params=pltpu.CompilerParams(
            dimension_semantics=("arbitrary",),
        ),
    )(x_p, wih0, whh0, b0, wih1, whh1, b1, wfc, bfc)

    return out_p[:B, :O]


# ---------------------------------------------------------------------------
# Params + pure-JAX reference (matches nn.LSTM(num_layers=2) + nn.Linear)
# ---------------------------------------------------------------------------
def init_params(key, input_size, hidden_size, output_size):
    k = 1.0 / jnp.sqrt(hidden_size)
    keys = jax.random.split(key, 12)
    u = lambda kk, shape: jax.random.uniform(kk, shape, jnp.float32, -k, k)

    # PyTorch stores weight_ih as [4H, in]; we pre-transpose to [in, 4H].
    wih0 = u(keys[0], (4 * hidden_size, input_size)).T
    whh0 = u(keys[1], (4 * hidden_size, hidden_size)).T
    b0 = (u(keys[2], (4 * hidden_size,)) + u(keys[3], (4 * hidden_size,)))[None, :]
    wih1 = u(keys[4], (4 * hidden_size, hidden_size)).T
    whh1 = u(keys[5], (4 * hidden_size, hidden_size)).T
    b1 = (u(keys[6], (4 * hidden_size,)) + u(keys[7], (4 * hidden_size,)))[None, :]

    kf = 1.0 / jnp.sqrt(hidden_size)
    wfc = jax.random.uniform(keys[8], (output_size, hidden_size), jnp.float32, -kf, kf).T
    bfc = jax.random.uniform(keys[9], (output_size,), jnp.float32, -kf, kf)[None, :]

    return dict(wih0=wih0, whh0=whh0, b0=b0,
                wih1=wih1, whh1=whh1, b1=b1,
                wfc=wfc, bfc=bfc)


def reference_forward(x, params):
    """Pure-JAX f32 reference of the same 2-layer LSTM + FC."""
    B, T, I = x.shape
    H = params["whh0"].shape[0]

    def cell(x_t, h, c, wih, whh, b):
        gates = x_t @ wih + h @ whh + b
        i = jax.nn.sigmoid(gates[:, 0 * H:1 * H])
        f = jax.nn.sigmoid(gates[:, 1 * H:2 * H])
        g = jnp.tanh(gates[:, 2 * H:3 * H])
        o = jax.nn.sigmoid(gates[:, 3 * H:4 * H])
        c_new = f * c + i * g
        return o * jnp.tanh(c_new), c_new

    def step(carry, x_t):
        h1, c1, h2, c2 = carry
        h1, c1 = cell(x_t, h1, c1, params["wih0"], params["whh0"], params["b0"])
        h2, c2 = cell(h1, h2, c2, params["wih1"], params["whh1"], params["b1"])
        return (h1, c1, h2, c2), None

    z = jnp.zeros((B, H), jnp.float32)
    (h1, c1, h2, c2), _ = jax.lax.scan(step, (z, z, z, z),
                                       jnp.transpose(x, (1, 0, 2)))
    return h2 @ params["wfc"] + params["bfc"]


if __name__ == "__main__":
    B, T, I, H, O = 2, 8, 16, 32, 4

    key = jax.random.PRNGKey(0)
    kx, kp = jax.random.split(key)
    x = jax.random.normal(kx, (B, T, I), jnp.float32)
    params = init_params(kp, I, H, O)

    out = jax.block_until_ready(speaker_rnn_forward(x, params))
    ref = jax.block_until_ready(reference_forward(x, params))

    assert out.shape == (B, O)
    # Kernel uses bf16 MXU operands (f32 accumulation), so tolerance is looser
    # than the pure-f32 reference.
    assert jnp.allclose(out, ref, atol=5e-2, rtol=5e-2), (out, ref)

    print("KERNEL_OK")
</pallas_src>

<mosaic_0001>
module attributes {stable_mosaic.version = 11 : i64} {
  func.func @_speaker_rnn_kernel(%arg0: i32, %arg1: memref<8x8x128xf32, #tpu.memory_space<vmem>>, %arg2: memref<128x512xf32, #tpu.memory_space<vmem>>, %arg3: memref<128x512xf32, #tpu.memory_space<vmem>>, %arg4: memref<1x512xf32, #tpu.memory_space<vmem>>, %arg5: memref<128x512xf32, #tpu.memory_space<vmem>>, %arg6: memref<128x512xf32, #tpu.memory_space<vmem>>, %arg7: memref<1x512xf32, #tpu.memory_space<vmem>>, %arg8: memref<128x128xf32, #tpu.memory_space<vmem>>, %arg9: memref<1x128xf32, #tpu.memory_space<vmem>>, %arg10: memref<8x128xf32, #tpu.memory_space<vmem>>, %arg11: memref<8x8x512xf32, #tpu.memory_space<vmem>>) attributes {dimension_semantics = [#tpu.dimension_semantics<arbitrary>], iteration_bounds = array<i64: 1>, scalar_prefetch = 0 : i64, scratch_operands = 1 : i64, tpu.core_type = #tpu.core_type<tc>, window_params = [{pipeline_mode = #tpu.pipeline_mode<synchronous>, transform_indices = @transform_0, window_bounds = array<i64: 8, 8, 128>}, {pipeline_mode = #tpu.pipeline_mode<synchronous>, transform_indices = @transform_1, window_bounds = array<i64: 128, 512>}, {pipeline_mode = #tpu.pipeline_mode<synchronous>, transform_indices = @transform_2, window_bounds = array<i64: 128, 512>}, {pipeline_mode = #tpu.pipeline_mode<synchronous>, transform_indices = @transform_3, window_bounds = array<i64: 1, 512>}, {pipeline_mode = #tpu.pipeline_mode<synchronous>, transform_indices = @transform_4, window_bounds = array<i64: 128, 512>}, {pipeline_mode = #tpu.pipeline_mode<synchronous>, transform_indices = @transform_5, window_bounds = array<i64: 128, 512>}, {pipeline_mode = #tpu.pipeline_mode<synchronous>, transform_indices = @transform_6, window_bounds = array<i64: 1, 512>}, {pipeline_mode = #tpu.pipeline_mode<synchronous>, transform_indices = @transform_7, window_bounds = array<i64: 128, 128>}, {pipeline_mode = #tpu.pipeline_mode<synchronous>, transform_indices = @transform_8, window_bounds = array<i64: 1, 128>}, {pipeline_mode = #tpu.pipeline_mode<synchronous>, transform_indices = @transform_9, window_bounds = array<i64: 8, 128>}]} {
    %c0 = arith.constant 0 : index
    %c0_0 = arith.constant 0 : index
    %c0_1 = arith.constant 0 : index
    %0 = vector.load %arg1[%c0, %c0_0, %c0_1] : memref<8x8x128xf32, #tpu.memory_space<vmem>>, vector<8x8x128xf32>
    %1 = vector.shape_cast %0 : vector<8x8x128xf32> to vector<64x128xf32>
    %2 = arith.truncf %1 : vector<64x128xf32> to vector<64x128xbf16>
    %c0_2 = arith.constant 0 : index
    %c0_3 = arith.constant 0 : index
    %3 = vector.load %arg2[%c0_2, %c0_3] : memref<128x512xf32, #tpu.memory_space<vmem>>, vector<128x512xf32>
    %4 = arith.truncf %3 : vector<128x512xf32> to vector<128x512xbf16>
    %cst = arith.constant dense<0.000000e+00> : vector<64x512xf32>
    %5 = tpu.matmul %2, %4, %cst {dimension_numbers = #tpu.dot_dimension_numbers<[1], [0], [0], [1], [0, 0, 1, 1], [], []>} : vector<64x128xbf16>, vector<128x512xbf16>, vector<64x512xf32> -> vector<64x512xf32>
    %c0_4 = arith.constant 0 : index
    %c0_5 = arith.constant 0 : index
    %6 = vector.load %arg4[%c0_4, %c0_5] : memref<1x512xf32, #tpu.memory_space<vmem>>, vector<1x512xf32>
    %7 = vector.broadcast %6 : vector<1x512xf32> to vector<64x512xf32>
    %8 = arith.addf %5, %7 : vector<64x512xf32>
    %9 = vector.shape_cast %8 : vector<64x512xf32> to vector<8x8x512xf32>
    %c0_6 = arith.constant 0 : index
    %c0_7 = arith.constant 0 : index
    %c0_8 = arith.constant 0 : index
    %10 = vector.load %arg11[%c0_6, %c0_7, %c0_8] : memref<8x8x512xf32, #tpu.memory_space<vmem>>, vector<8x8x512xf32>
    tpu.vector_store %arg11[%c0_6, %c0_7, %c0_8], %9 {strides = array<i32>} : memref<8x8x512xf32, #tpu.memory_space<vmem>>, vector<8x8x512xf32>,
    %c0_9 = arith.constant 0 : index
    %c0_10 = arith.constant 0 : index
    %11 = vector.load %arg3[%c0_9, %c0_10] : memref<128x512xf32, #tpu.memory_space<vmem>>, vector<128x512xf32>
    %12 = arith.truncf %11 : vector<128x512xf32> to vector<128x512xbf16>
    %c0_11 = arith.constant 0 : index
    %c0_12 = arith.constant 0 : index
    %13 = vector.load %arg5[%c0_11, %c0_12] : memref<128x512xf32, #tpu.memory_space<vmem>>, vector<128x512xf32>
    %14 = arith.truncf %13 : vector<128x512xf32> to vector<128x512xbf16>
    %c0_13 = arith.constant 0 : index
    %c0_14 = arith.constant 0 : index
    %15 = vector.load %arg6[%c0_13, %c0_14] : memref<128x512xf32, #tpu.memory_space<vmem>>, vector<128x512xf32>
    %16 = arith.truncf %15 : vector<128x512xf32> to vector<128x512xbf16>
    %c0_15 = arith.constant 0 : index
    %c0_16 = arith.constant 0 : index
    %17 = vector.load %arg7[%c0_15, %c0_16] : memref<1x512xf32, #tpu.memory_space<vmem>>, vector<1x512xf32>
    %18 = vector.shape_cast %17 : vector<1x512xf32> to vector<1x512xf32>
    %19 = vector.broadcast %18 : vector<1x512xf32> to vector<8x512xf32>
    %cst_17 = arith.constant 0.000000e+00 : f32
    %20 = vector.broadcast %cst_17 : f32 to vector<8x128xf32>
    %c0_i32 = arith.constant 0 : i32
    %21 = arith.index_cast %c0_i32 : i32 to index
    %c0_18 = arith.constant 0 : index
    %c0_19 = arith.constant 0 : index
    %22 = vector.load %arg11[%21, %c0_18, %c0_19] : memref<8x8x512xf32, #tpu.memory_space<vmem>>, vector<1x8x512xf32>
    %23 = vector.shape_cast %22 : vector<1x8x512xf32> to vector<8x512xf32>
    %24 = arith.truncf %20 : vector<8x128xf32> to vector<8x128xbf16>
    %cst_20 = arith.constant dense<0.000000e+00> : vector<8x512xf32>
    %25 = tpu.matmul %24, %12, %cst_20 {dimension_numbers = #tpu.dot_dimension_numbers<[1], [0], [0], [1], [0, 0, 1, 1], [], []>} : vector<8x128xbf16>, vector<128x512xbf16>, vector<8x512xf32> -> vector<8x512xf32>
    %26 = arith.addf %23, %25 : vector<8x512xf32>
    %27 = vector.extract_strided_slice %26 {offsets = [0, 0], sizes = [8, 128], strides = [1, 1]} : vector<8x512xf32> to vector<8x128xf32>
    %28 = arith.negf %27 : vector<8x128xf32>
    %29 = math.exp %28 : vector<8x128xf32>
    %cst_21 = arith.constant 1.000000e+00 : f32
    %30 = vector.broadcast %cst_21 : f32 to vector<8x128xf32>
    %31 = arith.addf %30, %29 : vector<8x128xf32>
    %32 = arith.divf %30, %31 : vector<8x128xf32>
    %33 = vector.extract_strided_slice %26 {offsets = [0, 128], sizes = [8, 128], strides = [1, 1]} : vector<8x512xf32> to vector<8x128xf32>
    %34 = arith.negf %33 : vector<8x128xf32>
    %35 = math.exp %34 : vector<8x128xf32>
    %cst_22 = arith.constant 1.000000e+00 : f32
    %36 = vector.broadcast %cst_22 : f32 to vector<8x128xf32>
    %37 = arith.addf %36, %35 : vector<8x128xf32>
    %38 = arith.divf %36, %37 : vector<8x128xf32>
    %39 = vector.extract_strided_slice %26 {offsets = [0, 256], sizes = [8, 128], strides = [1, 1]} : vector<8x512xf32> to vector<8x128xf32>
    %40 = math.tanh %39 : vector<8x128xf32>
    %41 = vector.extract_strided_slice %26 {offsets = [0, 384], sizes = [8, 128], strides = [1, 1]} : vector<8x512xf32> to vector<8x128xf32>
    %42 = arith.negf %41 : vector<8x128xf32>
    %43 = math.exp %42 : vector<8x128xf32>
    %cst_23 = arith.constant 1.000000e+00 : f32
    %44 = vector.broadcast %cst_23 : f32 to vector<8x128xf32>
    %45 = arith.addf %44, %43 : vector<8x128xf32>
    %46 = arith.divf %44, %45 : vector<8x128xf32>
    %47 = arith.mulf %38, %20 : vector<8x128xf32>
    %48 = arith.mulf %32, %40 : vector<8x128xf32>
    %49 = arith.addf %47, %48 : vector<8x128xf32>
    %50 = math.tanh %49 : vector<8x128xf32>
    %51 = arith.mulf %46, %50 : vector<8x128xf32>
    %52 = arith.truncf %51 : vector<8x128xf32> to vector<8x128xbf16>
    %cst_24 = arith.constant dense<0.000000e+00> : vector<8x512xf32>
    %53 = tpu.matmul %52, %14, %cst_24 {dimension_numbers = #tpu.dot_dimension_numbers<[1], [0], [0], [1], [0, 0, 1, 1], [], []>} : vector<8x128xbf16>, vector<128x512xbf16>, vector<8x512xf32> -> vector<8x512xf32>
    %54 = arith.truncf %20 : vector<8x128xf32> to vector<8x128xbf16>
    %cst_25 = arith.constant dense<0.000000e+00> : vector<8x512xf32>
    %55 = tpu.matmul %54, %16, %cst_25 {dimension_numbers = #tpu.dot_dimension_numbers<[1], [0], [0], [1], [0, 0, 1, 1], [], []>} : vector<8x128xbf16>, vector<128x512xbf16>, vector<8x512xf32> -> vector<8x512xf32>
    %56 = arith.addf %53, %55 : vector<8x512xf32>
    %57 = arith.addf %56, %19 : vector<8x512xf32>
    %58 = vector.extract_strided_slice %57 {offsets = [0, 0], sizes = [8, 128], strides = [1, 1]} : vector<8x512xf32> to vector<8x128xf32>
    %59 = arith.negf %58 : vector<8x128xf32>
    %60 = math.exp %59 : vector<8x128xf32>
    %cst_26 = arith.constant 1.000000e+00 : f32
    %61 = vector.broadcast %cst_26 : f32 to vector<8x128xf32>
    %62 = arith.addf %61, %60 : vector<8x128xf32>
    %63 = arith.divf %61, %62 : vector<8x128xf32>
    %64 = vector.extract_strided_slice %57 {offsets = [0, 128], sizes = [8, 128], strides = [1, 1]} : vector<8x512xf32> to vector<8x128xf32>
    %65 = arith.negf %64 : vector<8x128xf32>
    %66 = math.exp %65 : vector<8x128xf32>
    %cst_27 = arith.constant 1.000000e+00 : f32
    %67 = vector.broadcast %cst_27 : f32 to vector<8x128xf32>
    %68 = arith.addf %67, %66 : vector<8x128xf32>
    %69 = arith.divf %67, %68 : vector<8x128xf32>
    %70 = vector.extract_strided_slice %57 {offsets = [0, 256], sizes = [8, 128], strides = [1, 1]} : vector<8x512xf32> to vector<8x128xf32>
    %71 = math.tanh %70 : vector<8x128xf32>
    %72 = vector.extract_strided_slice %57 {offsets = [0, 384], sizes = [8, 128], strides = [1, 1]} : vector<8x512xf32> to vector<8x128xf32>
    %73 = arith.negf %72 : vector<8x128xf32>
    %74 = math.exp %73 : vector<8x128xf32>
    %cst_28 = arith.constant 1.000000e+00 : f32
    %75 = vector.broadcast %cst_28 : f32 to vector<8x128xf32>
    %76 = arith.addf %75, %74 : vector<8x128xf32>
    %77 = arith.divf %75, %76 : vector<8x128xf32>
    %78 = arith.mulf %69, %20 : vector<8x128xf32>
    %79 = arith.mulf %63, %71 : vector<8x128xf32>
    %80 = arith.addf %78, %79 : vector<8x128xf32>
    %81 = math.tanh %80 : vector<8x128xf32>
    %82 = arith.mulf %77, %81 : vector<8x128xf32>
    %c1_i32 = arith.constant 1 : i32
    %83 = arith.index_cast %c1_i32 : i32 to index
    %c0_29 = arith.constant 0 : index
    %c0_30 = arith.constant 0 : index
    %84 = vector.load %arg11[%83, %c0_29, %c0_30] : memref<8x8x512xf32, #tpu.memory_space<vmem>>, vector<1x8x512xf32>
    %85 = vector.shape_cast %84 : vector<1x8x512xf32> to vector<8x512xf32>
    %86 = arith.truncf %51 : vector<8x128xf32> to vector<8x128xbf16>
    %cst_31 = arith.constant dense<0.000000e+00> : vector<8x512xf32>
    %87 = tpu.matmul %86, %12, %cst_31 {dimension_numbers = #tpu.dot_dimension_numbers<[1], [0], [0], [1], [0, 0, 1, 1], [], []>} : vector<8x128xbf16>, vector<128x512xbf16>, vector<8x512xf32> -> vector<8x512xf32>
    %88 = arith.addf %85, %87 : vector<8x512xf32>
    %89 = vector.extract_strided_slice %88 {offsets = [0, 0], sizes = [8, 128], strides = [1, 1]} : vector<8x512xf32> to vector<8x128xf32>
    %90 = arith.negf %89 : vector<8x128xf32>
    %91 = math.exp %90 : vector<8x128xf32>
    %cst_32 = arith.constant 1.000000e+00 : f32
    %92 = vector.broadcast %cst_32 : f32 to vector<8x128xf32>
    %93 = arith.addf %92, %91 : vector<8x128xf32>
    %94 = arith.divf %92, %93 : vector<8x128xf32>
    %95 = vector.extract_strided_slice %88 {offsets = [0, 128], sizes = [8, 128], strides = [1, 1]} : vector<8x512xf32> to vector<8x128xf32>
    %96 = arith.negf %95 : vector<8x128xf32>
    %97 = math.exp %96 : vector<8x128xf32>
    %cst_33 = arith.constant 1.000000e+00 : f32
    %98 = vector.broadcast %cst_33 : f32 to vector<8x128xf32>
    %99 = arith.addf %98, %97 : vector<8x128xf32>
    %100 = arith.divf %98, %99 : vector<8x128xf32>
    %101 = vector.extract_strided_slice %88 {offsets = [0, 256], sizes = [8, 128], strides = [1, 1]} : vector<8x512xf32> to vector<8x128xf32>
    %102 = math.tanh %101 : vector<8x128xf32>
    %103 = vector.extract_strided_slice %88 {offsets = [0, 384], sizes = [8, 128], strides = [1, 1]} : vector<8x512xf32> to vector<8x128xf32>
    %104 = arith.negf %103 : vector<8x128xf32>
    %105 = math.exp %104 : vector<8x128xf32>
    %cst_34 = arith.constant 1.000000e+00 : f32
    %106 = vector.broadcast %cst_34 : f32 to vector<8x128xf32>
    %107 = arith.addf %106, %105 : vector<8x128xf32>
    %108 = arith.divf %106, %107 : vector<8x128xf32>
    %109 = arith.mulf %100, %49 : vector<8x128xf32>
    %110 = arith.mulf %94, %102 : vector<8x128xf32>
    %111 = arith.addf %109, %110 : vector<8x128xf32>
    %112 = math.tanh %111 : vector<8x128xf32>
    %113 = arith.mulf %108, %112 : vector<8x128xf32>
    %114 = arith.truncf %113 : vector<8x128xf32> to vector<8x128xbf16>
    %cst_35 = arith.constant dense<0.000000e+00> : vector<8x512xf32>
    %115 = tpu.matmul %114, %14, %cst_35 {dimension_numbers = #tpu.dot_dimension_numbers<[1], [0], [0], [1], [0, 0, 1, 1], [], []>} : vector<8x128xbf16>, vector<128x512xbf16>, vector<8x512xf32> -> vector<8x512xf32>
    %116 = arith.truncf %82 : vector<8x128xf32> to vector<8x128xbf16>
    %cst_36 = arith.constant dense<0.000000e+00> : vector<8x512xf32>
    %117 = tpu.matmul %116, %16, %cst_36 {dimension_numbers = #tpu.dot_dimension_numbers<[1], [0], [0], [1], [0, 0, 1, 1], [], []>} : vector<8x128xbf16>, vector<128x512xbf16>, vector<8x512xf32> -> vector<8x512xf32>
    %118 = arith.addf %115, %117 : vector<8x512xf32>
    %119 = arith.addf %118, %19 : vector<8x512xf32>
    %120 = vector.extract_strided_slice %119 {offsets = [0, 0], sizes = [8, 128], strides = [1, 1]} : vector<8x512xf32> to vector<8x128xf32>
    %121 = arith.negf %120 : vector<8x128xf32>
    %122 = math.exp %121 : vector<8x128xf32>
    %cst_37 = arith.constant 1.000000e+00 : f32
    %123 = vector.broadcast %cst_37 : f32 to vector<8x128xf32>
    %124 = arith.addf %123, %122 : vector<8x128xf32>
    %125 = arith.divf %123, %124 : vector<8x128xf32>
    %126 = vector.extract_strided_slice %119 {offsets = [0, 128], sizes = [8, 128], strides = [1, 1]} : vector<8x512xf32> to vector<8x128xf32>
    %127 = arith.negf %126 : vector<8x128xf32>
    %128 = math.exp %127 : vector<8x128xf32>
    %cst_38 = arith.constant 1.000000e+00 : f32
    %129 = vector.broadcast %cst_38 : f32 to vector<8x128xf32>
    %130 = arith.addf %129, %128 : vector<8x128xf32>
    %131 = arith.divf %129, %130 : vector<8x128xf32>
    %132 = vector.extract_strided_slice %119 {offsets = [0, 256], sizes = [8, 128], strides = [1, 1]} : vector<8x512xf32> to vector<8x128xf32>
    %133 = math.tanh %132 : vector<8x128xf32>
    %134 = vector.extract_strided_slice %119 {offsets = [0, 384], sizes = [8, 128], strides = [1, 1]} : vector<8x512xf32> to vector<8x128xf32>
    %135 = arith.negf %134 : vector<8x128xf32>
    %136 = math.exp %135 : vector<8x128xf32>
    %cst_39 = arith.constant 1.000000e+00 : f32
    %137 = vector.broadcast %cst_39 : f32 to vector<8x128xf32>
    %138 = arith.addf %137, %136 : vector<8x128xf32>
    %139 = arith.divf %137, %138 : vector<8x128xf32>
    %140 = arith.mulf %131, %80 : vector<8x128xf32>
    %141 = arith.mulf %125, %133 : vector<8x128xf32>
    %142 = arith.addf %140, %141 : vector<8x128xf32>
    %143 = math.tanh %142 : vector<8x128xf32>
    %144 = arith.mulf %139, %143 : vector<8x128xf32>
    %c2_i32 = arith.constant 2 : i32
    %145 = arith.index_cast %c2_i32 : i32 to index
    %c0_40 = arith.constant 0 : index
    %c0_41 = arith.constant 0 : index
    %146 = vector.load %arg11[%145, %c0_40, %c0_41] : memref<8x8x512xf32, #tpu.memory_space<vmem>>, vector<1x8x512xf32>
    %147 = vector.shape_cast %146 : vector<1x8x512xf32> to vector<8x512xf32>
    %148 = arith.truncf %113 : vector<8x128xf32> to vector<8x128xbf16>
    %cst_42 = arith.constant dense<0.000000e+00> : vector<8x512xf32>
    %149 = tpu.matmul %148, %12, %cst_42 {dimension_numbers = #tpu.dot_dimension_numbers<[1], [0], [0], [1], [0, 0, 1, 1], [], []>} : vector<8x128xbf16>, vector<128x512xbf16>, vector<8x512xf32> -> vector<8x512xf32>
    %150 = arith.addf %147, %149 : vector<8x512xf32>
    %151 = vector.extract_strided_slice %150 {offsets = [0, 0], sizes = [8, 128], strides = [1, 1]} : vector<8x512xf32> to vector<8x128xf32>
    %152 = arith.negf %151 : vector<8x128xf32>
    %153 = math.exp %152 : vector<8x128xf32>
    %cst_43 = arith.constant 1.000000e+00 : f32
    %154 = vector.broadcast %cst_43 : f32 to vector<8x128xf32>
    %155 = arith.addf %154, %153 : vector<8x128xf32>
    %156 = arith.divf %154, %155 : vector<8x128xf32>
    %157 = vector.extract_strided_slice %150 {offsets = [0, 128], sizes = [8, 128], strides = [1, 1]} : vector<8x512xf32> to vector<8x128xf32>
    %158 = arith.negf %157 : vector<8x128xf32>
    %159 = math.exp %158 : vector<8x128xf32>
    %cst_44 = arith.constant 1.000000e+00 : f32
    %160 = vector.broadcast %cst_44 : f32 to vector<8x128xf32>
    %161 = arith.addf %160, %159 : vector<8x128xf32>
    %162 = arith.divf %160, %161 : vector<8x128xf32>
    %163 = vector.extract_strided_slice %150 {offsets = [0, 256], sizes = [8, 128], strides = [1, 1]} : vector<8x512xf32> to vector<8x128xf32>
    %164 = math.tanh %163 : vector<8x128xf32>
    %165 = vector.extract_strided_slice %150 {offsets = [0, 384], sizes = [8, 128], strides = [1, 1]} : vector<8x512xf32> to vector<8x128xf32>
    %166 = arith.negf %165 : vector<8x128xf32>
    %167 = math.exp %166 : vector<8x128xf32>
    %cst_45 = arith.constant 1.000000e+00 : f32
    %168 = vector.broadcast %cst_45 : f32 to vector<8x128xf32>
    %169 = arith.addf %168, %167 : vector<8x128xf32>
    %170 = arith.divf %168, %169 : vector<8x128xf32>
    %171 = arith.mulf %162, %111 : vector<8x128xf32>
    %172 = arith.mulf %156, %164 : vector<8x128xf32>
    %173 = arith.addf %171, %172 : vector<8x128xf32>
    %174 = math.tanh %173 : vector<8x128xf32>
    %175 = arith.mulf %170, %174 : vector<8x128xf32>
    %176 = arith.truncf %175 : vector<8x128xf32> to vector<8x128xbf16>
    %cst_46 = arith.constant dense<0.000000e+00> : vector<8x512xf32>
    %177 = tpu.matmul %176, %14, %cst_46 {dimension_numbers = #tpu.dot_dimension_numbers<[1], [0], [0], [1], [0, 0, 1, 1], [], []>} : vector<8x128xbf16>, vector<128x512xbf16>, vector<8x512xf32> -> vector<8x512xf32>
    %178 = arith.truncf %144 : vector<8x128xf32> to vector<8x128xbf16>
    %cst_47 = arith.constant dense<0.000000e+00> : vector<8x512xf32>
    %179 = tpu.matmul %178, %16, %cst_47 {dimension_numbers = #tpu.dot_dimension_numbers<[1], [0], [0], [1], [0, 0, 1, 1], [], []>} : vector<8x128xbf16>, vector<128x512xbf16>, vector<8x512xf32> -> vector<8x512xf32>
    %180 = arith.addf %177, %179 : vector<8x512xf32>
    %181 = arith.addf %180, %19 : vector<8x512xf32>
    %182 = vector.extract_strided_slice %181 {offsets = [0, 0], sizes = [8, 128], strides = [1, 1]} : vector<8x512xf32> to vector<8x128xf32>
    %183 = arith.negf %182 : vector<8x128xf32>
    %184 = math.exp %183 : vector<8x128xf32>
    %cst_48 = arith.constant 1.000000e+00 : f32
    %185 = vector.broadcast %cst_48 : f32 to vector<8x128xf32>
    %186 = arith.addf %185, %184 : vector<8x128xf32>
    %187 = arith.divf %185, %186 : vector<8x128xf32>
    %188 = vector.extract_strided_slice %181 {offsets = [0, 128], sizes = [8, 128], strides = [1, 1]} : vector<8x512xf32> to vector<8x128xf32>
    %189 = arith.negf %188 : vector<8x128xf32>
    %190 = math.exp %189 : vector<8x128xf32>
    %cst_49 = arith.constant 1.000000e+00 : f32
    %191 = vector.broadcast %cst_49 : f32 to vector<8x128xf32>
    %192 = arith.addf %191, %190 : vector<8x128xf32>
    %193 = arith.divf %191, %192 : vector<8x128xf32>
    %194 = vector.extract_strided_slice %181 {offsets = [0, 256], sizes = [8, 128], strides = [1, 1]} : vector<8x512xf32> to vector<8x128xf32>
    %195 = math.tanh %194 : vector<8x128xf32>
    %196 = vector.extract_strided_slice %181 {offsets = [0, 384], sizes = [8, 128], strides = [1, 1]} : vector<8x512xf32> to vector<8x128xf32>
    %197 = arith.negf %196 : vector<8x128xf32>
    %198 = math.exp %197 : vector<8x128xf32>
    %cst_50 = arith.constant 1.000000e+00 : f32
    %199 = vector.broadcast %cst_50 : f32 to vector<8x128xf32>
    %200 = arith.addf %199, %198 : vector<8x128xf32>
    %201 = arith.divf %199, %200 : vector<8x128xf32>
    %202 = arith.mulf %193, %142 : vector<8x128xf32>
    %203 = arith.mulf %187, %195 : vector<8x128xf32>
    %204 = arith.addf %202, %203 : vector<8x128xf32>
    %205 = math.tanh %204 : vector<8x128xf32>
    %206 = arith.mulf %201, %205 : vector<8x128xf32>
    %c3_i32 = arith.constant 3 : i32
    %207 = arith.index_cast %c3_i32 : i32 to index
    %c0_51 = arith.constant 0 : index
    %c0_52 = arith.constant 0 : index
    %208 = vector.load %arg11[%207, %c0_51, %c0_52] : memref<8x8x512xf32, #tpu.memory_space<vmem>>, vector<1x8x512xf32>
    %209 = vector.shape_cast %208 : vector<1x8x512xf32> to vector<8x512xf32>
    %210 = arith.truncf %175 : vector<8x128xf32> to vector<8x128xbf16>
    %cst_53 = arith.constant dense<0.000000e+00> : vector<8x512xf32>
    %211 = tpu.matmul %210, %12, %cst_53 {dimension_numbers = #tpu.dot_dimension_numbers<[1], [0], [0], [1], [0, 0, 1, 1], [], []>} : vector<8x128xbf16>, vector<128x512xbf16>, vector<8x512xf32> -> vector<8x512xf32>
    %212 = arith.addf %209, %211 : vector<8x512xf32>
    %213 = vector.extract_strided_slice %212 {offsets = [0, 0], sizes = [8, 128], strides = [1, 1]} : vector<8x512xf32> to vector<8x128xf32>
    %214 = arith.negf %213 : vector<8x128xf32>
    %215 = math.exp %214 : vector<8x128xf32>
    %cst_54 = arith.constant 1.000000e+00 : f32
    %216 = vector.broadcast %cst_54 : f32 to vector<8x128xf32>
    %217 = arith.addf %216, %215 : vector<8x128xf32>
    %218 = arith.divf %216, %217 : vector<8x128xf32>
    %219 = vector.extract_strided_slice %212 {offsets = [0, 128], sizes = [8, 128], strides = [1, 1]} : vector<8x512xf32> to vector<8x128xf32>
    %220 = arith.negf %219 : vector<8x128xf32>
    %221 = math.exp %220 : vector<8x128xf32>
    %cst_55 = arith.constant 1.000000e+00 : f32
    %222 = vector.broadcast %cst_55 : f32 to vector<8x128xf32>
    %223 = arith.addf %222, %221 : vector<8x128xf32>
    %224 = arith.divf %222, %223 : vector<8x128xf32>
    %225 = vector.extract_strided_slice %212 {offsets = [0, 256], sizes = [8, 128], strides = [1, 1]} : vector<8x512xf32> to vector<8x128xf32>
    %226 = math.tanh %225 : vector<8x128xf32>
    %227 = vector.extract_strided_slice %212 {offsets = [0, 384], sizes = [8, 128], strides = [1, 1]} : vector<8x512xf32> to vector<8x128xf32>
    %228 = arith.negf %227 : vector<8x128xf32>
    %229 = math.exp %228 : vector<8x128xf32>
    %cst_56 = arith.constant 1.000000e+00 : f32
    %230 = vector.broadcast %cst_56 : f32 to vector<8x128xf32>
    %231 = arith.addf %230, %229 : vector<8x128xf32>
    %232 = arith.divf %230, %231 : vector<8x128xf32>
    %233 = arith.mulf %224, %173 : vector<8x128xf32>
    %234 = arith.mulf %218, %226 : vector<8x128xf32>
    %235 = arith.addf %233, %234 : vector<8x128xf32>
    %236 = math.tanh %235 : vector<8x128xf32>
    %237 = arith.mulf %232, %236 : vector<8x128xf32>
    %238 = arith.truncf %237 : vector<8x128xf32> to vector<8x128xbf16>
    %cst_57 = arith.constant dense<0.000000e+00> : vector<8x512xf32>
    %239 = tpu.matmul %238, %14, %cst_57 {dimension_numbers = #tpu.dot_dimension_numbers<[1], [0], [0], [1], [0, 0, 1, 1], [], []>} : vector<8x128xbf16>, vector<128x512xbf16>, vector<8x512xf32> -> vector<8x512xf32>
    %240 = arith.truncf %206 : vector<8x128xf32> to vector<8x128xbf16>
    %cst_58 = arith.constant dense<0.000000e+00> : vector<8x512xf32>
    %241 = tpu.matmul %240, %16, %cst_58 {dimension_numbers = #tpu.dot_dimension_numbers<[1], [0], [0], [1], [0, 0, 1, 1], [], []>} : vector<8x128xbf16>, vector<128x512xbf16>, vector<8x512xf32> -> vector<8x512xf32>
    %242 = arith.addf %239, %241 : vector<8x512xf32>
    %243 = arith.addf %242, %19 : vector<8x512xf32>
    %244 = vector.extract_strided_slice %243 {offsets = [0, 0], sizes = [8, 128], strides = [1, 1]} : vector<8x512xf32> to vector<8x128xf32>
    %245 = arith.negf %244 : vector<8x128xf32>
    %246 = math.exp %245 : vector<8x128xf32>
    %cst_59 = arith.constant 1.000000e+00 : f32
    %247 = vector.broadcast %cst_59 : f32 to vector<8x128xf32>
    %248 = arith.addf %247, %246 : vector<8x128xf32>
    %249 = arith.divf %247, %248 : vector<8x128xf32>
    %250 = vector.extract_strided_slice %243 {offsets = [0, 128], sizes = [8, 128], strides = [1, 1]} : vector<8x512xf32> to vector<8x128xf32>
    %251 = arith.negf %250 : vector<8x128xf32>
    %252 = math.exp %251 : vector<8x128xf32>
    %cst_60 = arith.constant 1.000000e+00 : f32
    %253 = vector.broadcast %cst_60 : f32 to vector<8x128xf32>
    %254 = arith.addf %253, %252 : vector<8x128xf32>
    %255 = arith.divf %253, %254 : vector<8x128xf32>
    %256 = vector.extract_strided_slice %243 {offsets = [0, 256], sizes = [8, 128], strides = [1, 1]} : vector<8x512xf32> to vector<8x128xf32>
    %257 = math.tanh %256 : vector<8x128xf32>
    %258 = vector.extract_strided_slice %243 {offsets = [0, 384], sizes = [8, 128], strides = [1, 1]} : vector<8x512xf32> to vector<8x128xf32>
    %259 = arith.negf %258 : vector<8x128xf32>
    %260 = math.exp %259 : vector<8x128xf32>
    %cst_61 = arith.constant 1.000000e+00 : f32
    %261 = vector.broadcast %cst_61 : f32 to vector<8x128xf32>
    %262 = arith.addf %261, %260 : vector<8x128xf32>
    %263 = arith.divf %261, %262 : vector<8x128xf32>
    %264 = arith.mulf %255, %204 : vector<8x128xf32>
    %265 = arith.mulf %249, %257 : vector<8x128xf32>
    %266 = arith.addf %264, %265 : vector<8x128xf32>
    %267 = math.tanh %266 : vector<8x128xf32>
    %268 = arith.mulf %263, %267 : vector<8x128xf32>
    %c4_i32 = arith.constant 4 : i32
    %269 = arith.index_cast %c4_i32 : i32 to index
    %c0_62 = arith.constant 0 : index
    %c0_63 = arith.constant 0 : index
    %270 = vector.load %arg11[%269, %c0_62, %c0_63] : memref<8x8x512xf32, #tpu.memory_space<vmem>>, vector<1x8x512xf32>
    %271 = vector.shape_cast %270 : vector<1x8x512xf32> to vector<8x512xf32>
    %272 = arith.truncf %237 : vector<8x128xf32> to vector<8x128xbf16>
    %cst_64 = arith.constant dense<0.000000e+00> : vector<8x512xf32>
    %273 = tpu.matmul %272, %12, %cst_64 {dimension_numbers = #tpu.dot_dimension_numbers<[1], [0], [0], [1], [0, 0, 1, 1], [], []>} : vector<8x128xbf16>, vector<128x512xbf16>, vector<8x512xf32> -> vector<8x512xf32>
    %274 = arith.addf %271, %273 : vector<8x512xf32>
    %275 = vector.extract_strided_slice %274 {offsets = [0, 0], sizes = [8, 128], strides = [1, 1]} : vector<8x512xf32> to vector<8x128xf32>
    %276 = arith.negf %275 : vector<8x128xf32>
    %277 = math.exp %276 : vector<8x128xf32>
    %cst_65 = arith.constant 1.000000e+00 : f32
    %278 = vector.broadcast %cst_65 : f32 to vector<8x128xf32>
    %279 = arith.addf %278, %277 : vector<8x128xf32>
    %280 = arith.divf %278, %279 : vector<8x128xf32>
    %281 = vector.extract_strided_slice %274 {offsets = [0, 128], sizes = [8, 128], strides = [1, 1]} : vector<8x512xf32> to vector<8x128xf32>
    %282 = arith.negf %281 : vector<8x128xf32>
    %283 = math.exp %282 : vector<8x128xf32>
    %cst_66 = arith.constant 1.000000e+00 : f32
    %284 = vector.broadcast %cst_66 : f32 to vector<8x128xf32>
    %285 = arith.addf %284, %283 : vector<8x128xf32>
    %286 = arith.divf %284, %285 : vector<8x128xf32>
    %287 = vector.extract_strided_slice %274 {offsets = [0, 256], sizes = [8, 128], strides = [1, 1]} : vector<8x512xf32> to vector<8x128xf32>
    %288 = math.tanh %287 : vector<8x128xf32>
    %289 = vector.extract_strided_slice %274 {offsets = [0, 384], sizes = [8, 128], strides = [1, 1]} : vector<8x512xf32> to vector<8x128xf32>
    %290 = arith.negf %289 : vector<8x128xf32>
    %291 = math.exp %290 : vector<8x128xf32>
    %cst_67 = arith.constant 1.000000e+00 : f32
    %292 = vector.broadcast %cst_67 : f32 to vector<8x128xf32>
    %293 = arith.addf %292, %291 : vector<8x128xf32>
    %294 = arith.divf %292, %293 : vector<8x128xf32>
    %295 = arith.mulf %286, %235 : vector<8x128xf32>
    %296 = arith.mulf %280, %288 : vector<8x128xf32>
    %297 = arith.addf %295, %296 : vector<8x128xf32>
    %298 = math.tanh %297 : vector<8x128xf32>
    %299 = arith.mulf %294, %298 : vector<8x128xf32>
    %300 = arith.truncf %299 : vector<8x128xf32> to vector<8x128xbf16>
    %cst_68 = arith.constant dense<0.000000e+00> : vector<8x512xf32>
    %301 = tpu.matmul %300, %14, %cst_68 {dimension_numbers = #tpu.dot_dimension_numbers<[1], [0], [0], [1], [0, 0, 1, 1], [], []>} : vector<8x128xbf16>, vector<128x512xbf16>, vector<8x512xf32> -> vector<8x512xf32>
    %302 = arith.truncf %268 : vector<8x128xf32> to vector<8x128xbf16>
    %cst_69 = arith.constant dense<0.000000e+00> : vector<8x512xf32>
    %303 = tpu.matmul %302, %16, %cst_69 {dimension_numbers = #tpu.dot_dimension_numbers<[1], [0], [0], [1], [0, 0, 1, 1], [], []>} : vector<8x128xbf16>, vector<128x512xbf16>, vector<8x512xf32> -> vector<8x512xf32>
    %304 = arith.addf %301, %303 : vector<8x512xf32>
    %305 = arith.addf %304, %19 : vector<8x512xf32>
    %306 = vector.extract_strided_slice %305 {offsets = [0, 0], sizes = [8, 128], strides = [1, 1]} : vector<8x512xf32> to vector<8x128xf32>
    %307 = arith.negf %306 : vector<8x128xf32>
    %308 = math.exp %307 : vector<8x128xf32>
    %cst_70 = arith.constant 1.000000e+00 : f32
    %309 = vector.broadcast %cst_70 : f32 to vector<8x128xf32>
    %310 = arith.addf %309, %308 : vector<8x128xf32>
    %311 = arith.divf %309, %310 : vector<8x128xf32>
    %312 = vector.extract_strided_slice %305 {offsets = [0, 128], sizes = [8, 128], strides = [1, 1]} : vector<8x512xf32> to vector<8x128xf32>
    %313 = arith.negf %312 : vector<8x128xf32>
    %314 = math.exp %313 : vector<8x128xf32>
    %cst_71 = arith.constant 1.000000e+00 : f32
    %315 = vector.broadcast %cst_71 : f32 to vector<8x128xf32>
    %316 = arith.addf %315, %314 : vector<8x128xf32>
    %317 = arith.divf %315, %316 : vector<8x128xf32>
    %318 = vector.extract_strided_slice %305 {offsets = [0, 256], sizes = [8, 128], strides = [1, 1]} : vector<8x512xf32> to vector<8x128xf32>
    %319 = math.tanh %318 : vector<8x128xf32>
    %320 = vector.extract_strided_slice %305 {offsets = [0, 384], sizes = [8, 128], strides = [1, 1]} : vector<8x512xf32> to vector<8x128xf32>
    %321 = arith.negf %320 : vector<8x128xf32>
    %322 = math.exp %321 : vector<8x128xf32>
    %cst_72 = arith.constant 1.000000e+00 : f32
    %323 = vector.broadcast %cst_72 : f32 to vector<8x128xf32>
    %324 = arith.addf %323, %322 : vector<8x128xf32>
    %325 = arith.divf %323, %324 : vector<8x128xf32>
    %326 = arith.mulf %317, %266 : vector<8x128xf32>
    %327 = arith.mulf %311, %319 : vector<8x128xf32>
    %328 = arith.addf %326, %327 : vector<8x128xf32>
    %329 = math.tanh %328 : vector<8x128xf32>
    %330 = arith.mulf %325, %329 : vector<8x128xf32>
    %c5_i32 = arith.constant 5 : i32
    %331 = arith.index_cast %c5_i32 : i32 to index
    %c0_73 = arith.constant 0 : index
    %c0_74 = arith.constant 0 : index
    %332 = vector.load %arg11[%331, %c0_73, %c0_74] : memref<8x8x512xf32, #tpu.memory_space<vmem>>, vector<1x8x512xf32>
    %333 = vector.shape_cast %332 : vector<1x8x512xf32> to vector<8x512xf32>
    %334 = arith.truncf %299 : vector<8x128xf32> to vector<8x128xbf16>
    %cst_75 = arith.constant dense<0.000000e+00> : vector<8x512xf32>
    %335 = tpu.matmul %334, %12, %cst_75 {dimension_numbers = #tpu.dot_dimension_numbers<[1], [0], [0], [1], [0, 0, 1, 1], [], []>} : vector<8x128xbf16>, vector<128x512xbf16>, vector<8x512xf32> -> vector<8x512xf32>
    %336 = arith.addf %333, %335 : vector<8x512xf32>
    %337 = vector.extract_strided_slice %336 {offsets = [0, 0], sizes = [8, 128], strides = [1, 1]} : vector<8x512xf32> to vector<8x128xf32>
    %338 = arith.negf %337 : vector<8x128xf32>
    %339 = math.exp %338 : vector<8x128xf32>
    %cst_76 = arith.constant 1.000000e+00 : f32
    %340 = vector.broadcast %cst_76 : f32 to vector<8x128xf32>
    %341 = arith.addf %340, %339 : vector<8x128xf32>
    %342 = arith.divf %340, %341 : vector<8x128xf32>
    %343 = vector.extract_strided_slice %336 {offsets = [0, 128], sizes = [8, 128], strides = [1, 1]} : vector<8x512xf32> to vector<8x128xf32>
    %344 = arith.negf %343 : vector<8x128xf32>
    %345 = math.exp %344 : vector<8x128xf32>
    %cst_77 = arith.constant 1.000000e+00 : f32
    %346 = vector.broadcast %cst_77 : f32 to vector<8x128xf32>
    %347 = arith.addf %346, %345 : vector<8x128xf32>
    %348 = arith.divf %346, %347 : vector<8x128xf32>
    %349 = vector.extract_strided_slice %336 {offsets = [0, 256], sizes = [8, 128], strides = [1, 1]} : vector<8x512xf32> to vector<8x128xf32>
    %350 = math.tanh %349 : vector<8x128xf32>
    %351 = vector.extract_strided_slice %336 {offsets = [0, 384], sizes = [8, 128], strides = [1, 1]} : vector<8x512xf32> to vector<8x128xf32>
    %352 = arith.negf %351 : vector<8x128xf32>
    %353 = math.exp %352 : vector<8x128xf32>
    %cst_78 = arith.constant 1.000000e+00 : f32
    %354 = vector.broadcast %cst_78 : f32 to vector<8x128xf32>
    %355 = arith.addf %354, %353 : vector<8x128xf32>
    %356 = arith.divf %354, %355 : vector<8x128xf32>
    %357 = arith.mulf %348, %297 : vector<8x128xf32>
    %358 = arith.mulf %342, %350 : vector<8x128xf32>
    %359 = arith.addf %357, %358 : vector<8x128xf32>
    %360 = math.tanh %359 : vector<8x128xf32>
    %361 = arith.mulf %356, %360 : vector<8x128xf32>
    %362 = arith.truncf %361 : vector<8x128xf32> to vector<8x128xbf16>
    %cst_79 = arith.constant dense<0.000000e+00> : vector<8x512xf32>
    %363 = tpu.matmul %362, %14, %cst_79 {dimension_numbers = #tpu.dot_dimension_numbers<[1], [0], [0], [1], [0, 0, 1, 1], [], []>} : vector<8x128xbf16>, vector<128x512xbf16>, vector<8x512xf32> -> vector<8x512xf32>
    %364 = arith.truncf %330 : vector<8x128xf32> to vector<8x128xbf16>
    %cst_80 = arith.constant dense<0.000000e+00> : vector<8x512xf32>
    %365 = tpu.matmul %364, %16, %cst_80 {dimension_numbers = #tpu.dot_dimension_numbers<[1], [0], [0], [1], [0, 0, 1, 1], [], []>} : vector<8x128xbf16>, vector<128x512xbf16>, vector<8x512xf32> -> vector<8x512xf32>
    %366 = arith.addf %363, %365 : vector<8x512xf32>
    %367 = arith.addf %366, %19 : vector<8x512xf32>
    %368 = vector.extract_strided_slice %367 {offsets = [0, 0], sizes = [8, 128], strides = [1, 1]} : vector<8x512xf32> to vector<8x128xf32>
    %369 = arith.negf %368 : vector<8x128xf32>
    %370 = math.exp %369 : vector<8x128xf32>
    %cst_81 = arith.constant 1.000000e+00 : f32
    %371 = vector.broadcast %cst_81 : f32 to vector<8x128xf32>
    %372 = arith.addf %371, %370 : vector<8x128xf32>
    %373 = arith.divf %371, %372 : vector<8x128xf32>
    %374 = vector.extract_strided_slice %367 {offsets = [0, 128], sizes = [8, 128], strides = [1, 1]} : vector<8x512xf32> to vector<8x128xf32>
    %375 = arith.negf %374 : vector<8x128xf32>
    %376 = math.exp %375 : vector<8x128xf32>
    %cst_82 = arith.constant 1.000000e+00 : f32
    %377 = vector.broadcast %cst_82 : f32 to vector<8x128xf32>
    %378 = arith.addf %377, %376 : vector<8x128xf32>
    %379 = arith.divf %377, %378 : vector<8x128xf32>
    %380 = vector.extract_strided_slice %367 {offsets = [0, 256], sizes = [8, 128], strides = [1, 1]} : vector<8x512xf32> to vector<8x128xf32>
    %381 = math.tanh %380 : vector<8x128xf32>
    %382 = vector.extract_strided_slice %367 {offsets = [0, 384], sizes = [8, 128], strides = [1, 1]} : vector<8x512xf32> to vector<8x128xf32>
    %383 = arith.negf %382 : vector<8x128xf32>
    %384 = math.exp %383 : vector<8x128xf32>
    %cst_83 = arith.constant 1.000000e+00 : f32
    %385 = vector.broadcast %cst_83 : f32 to vector<8x128xf32>
    %386 = arith.addf %385, %384 : vector<8x128xf32>
    %387 = arith.divf %385, %386 : vector<8x128xf32>
    %388 = arith.mulf %379, %328 : vector<8x128xf32>
    %389 = arith.mulf %373, %381 : vector<8x128xf32>
    %390 = arith.addf %388, %389 : vector<8x128xf32>
    %391 = math.tanh %390 : vector<8x128xf32>
    %392 = arith.mulf %387, %391 : vector<8x128xf32>
    %c6_i32 = arith.constant 6 : i32
    %393 = arith.index_cast %c6_i32 : i32 to index
    %c0_84 = arith.constant 0 : index
    %c0_85 = arith.constant 0 : index
    %394 = vector.load %arg11[%393, %c0_84, %c0_85] : memref<8x8x512xf32, #tpu.memory_space<vmem>>, vector<1x8x512xf32>
    %395 = vector.shape_cast %394 : vector<1x8x512xf32> to vector<8x512xf32>
    %396 = arith.truncf %361 : vector<8x128xf32> to vector<8x128xbf16>
    %cst_86 = arith.constant dense<0.000000e+00> : vector<8x512xf32>
    %397 = tpu.matmul %396, %12, %cst_86 {dimension_numbers = #tpu.dot_dimension_numbers<[1], [0], [0], [1], [0, 0, 1, 1], [], []>} : vector<8x128xbf16>, vector<128x512xbf16>, vector<8x512xf32> -> vector<8x512xf32>
    %398 = arith.addf %395, %397 : vector<8x512xf32>
    %399 = vector.extract_strided_slice %398 {offsets = [0, 0], sizes = [8, 128], strides = [1, 1]} : vector<8x512xf32> to vector<8x128xf32>
    %400 = arith.negf %399 : vector<8x128xf32>
    %401 = math.exp %400 : vector<8x128xf32>
    %cst_87 = arith.constant 1.000000e+00 : f32
    %402 = vector.broadcast %cst_87 : f32 to vector<8x128xf32>
    %403 = arith.addf %402, %401 : vector<8x128xf32>
    %404 = arith.divf %402, %403 : vector<8x128xf32>
    %405 = vector.extract_strided_slice %398 {offsets = [0, 128], sizes = [8, 128], strides = [1, 1]} : vector<8x512xf32> to vector<8x128xf32>
    %406 = arith.negf %405 : vector<8x128xf32>
    %407 = math.exp %406 : vector<8x128xf32>
    %cst_88 = arith.constant 1.000000e+00 : f32
    %408 = vector.broadcast %cst_88 : f32 to vector<8x128xf32>
    %409 = arith.addf %408, %407 : vector<8x128xf32>
    %410 = arith.divf %408, %409 : vector<8x128xf32>
    %411 = vector.extract_strided_slice %398 {offsets = [0, 256], sizes = [8, 128], strides = [1, 1]} : vector<8x512xf32> to vector<8x128xf32>
    %412 = math.tanh %411 : vector<8x128xf32>
    %413 = vector.extract_strided_slice %398 {offsets = [0, 384], sizes = [8, 128], strides = [1, 1]} : vector<8x512xf32> to vector<8x128xf32>
    %414 = arith.negf %413 : vector<8x128xf32>
    %415 = math.exp %414 : vector<8x128xf32>
    %cst_89 = arith.constant 1.000000e+00 : f32
    %416 = vector.broadcast %cst_89 : f32 to vector<8x128xf32>
    %417 = arith.addf %416, %415 : vector<8x128xf32>
    %418 = arith.divf %416, %417 : vector<8x128xf32>
    %419 = arith.mulf %410, %359 : vector<8x128xf32>
    %420 = arith.mulf %404, %412 : vector<8x128xf32>
    %421 = arith.addf %419, %420 : vector<8x128xf32>
    %422 = math.tanh %421 : vector<8x128xf32>
    %423 = arith.mulf %418, %422 : vector<8x128xf32>
    %424 = arith.truncf %423 : vector<8x128xf32> to vector<8x128xbf16>
    %cst_90 = arith.constant dense<0.000000e+00> : vector<8x512xf32>
    %425 = tpu.matmul %424, %14, %cst_90 {dimension_numbers = #tpu.dot_dimension_numbers<[1], [0], [0], [1], [0, 0, 1, 1], [], []>} : vector<8x128xbf16>, vector<128x512xbf16>, vector<8x512xf32> -> vector<8x512xf32>
    %426 = arith.truncf %392 : vector<8x128xf32> to vector<8x128xbf16>
    %cst_91 = arith.constant dense<0.000000e+00> : vector<8x512xf32>
    %427 = tpu.matmul %426, %16, %cst_91 {dimension_numbers = #tpu.dot_dimension_numbers<[1], [0], [0], [1], [0, 0, 1, 1], [], []>} : vector<8x128xbf16>, vector<128x512xbf16>, vector<8x512xf32> -> vector<8x512xf32>
    %428 = arith.addf %425, %427 : vector<8x512xf32>
    %429 = arith.addf %428, %19 : vector<8x512xf32>
    %430 = vector.extract_strided_slice %429 {offsets = [0, 0], sizes = [8, 128], strides = [1, 1]} : vector<8x512xf32> to vector<8x128xf32>
    %431 = arith.negf %430 : vector<8x128xf32>
    %432 = math.exp %431 : vector<8x128xf32>
    %cst_92 = arith.constant 1.000000e+00 : f32
    %433 = vector.broadcast %cst_92 : f32 to vector<8x128xf32>
    %434 = arith.addf %433, %432 : vector<8x128xf32>
    %435 = arith.divf %433, %434 : vector<8x128xf32>
    %436 = vector.extract_strided_slice %429 {offsets = [0, 128], sizes = [8, 128], strides = [1, 1]} : vector<8x512xf32> to vector<8x128xf32>
    %437 = arith.negf %436 : vector<8x128xf32>
    %438 = math.exp %437 : vector<8x128xf32>
    %cst_93 = arith.constant 1.000000e+00 : f32
    %439 = vector.broadcast %cst_93 : f32 to vector<8x128xf32>
    %440 = arith.addf %439, %438 : vector<8x128xf32>
    %441 = arith.divf %439, %440 : vector<8x128xf32>
    %442 = vector.extract_strided_slice %429 {offsets = [0, 256], sizes = [8, 128], strides = [1, 1]} : vector<8x512xf32> to vector<8x128xf32>
    %443 = math.tanh %442 : vector<8x128xf32>
    %444 = vector.extract_strided_slice %429 {offsets = [0, 384], sizes = [8, 128], strides = [1, 1]} : vector<8x512xf32> to vector<8x128xf32>
    %445 = arith.negf %444 : vector<8x128xf32>
    %446 = math.exp %445 : vector<8x128xf32>
    %cst_94 = arith.constant 1.000000e+00 : f32
    %447 = vector.broadcast %cst_94 : f32 to vector<8x128xf32>
    %448 = arith.addf %447, %446 : vector<8x128xf32>
    %449 = arith.divf %447, %448 : vector<8x128xf32>
    %450 = arith.mulf %441, %390 : vector<8x128xf32>
    %451 = arith.mulf %435, %443 : vector<8x128xf32>
    %452 = arith.addf %450, %451 : vector<8x128xf32>
    %453 = math.tanh %452 : vector<8x128xf32>
    %454 = arith.mulf %449, %453 : vector<8x128xf32>
    %c7_i32 = arith.constant 7 : i32
    %455 = arith.index_cast %c7_i32 : i32 to index
    %c0_95 = arith.constant 0 : index
    %c0_96 = arith.constant 0 : index
    %456 = vector.load %arg11[%455, %c0_95, %c0_96] : memref<8x8x512xf32, #tpu.memory_space<vmem>>, vector<1x8x512xf32>
    %457 = vector.shape_cast %456 : vector<1x8x512xf32> to vector<8x512xf32>
    %458 = arith.truncf %423 : vector<8x128xf32> to vector<8x128xbf16>
    %cst_97 = arith.constant dense<0.000000e+00> : vector<8x512xf32>
    %459 = tpu.matmul %458, %12, %cst_97 {dimension_numbers = #tpu.dot_dimension_numbers<[1], [0], [0], [1], [0, 0, 1, 1], [], []>} : vector<8x128xbf16>, vector<128x512xbf16>, vector<8x512xf32> -> vector<8x512xf32>
    %460 = arith.addf %457, %459 : vector<8x512xf32>
    %461 = vector.extract_strided_slice %460 {offsets = [0, 0], sizes = [8, 128], strides = [1, 1]} : vector<8x512xf32> to vector<8x128xf32>
    %462 = arith.negf %461 : vector<8x128xf32>
    %463 = math.exp %462 : vector<8x128xf32>
    %cst_98 = arith.constant 1.000000e+00 : f32
    %464 = vector.broadcast %cst_98 : f32 to vector<8x128xf32>
    %465 = arith.addf %464, %463 : vector<8x128xf32>
    %466 = arith.divf %464, %465 : vector<8x128xf32>
    %467 = vector.extract_strided_slice %460 {offsets = [0, 128], sizes = [8, 128], strides = [1, 1]} : vector<8x512xf32> to vector<8x128xf32>
    %468 = arith.negf %467 : vector<8x128xf32>
    %469 = math.exp %468 : vector<8x128xf32>
    %cst_99 = arith.constant 1.000000e+00 : f32
    %470 = vector.broadcast %cst_99 : f32 to vector<8x128xf32>
    %471 = arith.addf %470, %469 : vector<8x128xf32>
    %472 = arith.divf %470, %471 : vector<8x128xf32>
    %473 = vector.extract_strided_slice %460 {offsets = [0, 256], sizes = [8, 128], strides = [1, 1]} : vector<8x512xf32> to vector<8x128xf32>
    %474 = math.tanh %473 : vector<8x128xf32>
    %475 = vector.extract_strided_slice %460 {offsets = [0, 384], sizes = [8, 128], strides = [1, 1]} : vector<8x512xf32> to vector<8x128xf32>
    %476 = arith.negf %475 : vector<8x128xf32>
    %477 = math.exp %476 : vector<8x128xf32>
    %cst_100 = arith.constant 1.000000e+00 : f32
    %478 = vector.broadcast %cst_100 : f32 to vector<8x128xf32>
    %479 = arith.addf %478, %477 : vector<8x128xf32>
    %480 = arith.divf %478, %479 : vector<8x128xf32>
    %481 = arith.mulf %472, %421 : vector<8x128xf32>
    %482 = arith.mulf %466, %474 : vector<8x128xf32>
    %483 = arith.addf %481, %482 : vector<8x128xf32>
    %484 = math.tanh %483 : vector<8x128xf32>
    %485 = arith.mulf %480, %484 : vector<8x128xf32>
    %486 = arith.truncf %485 : vector<8x128xf32> to vector<8x128xbf16>
    %cst_101 = arith.constant dense<0.000000e+00> : vector<8x512xf32>
    %487 = tpu.matmul %486, %14, %cst_101 {dimension_numbers = #tpu.dot_dimension_numbers<[1], [0], [0], [1], [0, 0, 1, 1], [], []>} : vector<8x128xbf16>, vector<128x512xbf16>, vector<8x512xf32> -> vector<8x512xf32>
    %488 = arith.truncf %454 : vector<8x128xf32> to vector<8x128xbf16>
    %cst_102 = arith.constant dense<0.000000e+00> : vector<8x512xf32>
    %489 = tpu.matmul %488, %16, %cst_102 {dimension_numbers = #tpu.dot_dimension_numbers<[1], [0], [0], [1], [0, 0, 1, 1], [], []>} : vector<8x128xbf16>, vector<128x512xbf16>, vector<8x512xf32> -> vector<8x512xf32>
    %490 = arith.addf %487, %489 : vector<8x512xf32>
    %491 = arith.addf %490, %19 : vector<8x512xf32>
    %492 = vector.extract_strided_slice %491 {offsets = [0, 0], sizes = [8, 128], strides = [1, 1]} : vector<8x512xf32> to vector<8x128xf32>
    %493 = arith.negf %492 : vector<8x128xf32>
    %494 = math.exp %493 : vector<8x128xf32>
    %cst_103 = arith.constant 1.000000e+00 : f32
    %495 = vector.broadcast %cst_103 : f32 to vector<8x128xf32>
    %496 = arith.addf %495, %494 : vector<8x128xf32>
    %497 = arith.divf %495, %496 : vector<8x128xf32>
    %498 = vector.extract_strided_slice %491 {offsets = [0, 128], sizes = [8, 128], strides = [1, 1]} : vector<8x512xf32> to vector<8x128xf32>
    %499 = arith.negf %498 : vector<8x128xf32>
    %500 = math.exp %499 : vector<8x128xf32>
    %cst_104 = arith.constant 1.000000e+00 : f32
    %501 = vector.broadcast %cst_104 : f32 to vector<8x128xf32>
    %502 = arith.addf %501, %500 : vector<8x128xf32>
    %503 = arith.divf %501, %502 : vector<8x128xf32>
    %504 = vector.extract_strided_slice %491 {offsets = [0, 256], sizes = [8, 128], strides = [1, 1]} : vector<8x512xf32> to vector<8x128xf32>
    %505 = math.tanh %504 : vector<8x128xf32>
    %506 = vector.extract_strided_slice %491 {offsets = [0, 384], sizes = [8, 128], strides = [1, 1]} : vector<8x512xf32> to vector<8x128xf32>
    %507 = arith.negf %506 : vector<8x128xf32>
    %508 = math.exp %507 : vector<8x128xf32>
    %cst_105 = arith.constant 1.000000e+00 : f32
    %509 = vector.broadcast %cst_105 : f32 to vector<8x128xf32>
    %510 = arith.addf %509, %508 : vector<8x128xf32>
    %511 = arith.divf %509, %510 : vector<8x128xf32>
    %512 = arith.mulf %503, %452 : vector<8x128xf32>
    %513 = arith.mulf %497, %505 : vector<8x128xf32>
    %514 = arith.addf %512, %513 : vector<8x128xf32>
    %515 = math.tanh %514 : vector<8x128xf32>
    %516 = arith.mulf %511, %515 : vector<8x128xf32>
    %c8_i32 = arith.constant 8 : i32
    %517 = arith.truncf %516 : vector<8x128xf32> to vector<8x128xbf16>
    %c0_106 = arith.constant 0 : index
    %c0_107 = arith.constant 0 : index
    %518 = vector.load %arg8[%c0_106, %c0_107] : memref<128x128xf32, #tpu.memory_space<vmem>>, vector<128x128xf32>
    %519 = arith.truncf %518 : vector<128x128xf32> to vector<128x128xbf16>
    %cst_108 = arith.constant dense<0.000000e+00> : vector<8x128xf32>
    %520 = tpu.matmul %517, %519, %cst_108 {dimension_numbers = #tpu.dot_dimension_numbers<[1], [0], [0], [1], [0, 0, 1, 1], [], []>} : vector<8x128xbf16>, vector<128x128xbf16>, vector<8x128xf32> -> vector<8x128xf32>
    %c0_109 = arith.constant 0 : index
    %c0_110 = arith.constant 0 : index
    %521 = vector.load %arg9[%c0_109, %c0_110] : memref<1x128xf32, #tpu.memory_space<vmem>>, vector<1x128xf32>
    %522 = vector.broadcast %521 : vector<1x128xf32> to vector<8x128xf32>
    %523 = arith.addf %520, %522 : vector<8x128xf32>
    %c0_111 = arith.constant 0 : index
    %c0_112 = arith.constant 0 : index
    %524 = vector.load %arg10[%c0_111, %c0_112] : memref<8x128xf32, #tpu.memory_space<vmem>>, vector<8x128xf32>
    tpu.vector_store %arg10[%c0_111, %c0_112], %523 {strides = array<i32>} : memref<8x128xf32, #tpu.memory_space<vmem>>, vector<8x128xf32>,
    return
  }
  func.func @transform_0(%arg0: i32) -> (i32, i32, i32) {
    %c0_i32 = arith.constant 0 : i32
    %c0_i32_0 = arith.constant 0 : i32
    %c0_i32_1 = arith.constant 0 : i32
    %c0_i32_2 = arith.constant 0 : i32
    return %c0_i32, %c0_i32_0, %c0_i32_1 : i32, i32, i32
  }
  func.func @transform_1(%arg0: i32) -> (i32, i32) {
    %c0_i32 = arith.constant 0 : i32
    %c0_i32_0 = arith.constant 0 : i32
    %c0_i32_1 = arith.constant 0 : i32
    return %c0_i32, %c0_i32_0 : i32, i32
  }
  func.func @transform_2(%arg0: i32) -> (i32, i32) {
    %c0_i32 = arith.constant 0 : i32
    %c0_i32_0 = arith.constant 0 : i32
    %c0_i32_1 = arith.constant 0 : i32
    return %c0_i32, %c0_i32_0 : i32, i32
  }
  func.func @transform_3(%arg0: i32) -> (i32, i32) {
    %c0_i32 = arith.constant 0 : i32
    %c0_i32_0 = arith.constant 0 : i32
    %c0_i32_1 = arith.constant 0 : i32
    return %c0_i32, %c0_i32_0 : i32, i32
  }
  func.func @transform_4(%arg0: i32) -> (i32, i32) {
    %c0_i32 = arith.constant 0 : i32
    %c0_i32_0 = arith.constant 0 : i32
    %c0_i32_1 = arith.constant 0 : i32
    return %c0_i32, %c0_i32_0 : i32, i32
  }
  func.func @transform_5(%arg0: i32) -> (i32, i32) {
    %c0_i32 = arith.constant 0 : i32
    %c0_i32_0 = arith.constant 0 : i32
    %c0_i32_1 = arith.constant 0 : i32
    return %c0_i32, %c0_i32_0 : i32, i32
  }
  func.func @transform_6(%arg0: i32) -> (i32, i32) {
    %c0_i32 = arith.constant 0 : i32
    %c0_i32_0 = arith.constant 0 : i32
    %c0_i32_1 = arith.constant 0 : i32
    return %c0_i32, %c0_i32_0 : i32, i32
  }
  func.func @transform_7(%arg0: i32) -> (i32, i32) {
    %c0_i32 = arith.constant 0 : i32
    %c0_i32_0 = arith.constant 0 : i32
    %c0_i32_1 = arith.constant 0 : i32
    return %c0_i32, %c0_i32_0 : i32, i32
  }
  func.func @transform_8(%arg0: i32) -> (i32, i32) {
    %c0_i32 = arith.constant 0 : i32
    %c0_i32_0 = arith.constant 0 : i32
    %c0_i32_1 = arith.constant 0 : i32
    return %c0_i32, %c0_i32_0 : i32, i32
  }
  func.func @transform_9(%arg0: i32) -> (i32, i32) {
    %c0_i32 = arith.constant 0 : i32
    %c0_i32_0 = arith.constant 0 : i32
    %c0_i32_1 = arith.constant 0 : i32
    return %c0_i32, %c0_i32_0 : i32, i32
  }
}

</mosaic_0001>

<bundles_post_ra>
// kernel: tpu_custom_call.1
= control target key start
LH: loop header
LB: loop body
LE: loop exit
PB: predicated region body
PF: predicated region fallthrough
CT: control target
= control target key end

     0   :  { %14 = vsyncpa [#allocation4], 0  ;;  %s5227_s0 = inlined_call_operand.hbm [shape: f32[8,8,128], index: 0, kind: input, shape index: {}]   ;;  %s5228_s1 = inlined_call_operand.hbm [shape: f32[128,512], index: 1, kind: input, shape index: {}]   ;;  %s5229_s2 = inlined_call_operand.hbm [shape: f32[128,512], index: 2, kind: input, shape index: {}]   ;;  %s5230_s3 = inlined_call_operand.vmem [shape: f32[1,512], index: 3, kind: input, shape index: {}]   ;;  %s5231_s4 = inlined_call_operand.hbm [shape: f32[128,512], index: 4, kind: input, shape index: {}]   ;;  %s5232_s5 = inlined_call_operand.hbm [shape: f32[128,512], index: 5, kind: input, shape index: {}]   ;;  %s5233_s6 = inlined_call_operand.vmem [shape: f32[1,512], index: 6, kind: input, shape index: {}]   ;;  %s5234_s7 = inlined_call_operand.hbm [shape: f32[128,128], index: 7, kind: input, shape index: {}]   ;;  %s5235_s8 = inlined_call_operand.vmem [shape: f32[1,128], index: 8, kind: input, shape index: {}]   ;;  %s5236_s9 = inlined_call_operand.hbm [shape: f32[8,128], index: 9, kind: output, shape index: {}]  }
   0x1   :  { %15 = vsyncpa [#allocation7], 0 }
   0x2   :  { %16 = vsyncpa [#allocation10], 0 }
   0x3   :  { %17 = vsyncpa [#allocation13], 0 }
   0x4   :  { %18 = vsyncpa [#allocation5], 0  ;;  %s3807_s30 = smov [#allocation6]   ;;  %s3643_s13 = scalar_lea.hbm %s5228_s1, 8192 }
   0x5   :  { %s36_s10 = sshll.u32 %s3807_s30, 4  ;;  %p3644_p0 = scmp.ne.s32.totalorder %s5228_s1, %s3643_s13  ;;  %s37_s10 = int_to_ptr.vmem [resolvable:$true] %s36_s10 }
   0x6   :  { %p3647_p1 = scmp.lt.u32.totalorder %s3643_s13, %s5228_s1 }
   0x8   :  { %p3649_p2 = pnand %p3647_p1, %p3644_p0 }
   0xa   :  { %3652 = shalt.err (!%p3649_p2)
}
   0xb   :  { %s3653_s18 = scalar_lea.vmem %s37_s10, 8192  ;;  %p3658_p4 = scmp.lt.s32.totalorder %s37_s10, %s37_s10 }
   0xc   :  { %p3654_p3 = scmp.ne.s32.totalorder %s37_s10, %s3653_s18  ;;  %p3659_p5 = scmp.lt.s32.totalorder %s3653_s18, %s3653_s18 }
   0xe   :  { %p3660_p6 = por %p3659_p5, %p3658_p4 }
  0x10   :  { %p3661_p7 = pnand %p3660_p6, %p3654_p3 }
  0x12   :  { %3664 = shalt.err (!%p3661_p7)
}
  0x13   :  { %s3808_s19 = smov 512   ;;  %s3809_s20 = smov 32  }
  0x14   :  { %42 = dma.hbm_to_vmem [thread:$0]  %s5228_s1, 8192, %s37_s10, [#allocation7], %s3808_s19, %s3808_s19, %s3809_s20  }
  0x15   :  { %s3810_s23 = smov [#allocation9]   ;;  %s3811_s25 = smov [#allocation3]  }
  0x16   :  { %s62_s24 = sshll.u32 %s3810_s23, 4  ;;  %s24_s26 = sshll.u32 %s3811_s25, 4  ;;  %s63_s24 = int_to_ptr.vmem [resolvable:$true] %s62_s24  ;;  %s25_s26 = int_to_ptr.vmem [resolvable:$true] %s24_s26 }
  0x17   :  { %s3665_s29 = scalar_lea.hbm %s5231_s4, 8192 }
  0x18   :  { %p3666_p8 = scmp.ne.s32.totalorder %s5231_s4, %s3665_s29  ;;  %p3669_p9 = scmp.lt.u32.totalorder %s3665_s29, %s5231_s4 }
  0x1a   :  { %p3671_p10 = pnand %p3669_p9, %p3666_p8 }
  0x1c   :  { %3674 = shalt.err (!%p3671_p10)
}
  0x1d   :  { %s3675_s1 = scalar_lea.vmem %s63_s24, 8192  ;;  %p3680_p12 = scmp.lt.s32.totalorder %s63_s24, %s63_s24 }
  0x1e   :  { %p3676_p11 = scmp.ne.s32.totalorder %s63_s24, %s3675_s1  ;;  %p3681_p13 = scmp.lt.s32.totalorder %s3675_s1, %s3675_s1 }
  0x20   :  { %p3682_p0 = por %p3681_p13, %p3680_p12 }
  0x22   :  { %p3683_p1 = pnand %p3682_p0, %p3676_p11 }
  0x24   :  { %3686 = shalt.err (!%p3683_p1)
}
  0x25   :  { %68 = dma.hbm_to_vmem [thread:$0]  %s5231_s4, 8192, %s63_s24, [#allocation10], %s3808_s19, %s3808_s19, %s3809_s20  }
  0x26   :  { %s3687_s17 = scalar_lea.hbm %s5227_s0, 1024 }
  0x27   :  { %p3688_p2 = scmp.ne.s32.totalorder %s5227_s0, %s3687_s17  ;;  %p3691_p3 = scmp.lt.u32.totalorder %s3687_s17, %s5227_s0 }
  0x29   :  { %p3693_p4 = pnand %p3691_p3, %p3688_p2 }
  0x2b   :  { %3696 = shalt.err (!%p3693_p4)
}
  0x2c   :  { %s3697_s25 = scalar_lea.vmem %s25_s26, 1024  ;;  %p3702_p6 = scmp.lt.s32.totalorder %s25_s26, %s25_s26 }
  0x2d   :  { %p3698_p5 = scmp.ne.s32.totalorder %s25_s26, %s3697_s25  ;;  %p3703_p7 = scmp.lt.s32.totalorder %s3697_s25, %s3697_s25 }
  0x2f   :  { %p3704_p8 = por %p3703_p7, %p3702_p6 }
  0x31   :  { %p3705_p9 = pnand %p3704_p8, %p3698_p5 }
  0x33   :  { %3708 = shalt.err (!%p3705_p9)
}
  0x34   :  { %s3812_s4 = smov 128   ;;  %s3813_s24 = smov 8  }
  0x35   :  { %30 = dma.hbm_to_vmem [thread:$0]  %s5227_s0, 1024, %s25_s26, [#allocation4], %s3812_s4, %s3812_s4, %s3813_s24  }
  0x36   :  { %s3814_s29 = smov [#allocation8]   ;;  %s3815_s11 = smov [#allocation11]  }
  0x37   :  { %s48_s30 = sshll.u32 %s3814_s29, 4  ;;  %s74_s12 = sshll.u32 %s3815_s11, 4  ;;  %s49_s30 = int_to_ptr.vmem [resolvable:$true] %s48_s30  ;;  %s75_s12 = int_to_ptr.vmem [resolvable:$true] %s74_s12 }
  0x38   :  { %s3709_s10 = scalar_lea.hbm %s5229_s2, 8192 }
  0x39   :  { %p3710_p10 = scmp.ne.s32.totalorder %s5229_s2, %s3709_s10  ;;  %p3713_p11 = scmp.lt.u32.totalorder %s3709_s10, %s5229_s2 }
  0x3b   :  { %p3715_p12 = pnand %p3713_p11, %p3710_p10 }
  0x3d   :  { %3718 = shalt.err (!%p3715_p12)
}
  0x3e   :  { %s3719_s0 = scalar_lea.vmem %s49_s30, 8192  ;;  %p3724_p0 = scmp.lt.s32.totalorder %s49_s30, %s49_s30 }
  0x3f   :  { %p3720_p13 = scmp.ne.s32.totalorder %s49_s30, %s3719_s0  ;;  %p3725_p1 = scmp.lt.s32.totalorder %s3719_s0, %s3719_s0 }
  0x41   :  { %p3726_p2 = por %p3725_p1, %p3724_p0 }
  0x43   :  { %p3727_p3 = pnand %p3726_p2, %p3720_p13 }
  0x45   :  { %3730 = shalt.err (!%p3727_p3)
}
  0x46   :  { %54 = dma.hbm_to_vmem [thread:$0]  %s5229_s2, 8192, %s49_s30, [#allocation7], %s3808_s19, %s3808_s19, %s3809_s20  }
  0x47   :  { %s3731_s23 = scalar_lea.hbm %s5232_s5, 8192 }
  0x48   :  { %p3732_p4 = scmp.ne.s32.totalorder %s5232_s5, %s3731_s23  ;;  %p3735_p5 = scmp.lt.u32.totalorder %s3731_s23, %s5232_s5 }
  0x4a   :  { %p3737_p6 = pnand %p3735_p5, %p3732_p4 }
  0x4c   :  { %3740 = shalt.err (!%p3737_p6)
}
  0x4d   :  { %s3741_s11 = scalar_lea.vmem %s75_s12, 8192  ;;  %p3746_p8 = scmp.lt.s32.totalorder %s75_s12, %s75_s12 }
  0x4e   :  { %p3742_p7 = scmp.ne.s32.totalorder %s75_s12, %s3741_s11  ;;  %p3747_p9 = scmp.lt.s32.totalorder %s3741_s11, %s3741_s11 }
  0x50   :  { %p3748_p10 = por %p3747_p9, %p3746_p8 }
  0x52   :  { %p3749_p11 = pnand %p3748_p10, %p3742_p7 }
  0x54   :  { %3752 = shalt.err (!%p3749_p11)
}
  0x55   :  { %80 = dma.hbm_to_vmem [thread:$0]  %s5232_s5, 8192, %s75_s12, [#allocation10], %s3808_s19, %s3808_s19, %s3809_s20  }
  0x56   :  { %s3816_s13 = smov [#allocation12]   ;;  %s3753_s15 = scalar_lea.hbm %s5234_s7, 2048 }
  0x57   :  { %s88_s1 = sshll.u32 %s3816_s13, 4  ;;  %p3754_p12 = scmp.ne.s32.totalorder %s5234_s7, %s3753_s15  ;;  %s89_s1 = int_to_ptr.vmem [resolvable:$true] %s88_s1 }
  0x58   :  { %p3757_p13 = scmp.lt.u32.totalorder %s3753_s15, %s5234_s7 }
  0x5a   :  { %p3759_p0 = pnand %p3757_p13, %p3754_p12 }
  0x5c   :  { %3762 = shalt.err (!%p3759_p0)
}
  0x5d   :  { %s3763_s18 = scalar_lea.vmem %s89_s1, 2048  ;;  %p3768_p2 = scmp.lt.s32.totalorder %s89_s1, %s89_s1 }
  0x5e   :  { %p3764_p1 = scmp.ne.s32.totalorder %s89_s1, %s3763_s18  ;;  %p3769_p3 = scmp.lt.s32.totalorder %s3763_s18, %s3763_s18 }
  0x60   :  { %p3770_p4 = por %p3769_p3, %p3768_p2 }
  0x62   :  { %p3771_p5 = pnand %p3770_p4, %p3764_p1 }
  0x64   :  { %3774 = shalt.err (!%p3771_p5)
}
  0x65   :  { %94 = dma.hbm_to_vmem [thread:$0]  %s5234_s7, 2048, %s89_s1, [#allocation13], %s3812_s4, %s3812_s4, %s3813_s24  }
  0x66   :  { %3797 = dma.done.wait [#allocation4], 1024  }
  0x67   :  { %3798 = vsyncadd [#allocation4], 4294966272 }
  0x68   :  { %3799 = dma.done.wait [#allocation7], 16384  }
  0x69   :  { %3800 = vsyncadd [#allocation7], 4294950912 }
  0x6a   :  { %3801 = dma.done.wait [#allocation10], 16384  }
  0x6b   :  { %3802 = vsyncadd [#allocation10], 4294950912 }
  0x6c   :  { %3803 = dma.done.wait [#allocation13], 2048  }
  0x6d   :  { %3804 = vsyncadd [#allocation13], 4294965248  ;;  %v5237_v0 = vmov 0   ;;  %v129_v1 = vld [vmem:[#allocation6 + $0x8] sm:$0xff]  ;;  %v131_v3 = vld [vmem:[#allocation6 + $0x18] sm:$0xff]  ;;  %vm3819_vm0 = vmmov 0  }
  0x6e   :  { %278 = vmatprep.mubr.bf16.mxu0 %v5237_v0  ;;  %351 = vmatprep.mubr.bf16.mxu1 %v5237_v0  ;;  %v133_v2 = vld [vmem:[#allocation6 + $0x28] sm:$0xff]  ;;  %v135_v5 = vld [vmem:[#allocation6 + $0x38] sm:$0xff]  ;;  %v128_v6 = vld [vmem:[#allocation6] sm:$0xff]  ;;  %s3820_s12 = smov [#allocation14]  }
  0x6f   :  { %v193_v4 = vpack.c.bf16 %v133_v2, %v129_v1  ;;  %v132_v7 = vld [vmem:[#allocation6 + $0x20] sm:$0xff]  ;;  %v195_v8 = vpack.c.bf16 %v135_v5, %v131_v3  ;;  %v130_v10 = vld [vmem:[#allocation6 + $0x10] sm:$0xff]  ;;  %v137_v12 = vld [vmem:[#allocation6 + $0x48] sm:$0xff]  ;;  %s3283_s21 = sshll.u32 %s3820_s12, 4  ;;  %s3284_s21 = int_to_ptr.vmem [resolvable:$true] %s3283_s21 }
  0x70   :  { %v192_v9 = vpack.c.bf16 %v132_v7, %v128_v6  ;;  %v134_v11 = vld [vmem:[#allocation6 + $0x30] sm:$0xff]  ;;  %v141_v14 = vld [vmem:[#allocation6 + $0x68] sm:$0xff]  ;;  %v139_v15 = vld [vmem:[#allocation6 + $0x58] sm:$0xff]  ;;  %s3775_s22 = scalar_lea.vmem %s3284_s21, 128  ;;  %p3780_p7 = scmp.lt.s32.totalorder %s3284_s21, %s3284_s21 }
  0x71   :  { %246 = vmatprep.subr.bf16.mxu0 %v193_v4  ;;  %v194_v13 = vpack.c.bf16 %v134_v11, %v130_v10  ;;  %v143_v16 = vld [vmem:[#allocation6 + $0x78] sm:$0xff]  ;;  %319 = vmatprep.subr.bf16.mxu1 %v195_v8  ;;  %v197_v17 = vpack.c.bf16 %v141_v14, %v137_v12  ;;  %v136_v19 = vld [vmem:[#allocation6 + $0x40] sm:$0xff]  ;;  %v138_v21 = vld [vmem:[#allocation6 + $0x50] sm:$0xff]  ;;  %p3776_p6 = scmp.ne.s32.totalorder %s3284_s21, %s3775_s22  ;;  %p3781_p8 = scmp.lt.s32.totalorder %s3775_s22, %s3775_s22 }
  0x72   :  { %247 = vmatpush1.bf16.msra.mxu0 %v192_v9  ;;  %v199_v18 = vpack.c.bf16 %v143_v16, %v139_v15  ;;  %v140_v20 = vld [vmem:[#allocation6 + $0x60] sm:$0xff]  ;;  %v142_v23 = vld [vmem:[#allocation6 + $0x70] sm:$0xff]  ;;  %v145_v24 = vld [vmem:[#allocation6 + $0x88] sm:$0xff] }
  0x73   :  { %320 = vmatpush1.bf16.msra.mxu1 %v194_v13  ;;  %v196_v22 = vpack.c.bf16 %v140_v20, %v136_v19  ;;  %v149_v25 = vld [vmem:[#allocation6 + $0xa8] sm:$0xff]  ;;  %248 = vmatprep.subr.bf16.mxu0 %v197_v17  ;;  %v198_v26 = vpack.c.bf16 %v142_v23, %v138_v21  ;;  %v147_v28 = vld [vmem:[#allocation6 + $0x98] sm:$0xff]  ;;  %v144_v30 = vld [vmem:[#allocation6 + $0x80] sm:$0xff]  ;;  %p3782_p9 = por %p3781_p8, %p3780_p7 }
  0x74   :  { %321 = vmatprep.subr.bf16.mxu1 %v199_v18  ;;  %v201_v27 = vpack.c.bf16 %v149_v25, %v145_v24  ;;  %v151_v29 = vld [vmem:[#allocation6 + $0xb8] sm:$0xff]  ;;  %v148_v32 = vld [vmem:[#allocation6 + $0xa0] sm:$0xff]  ;;  %v146_v33 = vld [vmem:[#allocation6 + $0x90] sm:$0xff] }
  0x75   :  { %v203_v31 = vpack.c.bf16 %v151_v29, %v147_v28  ;;  %v150_v34 = vld [vmem:[#allocation6 + $0xb0] sm:$0xff]  ;;  %v200_v35 = vpack.c.bf16 %v148_v32, %v144_v30  ;;  %v153_v36 = vld [vmem:[#allocation6 + $0xc8] sm:$0xff]  ;;  %v155_v38 = vld [vmem:[#allocation6 + $0xd8] sm:$0xff]  ;;  %p3783_p10 = pnand %p3782_p9, %p3776_p6 }
  0x76   :  { %249 = vmatpush1.bf16.msra.mxu0 %v196_v22  ;;  %v157_v37 = vld [vmem:[#allocation6 + $0xe8] sm:$0xff]  ;;  %v202_v39 = vpack.c.bf16 %v150_v34, %v146_v33  ;;  %v159_v41 = vld [vmem:[#allocation6 + $0xf8] sm:$0xff]  ;;  %v152_v42 = vld [vmem:[#allocation6 + $0xc0] sm:$0xff] }
  0x77   :  { %322 = vmatpush1.bf16.msra.mxu1 %v198_v26  ;;  %250 = vmatprep.subr.bf16.mxu0 %v201_v27  ;;  %v205_v40 = vpack.c.bf16 %v157_v37, %v153_v36  ;;  %v156_v43 = vld [vmem:[#allocation6 + $0xe0] sm:$0xff]  ;;  %v207_v44 = vpack.c.bf16 %v159_v41, %v155_v38  ;;  %v154_v45 = vld [vmem:[#allocation6 + $0xd0] sm:$0xff]  ;;  %v161_v47 = vld [vmem:[#allocation6 + $0x108] sm:$0xff] }
  0x78   :  { %323 = vmatprep.subr.bf16.mxu1 %v203_v31  ;;  %v158_v46 = vld [vmem:[#allocation6 + $0xf0] sm:$0xff]  ;;  %v165_v48 = vld [vmem:[#allocation6 + $0x128] sm:$0xff]  ;;  %v163_v49 = vld [vmem:[#allocation6 + $0x118] sm:$0xff]  ;;  %v204_v51 = vpack.c.bf16 %v156_v43, %v152_v42 }
  0x79   :  { %v167_v50 = vld [vmem:[#allocation6 + $0x138] sm:$0xff]  ;;  %v206_v52 = vpack.c.bf16 %v158_v46, %v154_v45  ;;  %v209_v53 = vpack.c.bf16 %v165_v48, %v161_v47  ;;  %v160_v54 = vld [vmem:[#allocation6 + $0x100] sm:$0xff]  ;;  %v162_v56 = vld [vmem:[#allocation6 + $0x110] sm:$0xff] }
  0x7a   :  { %251 = vmatpush1.bf16.msra.mxu0 %v200_v35  ;;  %v164_v55 = vld [vmem:[#allocation6 + $0x120] sm:$0xff]  ;;  %v211_v57 = vpack.c.bf16 %v167_v50, %v163_v49  ;;  %v166_v58 = vld [vmem:[#allocation6 + $0x130] sm:$0xff]  ;;  %v169_v59 = vld [vmem:[#allocation6 + $0x148] sm:$0xff] }
  0x7b   :  { %324 = vmatpush1.bf16.msra.mxu1 %v202_v39  ;;  %252 = vmatprep.subr.bf16.mxu0 %v205_v40  ;;  %v173_v60 = vld [vmem:[#allocation6 + $0x168] sm:$0xff]  ;;  %v171_v61 = vld [vmem:[#allocation6 + $0x158] sm:$0xff]  ;;  %v208_v63 = vpack.c.bf16 %v164_v55, %v160_v54  ;;  %v210_v1 = vpack.c.bf16 %v166_v58, %v162_v56  ;;  %v168_v3 = vld [vmem:[#allocation6 + $0x140] sm:$0xff] }
  0x7c   :  { %325 = vmatprep.subr.bf16.mxu1 %v207_v44  ;;  %v175_v62 = vld [vmem:[#allocation6 + $0x178] sm:$0xff]  ;;  %v213_v2 = vpack.c.bf16 %v173_v60, %v169_v59  ;;  %v172_v4 = vld [vmem:[#allocation6 + $0x160] sm:$0xff]  ;;  %v170_v5 = vld [vmem:[#allocation6 + $0x150] sm:$0xff] }
  0x7d   :  { %v215_v6 = vpack.c.bf16 %v175_v62, %v171_v61  ;;  %v174_v7 = vld [vmem:[#allocation6 + $0x170] sm:$0xff]  ;;  %v177_v8 = vld [vmem:[#allocation6 + $0x188] sm:$0xff]  ;;  %v179_v10 = vld [vmem:[#allocation6 + $0x198] sm:$0xff]  ;;  %v212_v12 = vpack.c.bf16 %v172_v4, %v168_v3 }
  0x7e   :  { %253 = vmatpush1.bf16.msra.mxu0 %v204_v51  ;;  %v181_v9 = vld [vmem:[#allocation6 + $0x1a8] sm:$0xff]  ;;  %v183_v11 = vld [vmem:[#allocation6 + $0x1b8] sm:$0xff]  ;;  %v214_v13 = vpack.c.bf16 %v174_v7, %v170_v5  ;;  %v176_v15 = vld [vmem:[#allocation6 + $0x180] sm:$0xff] }
  0x7f   :  { %326 = vmatpush1.bf16.msra.mxu1 %v206_v52  ;;  %254 = vmatprep.subr.bf16.mxu0 %v209_v53  ;;  %v217_v14 = vpack.c.bf16 %v181_v9, %v177_v8  ;;  %v180_v16 = vld [vmem:[#allocation6 + $0x1a0] sm:$0xff]  ;;  %v178_v17 = vld [vmem:[#allocation6 + $0x190] sm:$0xff]  ;;  %v219_v18 = vpack.c.bf16 %v183_v11, %v179_v10  ;;  %v185_v20 = vld [vmem:[#allocation6 + $0x1c8] sm:$0xff] }
  0x80   :  { %327 = vmatprep.subr.bf16.mxu1 %v211_v57  ;;  %v182_v19 = vld [vmem:[#allocation6 + $0x1b0] sm:$0xff]  ;;  %v189_v21 = vld [vmem:[#allocation6 + $0x1e8] sm:$0xff]  ;;  %v187_v22 = vld [vmem:[#allocation6 + $0x1d8] sm:$0xff]  ;;  %v216_v24 = vpack.c.bf16 %v180_v16, %v176_v15 }
  0x81   :  { %v191_v23 = vld [vmem:[#allocation6 + $0x1f8] sm:$0xff]  ;;  %v218_v25 = vpack.c.bf16 %v182_v19, %v178_v17  ;;  %v221_v26 = vpack.c.bf16 %v189_v21, %v185_v20  ;;  %v184_v27 = vld [vmem:[#allocation6 + $0x1c0] sm:$0xff]  ;;  %v186_v29 = vld [vmem:[#allocation6 + $0x1d0] sm:$0xff] }
  0x82   :  { %255 = vmatpush1.bf16.msra.mxu0 %v208_v63  ;;  %v188_v28 = vld [vmem:[#allocation6 + $0x1e0] sm:$0xff]  ;;  %v223_v30 = vpack.c.bf16 %v191_v23, %v187_v22  ;;  %v190_v31 = vld [vmem:[#allocation6 + $0x1f0] sm:$0xff]  ;;  %v425_v32 = vld [vmem:[#allocation8 + $0x8] sm:$0xff] }
  0x83   :  { %328 = vmatpush1.bf16.msra.mxu1 %v210_v1  ;;  %256 = vmatprep.subr.bf16.mxu0 %v213_v2  ;;  %v429_v33 = vld [vmem:[#allocation8 + $0x28] sm:$0xff]  ;;  %v427_v34 = vld [vmem:[#allocation8 + $0x18] sm:$0xff]  ;;  %v220_v36 = vpack.c.bf16 %v188_v28, %v184_v27  ;;  %v116_v37 = vld [vmem:[#allocation3] sm:$0xff]  ;;  %v222_v39 = vpack.c.bf16 %v190_v31, %v186_v29 }
  0x84   :  { %329 = vmatprep.subr.bf16.mxu1 %v215_v6  ;;  %v431_v35 = vld [vmem:[#allocation8 + $0x38] sm:$0xff]  ;;  %v117_v38 = vld [vmem:[#allocation3 + $0x8] sm:$0xff]  ;;  %v3963_v40 = vpack.c.bf16 %v429_v33, %v425_v32  ;;  %v424_v41 = vld [vmem:[#allocation8] sm:$0xff] }
  0x85   :  { %v428_v42 = vld [vmem:[#allocation8 + $0x20] sm:$0xff]  ;;  %v426_v43 = vld [vmem:[#allocation8 + $0x10] sm:$0xff]  ;;  %v3965_v44 = vpack.c.bf16 %v431_v35, %v427_v34  ;;  %v433_v46 = vld [vmem:[#allocation8 + $0x48] sm:$0xff]  ;;  %v124_v48 = vpack.c.bf16 %v117_v38, %v116_v37 }
  0x86   :  { %257 = vmatpush1.bf16.msra.mxu0 %v212_v12  ;;  %5432 = vst [vmem:[#allocation20_spill] sm:$0xff] %v3963_v40  ;;  %v430_v45 = vld [vmem:[#allocation8 + $0x30] sm:$0xff]  ;;  %v437_v47 = vld [vmem:[#allocation8 + $0x68] sm:$0xff]  ;;  %v435_v49 = vld [vmem:[#allocation8 + $0x58] sm:$0xff]  ;;  %v3967_v51 = vpack.c.bf16 %v428_v42, %v424_v41 }
  0x87   :  { %330 = vmatpush1.bf16.msra.mxu1 %v214_v13  ;;  %258 = vmatprep.subr.bf16.mxu0 %v217_v14  ;;  %5433 = vst [vmem:[#allocation21_spill] sm:$0xff] %v3965_v44  ;;  %v439_v50 = vld [vmem:[#allocation8 + $0x78] sm:$0xff]  ;;  %v3970_v52 = vpack.c.bf16 %v430_v45, %v426_v43  ;;  %v3972_v53 = vpack.c.bf16 %v437_v47, %v433_v46  ;;  %v432_v54 = vld [vmem:[#allocation8 + $0x40] sm:$0xff]  ;;  %v434_v56 = vld [vmem:[#allocation8 + $0x50] sm:$0xff] }
  0x88   :  { %331 = vmatprep.subr.bf16.mxu1 %v219_v18  ;;  %v436_v55 = vld [vmem:[#allocation8 + $0x60] sm:$0xff]  ;;  %v3975_v57 = vpack.c.bf16 %v439_v50, %v435_v49  ;;  %v438_v58 = vld [vmem:[#allocation8 + $0x70] sm:$0xff]  ;;  %v441_v59 = vld [vmem:[#allocation8 + $0x88] sm:$0xff] }
  0x89   :  { %v445_v60 = vld [vmem:[#allocation8 + $0xa8] sm:$0xff]  ;;  %v443_v61 = vld [vmem:[#allocation8 + $0x98] sm:$0xff]  ;;  %v3978_v63 = vpack.c.bf16 %v436_v55, %v432_v54  ;;  %v118_v1 = vld [vmem:[#allocation3 + $0x10] sm:$0xff]  ;;  %v3982_v3 = vpack.c.bf16 %v438_v58, %v434_v56 }
  0x8a   :  { %259 = vmatpush1.bf16.msra.mxu0 %v216_v24  ;;  %5434 = vst [vmem:[#allocation22_spill] sm:$0xff] %v3975_v57  ;;  %v447_v62 = vld [vmem:[#allocation8 + $0xb8] sm:$0xff]  ;;  %v3984_v4 = vpack.c.bf16 %v445_v60, %v441_v59  ;;  %v440_v5 = vld [vmem:[#allocation8 + $0x80] sm:$0xff]  ;;  %v442_v7 = vld [vmem:[#allocation8 + $0x90] sm:$0xff] }
  0x8b   :  { %332 = vmatpush1.bf16.msra.mxu1 %v218_v25  ;;  %260 = vmatprep.subr.bf16.mxu0 %v221_v26  ;;  %5435 = vst [vmem:[#allocation23_spill] sm:$0xff] %v3978_v63  ;;  %v119_v2 = vld [vmem:[#allocation3 + $0x18] sm:$0xff]  ;;  %5436 = vst [vmem:[#allocation24_spill] sm:$0xff] %v3982_v3  ;;  %v444_v6 = vld [vmem:[#allocation8 + $0xa0] sm:$0xff]  ;;  %v3988_v8 = vpack.c.bf16 %v447_v62, %v443_v61 }
  0x8c   :  { %333 = vmatprep.subr.bf16.mxu1 %v223_v30  ;;  %5437 = vst [vmem:[#allocation25_spill] sm:$0xff] %v3984_v4  ;;  %v446_v9 = vld [vmem:[#allocation8 + $0xb0] sm:$0xff]  ;;  %v449_v10 = vld [vmem:[#allocation8 + $0xc8] sm:$0xff]  ;;  %v125_v12 = vpack.c.bf16 %v119_v2, %v118_v1  ;;  %v451_v13 = vld [vmem:[#allocation8 + $0xd8] sm:$0xff]  ;;  %v3992_v15 = vpack.c.bf16 %v444_v6, %v440_v5 }
  0x8d   :  { %5438 = vst [vmem:[#allocation26_spill] sm:$0xff] %v3988_v8  ;;  %v453_v11 = vld [vmem:[#allocation8 + $0xe8] sm:$0xff]  ;;  %v455_v14 = vld [vmem:[#allocation8 + $0xf8] sm:$0xff]  ;;  %v3996_v16 = vpack.c.bf16 %v446_v9, %v442_v7  ;;  %v448_v18 = vld [vmem:[#allocation8 + $0xc0] sm:$0xff] }
  0x8e   :  { %261 = vmatpush1.bf16.msra.mxu0 %v220_v36  ;;  %5439 = vst [vmem:[#allocation27_spill] sm:$0xff] %v3992_v15  ;;  %v3998_v17 = vpack.c.bf16 %v453_v11, %v449_v10  ;;  %v452_v19 = vld [vmem:[#allocation8 + $0xe0] sm:$0xff]  ;;  %v450_v20 = vld [vmem:[#allocation8 + $0xd0] sm:$0xff]  ;;  %v4001_v21 = vpack.c.bf16 %v455_v14, %v451_v13  ;;  %v457_v23 = vld [vmem:[#allocation8 + $0x108] sm:$0xff] }
  0x8f   :  { %334 = vmatpush1.bf16.msra.mxu1 %v222_v39  ;;  %738 = vmatprep.subr.bf16.mxu0 %v3963_v40  ;;  %5440 = vst [vmem:[#allocation28_spill] sm:$0xff] %v3996_v16  ;;  %v454_v22 = vld [vmem:[#allocation8 + $0xf0] sm:$0xff]  ;;  %v461_v24 = vld [vmem:[#allocation8 + $0x128] sm:$0xff]  ;;  %v459_v25 = vld [vmem:[#allocation8 + $0x118] sm:$0xff]  ;;  %v4004_v27 = vpack.c.bf16 %v452_v19, %v448_v18 }
  0x90   :  { %779 = vmatprep.subr.bf16.mxu1 %v3965_v44  ;;  %5441 = vst [vmem:[#allocation29_spill] sm:$0xff] %v3998_v17  ;;  %5442 = vst [vmem:[#allocation30_spill] sm:$0xff] %v4001_v21  ;;  %v463_v26 = vld [vmem:[#allocation8 + $0x138] sm:$0xff]  ;;  %v120_v28 = vld [vmem:[#allocation3 + $0x20] sm:$0xff]  ;;  %v4008_v30 = vpack.c.bf16 %v454_v22, %v450_v20  ;;  %v4010_v31 = vpack.c.bf16 %v461_v24, %v457_v23 }
  0x91   :  { %279 = vmatmul.mubr.bf16.vlgmr.msra.gmra.mrb[0].mxu0 %v124_v48  ;;  %5443 = vst [vmem:[#allocation31_spill] sm:$0xff] %v4004_v27  ;;  %v121_v29 = vld [vmem:[#allocation3 + $0x28] sm:$0xff]  ;;  %v456_v32 = vld [vmem:[#allocation8 + $0x100] sm:$0xff]  ;;  %v458_v34 = vld [vmem:[#allocation8 + $0x110] sm:$0xff]  ;;  %v4014_v35 = vpack.c.bf16 %v463_v26, %v459_v25 }
  0x92   :  { %352 = vmatmul.mubr.bf16.vlgmr.msra.gmra.mrb[0].mxu1 %v124_v48  ;;  %739 = vmatpush1.bf16.msra.mxu0 %v3967_v51  ;;  %5444 = vst [vmem:[#allocation32_spill] sm:$0xff] %v4008_v30  ;;  %5445 = vst [vmem:[#allocation33_spill] sm:$0xff] %v4010_v31  ;;  %v460_v33 = vld [vmem:[#allocation8 + $0x120] sm:$0xff]  ;;  %v462_v36 = vld [vmem:[#allocation8 + $0x130] sm:$0xff]  ;;  %v126_v39 = vpack.c.bf16 %v121_v29, %v120_v28 }
  0x93   :  { %780 = vmatpush1.bf16.msra.mxu1 %v3970_v52  ;;  %740 = vmatprep.subr.bf16.mxu0 %v3972_v53  ;;  %5446 = vst [vmem:[#allocation34_spill] sm:$0xff] %v4014_v35  ;;  %v465_v37 = vld [vmem:[#allocation8 + $0x148] sm:$0xff]  ;;  %v467_v41 = vld [vmem:[#allocation8 + $0x158] sm:$0xff]  ;;  %v4018_v43 = vpack.c.bf16 %v460_v33, %v456_v32  ;;  %v4022_v45 = vpack.c.bf16 %v462_v36, %v458_v34  ;;  %v464_v47 = vld [vmem:[#allocation8 + $0x140] sm:$0xff] }
  0x94   :  { %781 = vmatprep.subr.bf16.mxu1 %v3975_v57  ;;  %288 = vmatprep.mubr.bf16.mxu0 %v5237_v0  ;;  %v469_v38 = vld [vmem:[#allocation8 + $0x168] sm:$0xff]  ;;  %v471_v42 = vld [vmem:[#allocation8 + $0x178] sm:$0xff]  ;;  %v468_v48 = vld [vmem:[#allocation8 + $0x160] sm:$0xff] }
  0x95   :  { %361 = vmatprep.mubr.bf16.mxu1 %v5237_v0  ;;  %5447 = vst [vmem:[#allocation35_spill] sm:$0xff] %v4018_v43  ;;  %5448 = vst [vmem:[#allocation36_spill] sm:$0xff] %v4022_v45  ;;  %v4024_v46 = vpack.c.bf16 %v469_v38, %v465_v37  ;;  %v466_v49 = vld [vmem:[#allocation8 + $0x150] sm:$0xff]  ;;  %v4027_v50 = vpack.c.bf16 %v471_v42, %v467_v41  ;;  %v473_v55 = vld [vmem:[#allocation8 + $0x188] sm:$0xff]  ;;  %v4030_v60 = vpack.c.bf16 %v468_v48, %v464_v47 }
  0x96   :  { %741 = vmatpush1.bf16.msra.mxu0 %v3978_v63  ;;  %v470_v54 = vld [vmem:[#allocation8 + $0x170] sm:$0xff]  ;;  %v477_v56 = vld [vmem:[#allocation8 + $0x1a8] sm:$0xff]  ;;  %v475_v58 = vld [vmem:[#allocation8 + $0x198] sm:$0xff] }
  0x97   :  { %782 = vmatpush1.bf16.msra.mxu1 %v3982_v3  ;;  %742 = vmatprep.subr.bf16.mxu0 %v3984_v4  ;;  %5449 = vst [vmem:[#allocation37_spill] sm:$0xff] %v4024_v46  ;;  %5450 = vst [vmem:[#allocation38_spill] sm:$0xff] %v4027_v50  ;;  %v479_v59 = vld [vmem:[#allocation8 + $0x1b8] sm:$0xff]  ;;  %v122_v61 = vld [vmem:[#allocation3 + $0x30] sm:$0xff]  ;;  %v4034_v1 = vpack.c.bf16 %v470_v54, %v466_v49  ;;  %v4036_v2 = vpack.c.bf16 %v477_v56, %v473_v55 }
  0x98   :  { %783 = vmatprep.subr.bf16.mxu1 %v3988_v8  ;;  %5451 = vst [vmem:[#allocation39_spill] sm:$0xff] %v4030_v60  ;;  %v123_v62 = vld [vmem:[#allocation3 + $0x38] sm:$0xff]  ;;  %v472_v5 = vld [vmem:[#allocation8 + $0x180] sm:$0xff]  ;;  %v474_v7 = vld [vmem:[#allocation8 + $0x190] sm:$0xff]  ;;  %v4040_v9 = vpack.c.bf16 %v479_v59, %v475_v58 }
  0x99   :  { %289 = vmatmul.mubr.bf16.gmra.mrb[4].mxu0 %v125_v12  ;;  %5452 = vst [vmem:[#allocation40_spill] sm:$0xff] %v4034_v1  ;;  %5453 = vst [vmem:[#allocation41_spill] sm:$0xff] %v4036_v2  ;;  %v476_v6 = vld [vmem:[#allocation8 + $0x1a0] sm:$0xff]  ;;  %v478_v10 = vld [vmem:[#allocation8 + $0x1b0] sm:$0xff]  ;;  %v127_v13 = vpack.c.bf16 %v123_v62, %v122_v61 }
  0x9a   :  { %362 = vmatmul.mubr.bf16.gmra.mrb[4].mxu1 %v125_v12  ;;  %743 = vmatpush1.bf16.msra.mxu0 %v3992_v15  ;;  %5454 = vst [vmem:[#allocation42_spill] sm:$0xff] %v4040_v9  ;;  %v481_v11 = vld [vmem:[#allocation8 + $0x1c8] sm:$0xff]  ;;  %v483_v14 = vld [vmem:[#allocation8 + $0x1d8] sm:$0xff]  ;;  %v4044_v19 = vpack.c.bf16 %v476_v6, %v472_v5  ;;  %v4048_v20 = vpack.c.bf16 %v478_v10, %v474_v7  ;;  %v480_v23 = vld [vmem:[#allocation8 + $0x1c0] sm:$0xff] }
  0x9b   :  { %784 = vmatpush1.bf16.msra.mxu1 %v3996_v16  ;;  %744 = vmatprep.subr.bf16.mxu0 %v3998_v17  ;;  %v485_v12 = vld [vmem:[#allocation8 + $0x1e8] sm:$0xff]  ;;  %v487_v18 = vld [vmem:[#allocation8 + $0x1f8] sm:$0xff]  ;;  %v484_v24 = vld [vmem:[#allocation8 + $0x1e0] sm:$0xff] }
  0x9c   :  { %785 = vmatprep.subr.bf16.mxu1 %v4001_v21  ;;  %298 = vmatprep.mubr.bf16.mxu0 %v5237_v0  ;;  %5455 = vst [vmem:[#allocation43_spill] sm:$0xff] %v4044_v19  ;;  %5456 = vst [vmem:[#allocation44_spill] sm:$0xff] %v4048_v20  ;;  %v4050_v22 = vpack.c.bf16 %v485_v12, %v481_v11  ;;  %v4053_v25 = vpack.c.bf16 %v487_v18, %v483_v14  ;;  %v482_v26 = vld [vmem:[#allocation8 + $0x1d0] sm:$0xff]  ;;  %v617_v33 = vld [vmem:[#allocation11 + $0x8] sm:$0xff] }
  0x9d   :  { %371 = vmatprep.mubr.bf16.mxu1 %v5237_v0  ;;  %v486_v28 = vld [vmem:[#allocation8 + $0x1f0] sm:$0xff]  ;;  %v4056_v29 = vpack.c.bf16 %v484_v24, %v480_v23  ;;  %v621_v34 = vld [vmem:[#allocation11 + $0x28] sm:$0xff]  ;;  %v619_v37 = vld [vmem:[#allocation11 + $0x18] sm:$0xff] }
  0x9e   :  { %745 = vmatpush1.bf16.msra.mxu0 %v4004_v27  ;;  %5457 = vst [vmem:[#allocation45_spill] sm:$0xff] %v4050_v22  ;;  %5458 = vst [vmem:[#allocation46_spill] sm:$0xff] %v4053_v25  ;;  %v4060_v32 = vpack.c.bf16 %v486_v28, %v482_v26  ;;  %v4071_v36 = vpack.c.bf16 %v621_v34, %v617_v33  ;;  %v623_v38 = vld [vmem:[#allocation11 + $0x38] sm:$0xff]  ;;  %v620_v42 = vld [vmem:[#allocation11 + $0x20] sm:$0xff] }
  0x9f   :  { %786 = vmatpush1.bf16.msra.mxu1 %v4008_v30  ;;  %746 = vmatprep.subr.bf16.mxu0 %v4010_v31  ;;  %5459 = vst [vmem:[#allocation47_spill] sm:$0xff] %v4056_v29  ;;  %v4073_v41 = vpack.c.bf16 %v623_v38, %v619_v37  ;;  %v618_v47 = vld [vmem:[#allocation11 + $0x10] sm:$0xff]  ;;  %v625_v55 = vld [vmem:[#allocation11 + $0x48] sm:$0xff]  ;;  %v627_v59 = vld [vmem:[#allocation11 + $0x58] sm:$0xff] }
  0xa0   :  { %787 = vmatprep.subr.bf16.mxu1 %v4014_v35  ;;  %5460 = vst [vmem:[#allocation48_spill] sm:$0xff] %v4060_v32  ;;  %5461 = vst [vmem:[#allocation49_spill] sm:$0xff] %v4071_v36  ;;  %v622_v48 = vld [vmem:[#allocation11 + $0x30] sm:$0xff]  ;;  %v629_v56 = vld [vmem:[#allocation11 + $0x68] sm:$0xff] }
  0xa1   :  { %299 = vmatmul.mubr.bf16.gmra.mrb[8].mxu0 %v126_v39  ;;  %5462 = vst [vmem:[#allocation50_spill] sm:$0xff] %v4073_v41  ;;  %v4078_v54 = vpack.c.bf16 %v622_v48, %v618_v47  ;;  %v4083_v58 = vpack.c.bf16 %v629_v56, %v625_v55  ;;  %v631_v61 = vld [vmem:[#allocation11 + $0x78] sm:$0xff]  ;;  %v624_v62 = vld [vmem:[#allocation11 + $0x40] sm:$0xff]  ;;  %v626_v7 = vld [vmem:[#allocation11 + $0x50] sm:$0xff] }
  0xa2   :  { %372 = vmatmul.mubr.bf16.gmra.mrb[8].mxu1 %v126_v39  ;;  %747 = vmatpush1.bf16.msra.mxu0 %v4018_v43  ;;  %v616_v39 = vld [vmem:[#allocation11] sm:$0xff]  ;;  %v4085_v5 = vpack.c.bf16 %v631_v61, %v627_v59  ;;  %v630_v10 = vld [vmem:[#allocation11 + $0x70] sm:$0xff]  ;;  %v637_v14 = vld [vmem:[#allocation11 + $0xa8] sm:$0xff] }
  0xa3   :  { %788 = vmatpush1.bf16.msra.mxu1 %v4022_v45  ;;  %748 = vmatprep.subr.bf16.mxu0 %v4024_v46  ;;  %v4076_v49 = vpack.c.bf16 %v620_v42, %v616_v39  ;;  %5464 = vst [vmem:[#allocation52_spill] sm:$0xff] %v4078_v54  ;;  %5465 = vst [vmem:[#allocation53_spill] sm:$0xff] %v4083_v58  ;;  %v628_v6 = vld [vmem:[#allocation11 + $0x60] sm:$0xff]  ;;  %v4090_v12 = vpack.c.bf16 %v630_v10, %v626_v7  ;;  %v635_v23 = vld [vmem:[#allocation11 + $0x98] sm:$0xff] }
  0xa4   :  { %789 = vmatprep.subr.bf16.mxu1 %v4027_v50  ;;  %308 = vmatprep.mubr.bf16.mxu0 %v5237_v0  ;;  %5466 = vst [vmem:[#allocation54_spill] sm:$0xff] %v4085_v5  ;;  %v4088_v11 = vpack.c.bf16 %v628_v6, %v624_v62  ;;  %v639_v24 = vld [vmem:[#allocation11 + $0xb8] sm:$0xff]  ;;  %v632_v26 = vld [vmem:[#allocation11 + $0x80] sm:$0xff]  ;;  %v634_v34 = vld [vmem:[#allocation11 + $0x90] sm:$0xff] }
  0xa5   :  { %381 = vmatprep.mubr.bf16.mxu1 %v5237_v0  ;;  %5463 = vst [vmem:[#allocation51_spill] sm:$0xff] %v4076_v49  ;;  %5468 = vst [vmem:[#allocation56_spill] sm:$0xff] %v4090_v12  ;;  %v4097_v28 = vpack.c.bf16 %v639_v24, %v635_v23  ;;  %v636_v33 = vld [vmem:[#allocation11 + $0xa0] sm:$0xff]  ;;  %v638_v37 = vld [vmem:[#allocation11 + $0xb0] sm:$0xff] }
  0xa6   :  { %749 = vmatpush1.bf16.msra.mxu0 %v4030_v60  ;;  %5467 = vst [vmem:[#allocation55_spill] sm:$0xff] %v4088_v11  ;;  %v4100_v38 = vpack.c.bf16 %v636_v33, %v632_v26  ;;  %v4102_v39 = vpack.c.bf16 %v638_v37, %v634_v34  ;;  %v641_v42 = vld [vmem:[#allocation11 + $0xc8] sm:$0xff]  ;;  %v643_v55 = vld [vmem:[#allocation11 + $0xd8] sm:$0xff]  ;;  %v640_v59 = vld [vmem:[#allocation11 + $0xc0] sm:$0xff] }
  0xa7   :  { %790 = vmatpush1.bf16.msra.mxu1 %v4034_v1  ;;  %750 = vmatprep.subr.bf16.mxu0 %v4036_v2  ;;  %5470 = vst [vmem:[#allocation58_spill] sm:$0xff] %v4097_v28  ;;  %v645_v47 = vld [vmem:[#allocation11 + $0xe8] sm:$0xff]  ;;  %v647_v56 = vld [vmem:[#allocation11 + $0xf8] sm:$0xff]  ;;  %v644_v62 = vld [vmem:[#allocation11 + $0xe0] sm:$0xff] }
  0xa8   :  { %791 = vmatprep.subr.bf16.mxu1 %v4040_v9  ;;  %5471 = vst [vmem:[#allocation59_spill] sm:$0xff] %v4100_v38  ;;  %5472 = vst [vmem:[#allocation60_spill] sm:$0xff] %v4102_v39  ;;  %v4107_v48 = vpack.c.bf16 %v645_v47, %v641_v42  ;;  %v4109_v61 = vpack.c.bf16 %v647_v56, %v643_v55  ;;  %v642_v6 = vld [vmem:[#allocation11 + $0xd0] sm:$0xff]  ;;  %v4112_v10 = vpack.c.bf16 %v644_v62, %v640_v59  ;;  %v653_v23 = vld [vmem:[#allocation11 + $0x128] sm:$0xff] }
  0xa9   :  { %309 = vmatmul.mubr.bf16.gmra.mrb[12].mxu0 %v127_v13  ;;  %v646_v7 = vld [vmem:[#allocation11 + $0xf0] sm:$0xff]  ;;  %v651_v26 = vld [vmem:[#allocation11 + $0x118] sm:$0xff]  ;;  %v648_v34 = vld [vmem:[#allocation11 + $0x100] sm:$0xff] }
  0xaa   :  { %382 = vmatmul.mubr.bf16.gmra.mrb[12].mxu1 %v127_v13  ;;  %751 = vmatpush1.bf16.msra.mxu0 %v4044_v19  ;;  %v633_v13 = vld [vmem:[#allocation11 + $0x88] sm:$0xff]  ;;  %5473 = vst [vmem:[#allocation61_spill] sm:$0xff] %v4107_v48  ;;  %5474 = vst [vmem:[#allocation62_spill] sm:$0xff] %v4109_v61  ;;  %v655_v33 = vld [vmem:[#allocation11 + $0x138] sm:$0xff] }
  0xab   :  { %792 = vmatpush1.bf16.msra.mxu1 %v4048_v20  ;;  %752 = vmatprep.subr.bf16.mxu0 %v4050_v22  ;;  %v4095_v18 = vpack.c.bf16 %v637_v14, %v633_v13  ;;  %5475 = vst [vmem:[#allocation63_spill] sm:$0xff] %v4112_v10  ;;  %v4114_v13 = vpack.c.bf16 %v646_v7, %v642_v6  ;;  %v649_v14 = vld [vmem:[#allocation11 + $0x108] sm:$0xff]  ;;  %v652_v42 = vld [vmem:[#allocation11 + $0x120] sm:$0xff]  ;;  %v650_v47 = vld [vmem:[#allocation11 + $0x110] sm:$0xff] }
  0xac   :  { %793 = vmatprep.subr.bf16.mxu1 %v4053_v25  ;;  %770 = vmatprep.mubr.bf16.mxu0 %v5237_v0  ;;  %v4119_v24 = vpack.c.bf16 %v653_v23, %v649_v14  ;;  %v4121_v37 = vpack.c.bf16 %v655_v33, %v651_v26  ;;  %v654_v55 = vld [vmem:[#allocation11 + $0x130] sm:$0xff]  ;;  %v4124_v56 = vpack.c.bf16 %v652_v42, %v648_v34  ;;  %v657_v62 = vld [vmem:[#allocation11 + $0x148] sm:$0xff]  ;;  %v659_v14 = vld [vmem:[#allocation11 + $0x158] sm:$0xff] }
  0xad   :  { %811 = vmatprep.mubr.bf16.mxu1 %v5237_v0  ;;  %5469 = vst [vmem:[#allocation57_spill] sm:$0xff] %v4095_v18  ;;  %5476 = vst [vmem:[#allocation64_spill] sm:$0xff] %v4114_v13  ;;  %v4126_v59 = vpack.c.bf16 %v654_v55, %v650_v47  ;;  %v661_v6 = vld [vmem:[#allocation11 + $0x168] sm:$0xff]  ;;  %v663_v23 = vld [vmem:[#allocation11 + $0x178] sm:$0xff] }
  0xae   :  { %753 = vmatpush1.bf16.msra.mxu0 %v4056_v29  ;;  %5477 = vst [vmem:[#allocation65_spill] sm:$0xff] %v4119_v24  ;;  %5478 = vst [vmem:[#allocation66_spill] sm:$0xff] %v4121_v37  ;;  %v4131_v7 = vpack.c.bf16 %v661_v6, %v657_v62  ;;  %v656_v26 = vld [vmem:[#allocation11 + $0x140] sm:$0xff]  ;;  %v4133_v33 = vpack.c.bf16 %v663_v23, %v659_v14  ;;  %v658_v34 = vld [vmem:[#allocation11 + $0x150] sm:$0xff] }
  0xaf   :  { %794 = vmatpush1.bf16.msra.mxu1 %v4060_v32  ;;  %849 = vmatprep.subr.bf16.mxu0 %v4071_v36  ;;  %5479 = vst [vmem:[#allocation67_spill] sm:$0xff] %v4124_v56  ;;  %5480 = vst [vmem:[#allocation68_spill] sm:$0xff] %v4126_v59  ;;  %v662_v42 = vld [vmem:[#allocation11 + $0x170] sm:$0xff]  ;;  %v667_v6 = vld [vmem:[#allocation11 + $0x198] sm:$0xff] }
  0xb0   :  { %890 = vmatprep.subr.bf16.mxu1 %v4073_v41  ;;  %5481 = vst [vmem:[#allocation69_spill] sm:$0xff] %v4131_v7  ;;  %5482 = vst [vmem:[#allocation70_spill] sm:$0xff] %v4133_v33  ;;  %v4138_v55 = vpack.c.bf16 %v662_v42, %v658_v34  ;;  %v671_v14 = vld [vmem:[#allocation11 + $0x1b8] sm:$0xff]  ;;  %v664_v23 = vld [vmem:[#allocation11 + $0x180] sm:$0xff] }
  0xb1   :  { %771 = vmatmul.mubr.bf16.vlgmr.msra.gmra.mrb[16].mxu0 %v5237_v0 }
  0xb2   :  { %812 = vmatmul.mubr.bf16.vlgmr.msra.gmra.mrb[16].mxu1 %v5237_v0  ;;  %881 = vmatprep.mubr.bf16.mxu0 %v5237_v0  ;;  %5484 = vst [vmem:[#allocation72_spill] sm:$0xff] %v4138_v55 }
  0xb3   :  { %922 = vmatprep.mubr.bf16.mxu1 %v5237_v0  ;;  %850 = vmatpush1.bf16.msra.mxu0 %v4076_v49  ;;  %v660_v0 = vld [vmem:[#allocation11 + $0x160] sm:$0xff] }
  0xb4   :  { %891 = vmatpush1.bf16.msra.mxu1 %v4078_v54  ;;  %851 = vmatprep.subr.bf16.mxu0 %v4083_v58  ;;  %v4136_v47 = vpack.c.bf16 %v660_v0, %v656_v26  ;;  %v666_v0 = vld [vmem:[#allocation11 + $0x190] sm:$0xff] }
  0xb5   :  { %892 = vmatprep.subr.bf16.mxu1 %v4085_v5  ;;  %v670_v26 = vld [vmem:[#allocation11 + $0x1b0] sm:$0xff] }
  0xb6   :  { %5483 = vst [vmem:[#allocation71_spill] sm:$0xff] %v4136_v47  ;;  %v4150_v42 = vpack.c.bf16 %v670_v26, %v666_v0 }
  0xb7   :  { %852 = vmatpush1.bf16.msra.mxu0 %v4088_v11 }
  0xb8   :  { %893 = vmatpush1.bf16.msra.mxu1 %v4090_v12  ;;  %853 = vmatprep.subr.bf16.mxu0 %v4095_v18  ;;  %5488 = vst [vmem:[#allocation76_spill] sm:$0xff] %v4150_v42 }
  0xb9   :  { %894 = vmatprep.subr.bf16.mxu1 %v4097_v28 }
  0xbb   :  { %854 = vmatpush1.bf16.msra.mxu0 %v4100_v38 }
  0xbc   :  { %895 = vmatpush1.bf16.msra.mxu1 %v4102_v39  ;;  %855 = vmatprep.subr.bf16.mxu0 %v4107_v48 }
  0xbd   :  { %896 = vmatprep.subr.bf16.mxu1 %v4109_v61 }
  0xbf   :  { %856 = vmatpush1.bf16.msra.mxu0 %v4112_v10  ;;  %v575_v10 = vld [vmem:[#allocation9 + $0x1b8] sm:$0xff] }
  0xc0   :  { %897 = vmatpush1.bf16.msra.mxu1 %v4114_v13  ;;  %857 = vmatprep.subr.bf16.mxu0 %v4119_v24  ;;  %v573_v13 = vld [vmem:[#allocation9 + $0x1a8] sm:$0xff] }
  0xc1   :  { %898 = vmatprep.subr.bf16.mxu1 %v4121_v37  ;;  %v4145_v37 = vpack.c.bf16 %v671_v14, %v667_v6  ;;  %v679_v6 = vld [vmem:[#allocation11 + $0x1f8] sm:$0xff]  ;;  %v672_v14 = vld [vmem:[#allocation11 + $0x1c0] sm:$0xff] }
  0xc3   :  { %858 = vmatpush1.bf16.msra.mxu0 %v4124_v56  ;;  %v665_v56 = vld [vmem:[#allocation11 + $0x188] sm:$0xff]  ;;  %5486 = vst [vmem:[#allocation74_spill] sm:$0xff] %v4145_v37 }
  0xc4   :  { %899 = vmatpush1.bf16.msra.mxu1 %v4126_v59  ;;  %859 = vmatprep.subr.bf16.mxu0 %v4131_v7  ;;  %v669_v59 = vld [vmem:[#allocation11 + $0x1a8] sm:$0xff]  ;;  %v668_v7 = vld [vmem:[#allocation11 + $0x1a0] sm:$0xff] }
  0xc5   :  { %900 = vmatprep.subr.bf16.mxu1 %v4133_v33  ;;  %v4143_v62 = vpack.c.bf16 %v669_v59, %v665_v56  ;;  %v4148_v34 = vpack.c.bf16 %v668_v7, %v664_v23  ;;  %v675_v59 = vld [vmem:[#allocation11 + $0x1d8] sm:$0xff]  ;;  %v674_v7 = vld [vmem:[#allocation11 + $0x1d0] sm:$0xff] }
  0xc6   :  { %v4157_v33 = vpack.c.bf16 %v679_v6, %v675_v59  ;;  %v678_v23 = vld [vmem:[#allocation11 + $0x1f0] sm:$0xff]  ;;  %v527_v6 = vld [vmem:[#allocation9 + $0x38] sm:$0xff] }
  0xc7   :  { %860 = vmatpush1.bf16.msra.mxu0 %v4136_v47  ;;  %5485 = vst [vmem:[#allocation73_spill] sm:$0xff] %v4143_v62  ;;  %5487 = vst [vmem:[#allocation75_spill] sm:$0xff] %v4148_v34  ;;  %v673_v47 = vld [vmem:[#allocation11 + $0x1c8] sm:$0xff]  ;;  %v4162_v26 = vpack.c.bf16 %v678_v23, %v674_v7  ;;  %v526_v7 = vld [vmem:[#allocation9 + $0x30] sm:$0xff]  ;;  %v5496_v23 = vmov 0  }
  0xc8   :  { %901 = vmatpush1.bf16.msra.mxu1 %v4138_v55  ;;  %861 = vmatprep.subr.bf16.mxu0 %v4143_v62  ;;  %v677_v55 = vld [vmem:[#allocation11 + $0x1e8] sm:$0xff]  ;;  %5490 = vst [vmem:[#allocation78_spill] sm:$0xff] %v4157_v33  ;;  %v676_v62 = vld [vmem:[#allocation11 + $0x1e0] sm:$0xff] }
  0xc9   :  { %902 = vmatprep.subr.bf16.mxu1 %v4145_v37  ;;  %v4155_v56 = vpack.c.bf16 %v677_v55, %v673_v47  ;;  %v4160_v0 = vpack.c.bf16 %v676_v62, %v672_v14  ;;  %5492 = vst [vmem:[#allocation80_spill] sm:$0xff] %v4162_v26  ;;  %v521_v47 = vld [vmem:[#allocation9 + $0x8] sm:$0xff]  ;;  %v524_v37 = vld [vmem:[#allocation9 + $0x20] sm:$0xff]  ;;  %v522_v14 = vld [vmem:[#allocation9 + $0x10] sm:$0xff] }
  0xca   :  { %v525_v55 = vld [vmem:[#allocation9 + $0x28] sm:$0xff] }
  0xcb   :  { %862 = vmatpush1.bf16.msra.mxu0 %v4148_v34  ;;  %5489 = vst [vmem:[#allocation77_spill] sm:$0xff] %v4155_v56  ;;  %5491 = vst [vmem:[#allocation79_spill] sm:$0xff] %v4160_v0  ;;  %v4167_v59 = vpack.c.bf16 %v525_v55, %v521_v47  ;;  %v520_v34 = vld [vmem:[#allocation9] sm:$0xff]  ;;  %v529_v47 = vld [vmem:[#allocation9 + $0x48] sm:$0xff] }
  0xcc   :  { %903 = vmatpush1.bf16.msra.mxu1 %v4150_v42  ;;  %863 = vmatprep.subr.bf16.mxu0 %v4155_v56  ;;  %v523_v42 = vld [vmem:[#allocation9 + $0x18] sm:$0xff]  ;;  %v4171_v62 = vpack.c.bf16 %v524_v37, %v520_v34  ;;  %v533_v55 = vld [vmem:[#allocation9 + $0x68] sm:$0xff] }
  0xcd   :  { %904 = vmatprep.subr.bf16.mxu1 %v4157_v33  ;;  %5493 = vst [vmem:[#allocation81_spill] sm:$0xff] %v4167_v59  ;;  %v4169_v24 = vpack.c.bf16 %v527_v6, %v523_v42  ;;  %v4181_v37 = vpack.c.bf16 %v533_v55, %v529_v47  ;;  %v535_v34 = vld [vmem:[#allocation9 + $0x78] sm:$0xff]  ;;  %v528_v42 = vld [vmem:[#allocation9 + $0x40] sm:$0xff]  ;;  %v537_v47 = vld [vmem:[#allocation9 + $0x88] sm:$0xff] }
  0xce   :  { %5495 = vst [vmem:[#allocation83_spill] sm:$0xff] %v4171_v62  ;;  %v532_v6 = vld [vmem:[#allocation9 + $0x60] sm:$0xff]  ;;  %v541_v55 = vld [vmem:[#allocation9 + $0xa8] sm:$0xff] }
  0xcf   :  { %864 = vmatpush1.bf16.msra.mxu0 %v4160_v0  ;;  %5494 = vst [vmem:[#allocation82_spill] sm:$0xff] %v4169_v24  ;;  %v4175_v0 = vpack.c.bf16 %v526_v7, %v522_v14  ;;  %5498 = vst [vmem:[#allocation85_spill] sm:$0xff] %v4181_v37  ;;  %v4185_v14 = vpack.c.bf16 %v532_v6, %v528_v42  ;;  %v530_v7 = vld [vmem:[#allocation9 + $0x50] sm:$0xff]  ;;  %v536_v42 = vld [vmem:[#allocation9 + $0x80] sm:$0xff] }
  0xd0   :  { %905 = vmatpush1.bf16.msra.mxu1 %v4162_v26  ;;  %931 = vmatprep.subr.bf16.mxu0 %v4167_v59  ;;  %v531_v26 = vld [vmem:[#allocation9 + $0x58] sm:$0xff]  ;;  %v540_v6 = vld [vmem:[#allocation9 + $0xa0] sm:$0xff] }
  0xd1   :  { %5497 = vst [vmem:[#allocation84_spill] sm:$0xff] %v4175_v0  ;;  %972 = vmatprep.subr.bf16.mxu1 %v4169_v24  ;;  %v4183_v33 = vpack.c.bf16 %v535_v34, %v531_v26  ;;  %5500 = vst [vmem:[#allocation87_spill] sm:$0xff] %v4185_v14  ;;  %v534_v24 = vld [vmem:[#allocation9 + $0x70] sm:$0xff]  ;;  %v4195_v26 = vpack.c.bf16 %v541_v55, %v537_v47  ;;  %v543_v34 = vld [vmem:[#allocation9 + $0xb8] sm:$0xff]  ;;  %v4199_v56 = vpack.c.bf16 %v540_v6, %v536_v42 }
  0xd2   :  { %882 = vmatmul.mubr.bf16.vlgmr.msra.gmra.mrb[20].mxu0 %v5496_v23  ;;  %v544_v55 = vld [vmem:[#allocation9 + $0xc0] sm:$0xff] }
  0xd3   :  { %923 = vmatmul.mubr.bf16.vlgmr.msra.gmra.mrb[20].mxu1 %v5496_v23  ;;  %932 = vmatpush1.bf16.msra.mxu0 %v4171_v62  ;;  %5499 = vst [vmem:[#allocation86_spill] sm:$0xff] %v4183_v33  ;;  %v4190_v62 = vpack.c.bf16 %v534_v24, %v530_v7  ;;  %5502 = vst [vmem:[#allocation89_spill] sm:$0xff] %v4195_v26  ;;  %v538_v24 = vld [vmem:[#allocation9 + $0x90] sm:$0xff] }
  0xd4   :  { %973 = vmatpush1.bf16.msra.mxu1 %v4175_v0  ;;  %963 = vmatprep.mubr.bf16.mxu0 %v5496_v23  ;;  %v539_v0 = vld [vmem:[#allocation9 + $0x98] sm:$0xff]  ;;  %5504 = vst [vmem:[#allocation91_spill] sm:$0xff] %v4199_v56  ;;  %v542_v7 = vld [vmem:[#allocation9 + $0xb0] sm:$0xff] }
  0xd5   :  { %1004 = vmatprep.mubr.bf16.mxu1 %v5496_v23  ;;  %933 = vmatprep.subr.bf16.mxu0 %v4181_v37  ;;  %5501 = vst [vmem:[#allocation88_spill] sm:$0xff] %v4190_v62  ;;  %v4197_v59 = vpack.c.bf16 %v543_v34, %v539_v0  ;;  %v549_v37 = vld [vmem:[#allocation9 + $0xe8] sm:$0xff]  ;;  %v551_v0 = vld [vmem:[#allocation9 + $0xf8] sm:$0xff]  ;;  %v548_v34 = vld [vmem:[#allocation9 + $0xe0] sm:$0xff] }
  0xd6   :  { %974 = vmatprep.subr.bf16.mxu1 %v4183_v33  ;;  %v4202_v33 = vpack.c.bf16 %v542_v7, %v538_v24  ;;  %v4211_v6 = vpack.c.bf16 %v548_v34, %v544_v55  ;;  %v546_v24 = vld [vmem:[#allocation9 + $0xd0] sm:$0xff] }
  0xd7   :  { %934 = vmatpush1.bf16.msra.mxu0 %v4185_v14  ;;  %5503 = vst [vmem:[#allocation90_spill] sm:$0xff] %v4197_v59  ;;  %v545_v14 = vld [vmem:[#allocation9 + $0xc8] sm:$0xff]  ;;  %v550_v7 = vld [vmem:[#allocation9 + $0xf0] sm:$0xff] }
  0xd8   :  { %975 = vmatpush1.bf16.msra.mxu1 %v4190_v62  ;;  %935 = vmatprep.subr.bf16.mxu0 %v4195_v26  ;;  %5505 = vst [vmem:[#allocation92_spill] sm:$0xff] %v4202_v33  ;;  %v547_v62 = vld [vmem:[#allocation9 + $0xd8] sm:$0xff]  ;;  %v4207_v47 = vpack.c.bf16 %v549_v37, %v545_v14  ;;  %5508 = vst [vmem:[#allocation95_spill] sm:$0xff] %v4211_v6  ;;  %v557_v26 = vld [vmem:[#allocation9 + $0x128] sm:$0xff] }
  0xd9   :  { %976 = vmatprep.subr.bf16.mxu1 %v4197_v59  ;;  %v4209_v42 = vpack.c.bf16 %v551_v0, %v547_v62  ;;  %v4214_v59 = vpack.c.bf16 %v550_v7, %v546_v24  ;;  %v559_v62 = vld [vmem:[#allocation9 + $0x138] sm:$0xff]  ;;  %v552_v14 = vld [vmem:[#allocation9 + $0x100] sm:$0xff]  ;;  %v554_v24 = vld [vmem:[#allocation9 + $0x110] sm:$0xff] }
  0xda   :  { %5506 = vst [vmem:[#allocation93_spill] sm:$0xff] %v4207_v47  ;;  %v556_v0 = vld [vmem:[#allocation9 + $0x120] sm:$0xff]  ;;  %v558_v7 = vld [vmem:[#allocation9 + $0x130] sm:$0xff] }
  0xdb   :  { %936 = vmatpush1.bf16.msra.mxu0 %v4199_v56  ;;  %5507 = vst [vmem:[#allocation94_spill] sm:$0xff] %v4209_v42  ;;  %5509 = vst [vmem:[#allocation96_spill] sm:$0xff] %v4214_v59  ;;  %v553_v56 = vld [vmem:[#allocation9 + $0x108] sm:$0xff]  ;;  %v4223_v34 = vpack.c.bf16 %v556_v0, %v552_v14 }
  0xdc   :  { %977 = vmatpush1.bf16.msra.mxu1 %v4202_v33  ;;  %937 = vmatprep.subr.bf16.mxu0 %v4207_v47  ;;  %v555_v33 = vld [vmem:[#allocation9 + $0x118] sm:$0xff]  ;;  %v4219_v37 = vpack.c.bf16 %v557_v26, %v553_v56  ;;  %v565_v47 = vld [vmem:[#allocation9 + $0x168] sm:$0xff]  ;;  %v560_v26 = vld [vmem:[#allocation9 + $0x140] sm:$0xff] }
  0xdd   :  { %978 = vmatprep.subr.bf16.mxu1 %v4209_v42  ;;  %v4221_v55 = vpack.c.bf16 %v559_v62, %v555_v33  ;;  %5512 = vst [vmem:[#allocation99_spill] sm:$0xff] %v4223_v34  ;;  %v4226_v42 = vpack.c.bf16 %v558_v7, %v554_v24  ;;  %v567_v33 = vld [vmem:[#allocation9 + $0x178] sm:$0xff]  ;;  %v564_v62 = vld [vmem:[#allocation9 + $0x160] sm:$0xff]  ;;  %v562_v24 = vld [vmem:[#allocation9 + $0x150] sm:$0xff] }
  0xde   :  { %5510 = vst [vmem:[#allocation97_spill] sm:$0xff] %v4219_v37  ;;  %v4235_v0 = vpack.c.bf16 %v564_v62, %v560_v26  ;;  %v566_v7 = vld [vmem:[#allocation9 + $0x170] sm:$0xff] }
  0xdf   :  { %938 = vmatpush1.bf16.msra.mxu0 %v4211_v6  ;;  %5511 = vst [vmem:[#allocation98_spill] sm:$0xff] %v4221_v55  ;;  %5513 = vst [vmem:[#allocation100_spill] sm:$0xff] %v4226_v42  ;;  %v561_v6 = vld [vmem:[#allocation9 + $0x148] sm:$0xff]  ;;  %v570_v26 = vld [vmem:[#allocation9 + $0x190] sm:$0xff] }
  0xe0   :  { %979 = vmatpush1.bf16.msra.mxu1 %v4214_v59  ;;  %939 = vmatprep.subr.bf16.mxu0 %v4219_v37  ;;  %v563_v59 = vld [vmem:[#allocation9 + $0x158] sm:$0xff]  ;;  %v4231_v56 = vpack.c.bf16 %v565_v47, %v561_v6  ;;  %5516 = vst [vmem:[#allocation103_spill] sm:$0xff] %v4235_v0  ;;  %v569_v37 = vld [vmem:[#allocation9 + $0x188] sm:$0xff] }
  0xe1   :  { %980 = vmatprep.subr.bf16.mxu1 %v4221_v55  ;;  %v4233_v14 = vpack.c.bf16 %v567_v33, %v563_v59  ;;  %v4238_v55 = vpack.c.bf16 %v566_v7, %v562_v24  ;;  %v4241_v47 = vpack.c.bf16 %v573_v13, %v569_v37  ;;  %v568_v59 = vld [vmem:[#allocation9 + $0x180] sm:$0xff]  ;;  %v574_v24 = vld [vmem:[#allocation9 + $0x1b0] sm:$0xff]  ;;  %v577_v7 = vld [vmem:[#allocation9 + $0x1c8] sm:$0xff] }
  0xe2   :  { %5514 = vst [vmem:[#allocation101_spill] sm:$0xff] %v4231_v56  ;;  %v572_v33 = vld [vmem:[#allocation9 + $0x1a0] sm:$0xff]  ;;  %v4251_v13 = vpack.c.bf16 %v574_v24, %v570_v26  ;;  %v579_v37 = vld [vmem:[#allocation9 + $0x1d8] sm:$0xff] }
  0xe3   :  { %940 = vmatpush1.bf16.msra.mxu0 %v4223_v34  ;;  %5515 = vst [vmem:[#allocation102_spill] sm:$0xff] %v4233_v14  ;;  %5517 = vst [vmem:[#allocation104_spill] sm:$0xff] %v4238_v55  ;;  %v571_v34 = vld [vmem:[#allocation9 + $0x198] sm:$0xff]  ;;  %v4247_v62 = vpack.c.bf16 %v572_v33, %v568_v59  ;;  %v582_v59 = vld [vmem:[#allocation9 + $0x1f0] sm:$0xff] }
  0xe4   :  { %981 = vmatpush1.bf16.msra.mxu1 %v4226_v42  ;;  %941 = vmatprep.subr.bf16.mxu0 %v4231_v56  ;;  %5518 = vst [vmem:[#allocation105_spill] sm:$0xff] %v4241_v47  ;;  %v4243_v6 = vpack.c.bf16 %v575_v10, %v571_v34  ;;  %v581_v56 = vld [vmem:[#allocation9 + $0x1e8] sm:$0xff]  ;;  %5521 = vst [vmem:[#allocation108_spill] sm:$0xff] %v4251_v13  ;;  %v583_v34 = vld [vmem:[#allocation9 + $0x1f8] sm:$0xff] }
  0xe5   :  { %982 = vmatprep.subr.bf16.mxu1 %v4233_v14  ;;  %5520 = vst [vmem:[#allocation107_spill] sm:$0xff] %v4247_v62  ;;  %v4253_v10 = vpack.c.bf16 %v581_v56, %v577_v7  ;;  %v576_v14 = vld [vmem:[#allocation9 + $0x1c0] sm:$0xff]  ;;  %v4255_v42 = vpack.c.bf16 %v583_v34, %v579_v37  ;;  %v226_v56 = vlaneseq }
  0xe6   :  { %5519 = vst [vmem:[#allocation106_spill] sm:$0xff] %v4243_v6  ;;  %v224_v24 = vld [vmem:[%s5230_s3] sm:$0xf] }
  0xe7   :  { %942 = vmatpush1.bf16.msra.mxu0 %v4235_v0  ;;  %5522 = vst [vmem:[#allocation109_spill] sm:$0xff] %v4253_v10  ;;  %5523 = vst [vmem:[#allocation110_spill] sm:$0xff] %v4255_v42  ;;  %v580_v0 = vld [vmem:[#allocation9 + $0x1e0] sm:$0xff]  ;;  %v4269_v26 = vshrl.u32 %v226_v56, 7 }
  0xe8   :  { %983 = vmatpush1.bf16.msra.mxu1 %v4238_v55  ;;  %943 = vmatprep.subr.bf16.mxu0 %v4241_v47  ;;  %v578_v55 = vld [vmem:[#allocation9 + $0x1d0] sm:$0xff]  ;;  %v4259_v33 = vpack.c.bf16 %v580_v0, %v576_v14 }
  0xe9   :  { %984 = vmatprep.subr.bf16.mxu1 %v4243_v6  ;;  %v4261_v47 = vpack.c.bf16 %v582_v59, %v578_v55  ;;  %5526 = vst [vmem:[#allocation113_spill] sm:$0xff] %v4269_v26  ;;  %v5341_v14 = vsub.s32 2, %v4269_v26  ;;  %v5344_v55 = vsub.s32 0, %v4269_v26  ;;  %v5347_v0 = vsub.s32 3, %v4269_v26 }
  0xea   :  { %5524 = vst [vmem:[#allocation111_spill] sm:$0xff] %v4259_v33  ;;  %v5352_v7 = vsub.s32 1, %v4269_v26 }
  0xeb   :  { %944 = vmatpush1.bf16.msra.mxu0 %v4247_v62  ;;  %5525 = vst [vmem:[#allocation112_spill] sm:$0xff] %v4261_v47  ;;  %v4282_v34 = vrot.slane %v224_v24, %v5341_v14  ;;  %v229_v59 = vrot.slane %v224_v24, %v5344_v55 }
  0xec   :  { %985 = vmatpush1.bf16.msra.mxu1 %v4251_v13  ;;  %945 = vmatprep.subr.bf16.mxu0 %v4253_v10 }
  0xed   :  { %986 = vmatprep.subr.bf16.mxu1 %v4255_v42 }
  0xef   :  { %946 = vmatpush1.bf16.msra.mxu0 %v4259_v33 }
  0xf0   :  { %987 = vmatpush1.bf16.msra.mxu1 %v4261_v47  ;;  %1046 = vmatprep.subr.bf16.mxu0 %v3963_v40  ;;  %v4288_v40 = vrot.slane %v224_v24, %v5347_v0  ;;  %v233_v47 = vrot.slane %v224_v24, %v5352_v7 }
  0xf1   :  { %1087 = vmatprep.subr.bf16.mxu1 %v3965_v44 }
 0x164   :  { %v4278_v37 = vpop.f32.mrb[0].mxu0 }
 0x165   :  { %v282_v56 = vpop.f32.mrb[1].mxu0  ;;  %v353_v44 = vpop.f32.mrb[0].mxu1 }
 0x166   :  { %v284_v33 = vpop.f32.mrb[2].mxu0  ;;  %v355_v42 = vpop.f32.mrb[1].mxu1 }
 0x167   :  { %v4292_v10 = vadd.f32 %v284_v33, %v229_v59  ;;  %v286_v13 = vpop.f32.mrb[3].mxu0  ;;  %v357_v62 = vpop.f32.mrb[2].mxu1 }
 0x168   :  { %v4294_v14 = vadd.f32 %v286_v13, %v233_v47  ;;  %v4297_v6 = vadd.f32 %v357_v62, %v4282_v34  ;;  %v359_v55 = vpop.f32.mrb[3].mxu1 }
 0x169   :  { %5527 = vst [vmem:[#allocation114_spill] sm:$0xff] %v4292_v10  ;;  %v4300_v61 = vadd.f32 %v359_v55, %v4288_v40 }
 0x16a   :  { %5528 = vst [vmem:[#allocation115_spill] sm:$0xff] %v4294_v14  ;;  %5529 = vst [vmem:[#allocation116_spill] sm:$0xff] %v4297_v6 }
 0x16b   :  { %5530 = vst [vmem:[#allocation117_spill] sm:$0xff] %v4300_v61 }
 0x16c   :  { %v290_v0 = vpop.f32.mrb[4].mxu0 }
 0x16d   :  { %v4302_v48 = vadd.f32 %v290_v0, %v229_v59  ;;  %v292_v26 = vpop.f32.mrb[5].mxu0  ;;  %v363_v24 = vpop.f32.mrb[4].mxu1 }
 0x16e   :  { %v4304_v7 = vadd.f32 %v292_v26, %v233_v47  ;;  %v294_v33 = vpop.f32.mrb[6].mxu0  ;;  %v4307_v10 = vadd.f32 %v363_v24, %v4282_v34  ;;  %v365_v13 = vpop.f32.mrb[5].mxu1 }
 0x16f   :  { %5531 = vst [vmem:[#allocation118_spill] sm:$0xff] %v4302_v48  ;;  %v4309_v14 = vadd.f32 %v294_v33, %v229_v59  ;;  %v296_v62 = vpop.f32.mrb[7].mxu0  ;;  %v4312_v6 = vadd.f32 %v365_v13, %v4288_v40  ;;  %v367_v55 = vpop.f32.mrb[6].mxu1 }
 0x170   :  { %5532 = vst [vmem:[#allocation119_spill] sm:$0xff] %v4304_v7  ;;  %5533 = vst [vmem:[#allocation120_spill] sm:$0xff] %v4307_v10  ;;  %v4314_v61 = vadd.f32 %v296_v62, %v233_v47  ;;  %v4317_v0 = vadd.f32 %v367_v55, %v4282_v34  ;;  %v369_v48 = vpop.f32.mrb[7].mxu1 }
 0x171   :  { %5534 = vst [vmem:[#allocation121_spill] sm:$0xff] %v4309_v14  ;;  %5535 = vst [vmem:[#allocation122_spill] sm:$0xff] %v4312_v6  ;;  %v4320_v26 = vadd.f32 %v369_v48, %v4288_v40 }
 0x172   :  { %5536 = vst [vmem:[#allocation123_spill] sm:$0xff] %v4314_v61  ;;  %5537 = vst [vmem:[#allocation124_spill] sm:$0xff] %v4317_v0 }
 0x173   :  { %5538 = vst [vmem:[#allocation125_spill] sm:$0xff] %v4320_v26 }
 0x174   :  { %v300_v7 = vpop.f32.mrb[8].mxu0 }
 0x175   :  { %v4322_v24 = vadd.f32 %v300_v7, %v229_v59  ;;  %v302_v10 = vpop.f32.mrb[9].mxu0  ;;  %v373_v33 = vpop.f32.mrb[8].mxu1 }
 0x176   :  { %v4324_v14 = vadd.f32 %v302_v10, %v233_v47  ;;  %v304_v39 = vpop.f32.mrb[10].mxu0  ;;  %v4327_v13 = vadd.f32 %v373_v33, %v4282_v34  ;;  %v375_v62 = vpop.f32.mrb[9].mxu1 }
 0x177   :  { %5539 = vst [vmem:[#allocation126_spill] sm:$0xff] %v4322_v24  ;;  %v4329_v61 = vadd.f32 %v304_v39, %v229_v59  ;;  %v306_v55 = vpop.f32.mrb[11].mxu0  ;;  %v4332_v0 = vadd.f32 %v375_v62, %v4288_v40  ;;  %v377_v48 = vpop.f32.mrb[10].mxu1 }
 0x178   :  { %5540 = vst [vmem:[#allocation127_spill] sm:$0xff] %v4324_v14  ;;  %5541 = vst [vmem:[#allocation128_spill] sm:$0xff] %v4327_v13  ;;  %v4334_v26 = vadd.f32 %v306_v55, %v233_v47  ;;  %v4337_v7 = vadd.f32 %v377_v48, %v4282_v34  ;;  %v379_v24 = vpop.f32.mrb[11].mxu1 }
 0x179   :  { %5542 = vst [vmem:[#allocation129_spill] sm:$0xff] %v4329_v61  ;;  %5543 = vst [vmem:[#allocation130_spill] sm:$0xff] %v4332_v0  ;;  %v4340_v10 = vadd.f32 %v379_v24, %v4288_v40 }
 0x17a   :  { %5544 = vst [vmem:[#allocation131_spill] sm:$0xff] %v4334_v26  ;;  %5545 = vst [vmem:[#allocation132_spill] sm:$0xff] %v4337_v7 }
 0x17b   :  { %5546 = vst [vmem:[#allocation133_spill] sm:$0xff] %v4340_v10 }
 0x17c   :  { %v310_v14 = vpop.f32.mrb[12].mxu0 }
 0x17d   :  { %v4342_v33 = vadd.f32 %v310_v14, %v229_v59  ;;  %v312_v13 = vpop.f32.mrb[13].mxu0  ;;  %v383_v39 = vpop.f32.mrb[12].mxu1 }
 0x17e   :  { %v4344_v61 = vadd.f32 %v312_v13, %v233_v47  ;;  %v314_v6 = vpop.f32.mrb[14].mxu0  ;;  %v4347_v62 = vadd.f32 %v383_v39, %v4282_v34  ;;  %v385_v55 = vpop.f32.mrb[13].mxu1  ;;  %v281_v39 = vadd.f32 %v4278_v37, %v229_v59 }
 0x17f   :  { %5547 = vst [vmem:[#allocation134_spill] sm:$0xff] %v4342_v33  ;;  %v4349_v26 = vadd.f32 %v314_v6, %v229_v59  ;;  %v316_v48 = vpop.f32.mrb[15].mxu0  ;;  %v4352_v7 = vadd.f32 %v385_v55, %v4288_v40  ;;  %v387_v24 = vpop.f32.mrb[14].mxu1  ;;  %v354_v6 = vadd.f32 %v353_v44, %v4282_v34 }
 0x180   :  { %5548 = vst [vmem:[#allocation135_spill] sm:$0xff] %v4344_v61  ;;  %5549 = vst [vmem:[#allocation136_spill] sm:$0xff] %v4347_v62  ;;  %v4354_v10 = vadd.f32 %v316_v48, %v233_v47  ;;  %v4357_v14 = vadd.f32 %v387_v24, %v4282_v34  ;;  %v389_v33 = vpop.f32.mrb[15].mxu1  ;;  %v283_v61 = vadd.f32 %v282_v56, %v233_v47 }
 0x181   :  { %5550 = vst [vmem:[#allocation137_spill] sm:$0xff] %v4349_v26  ;;  %5551 = vst [vmem:[#allocation138_spill] sm:$0xff] %v4352_v7  ;;  %v4360_v13 = vadd.f32 %v389_v33, %v4288_v40  ;;  %v356_v62 = vadd.f32 %v355_v42, %v4288_v40 }
 0x182   :  { %5552 = vst [vmem:[#allocation139_spill] sm:$0xff] %v4354_v10  ;;  %5553 = vst [vmem:[#allocation140_spill] sm:$0xff] %v4357_v14 }
 0x183   :  { %5554 = vst [vmem:[#allocation141_spill] sm:$0xff] %v4360_v13 }
 0x184   :  { %v772_v26 = vpop.f32.mrb[16].mxu0 }
 0x185   :  { %v820_v55 = vadd.f32 %v772_v26, %v281_v39  ;;  %v813_v7 = vpop.f32.mrb[16].mxu1  ;;  %v774_v0 = vpop.f32.mrb[17].mxu0  ;;  %v5558_v39 = vld [vmem:[#allocation59_spill] sm:$0xff] }
 0x186   :  { %v822_v48 = vadd.f32 %v813_v7, %v354_v6  ;;  %v821_v10 = vadd.f32 %v774_v0, %v283_v61  ;;  %v815_v38 = vpop.f32.mrb[17].mxu1  ;;  %v776_v24 = vpop.f32.mrb[18].mxu0  ;;  %v5559_v6 = vld [vmem:[#allocation60_spill] sm:$0xff] }
 0x187   :  { %v3295_v14 = vmul.f32 -1.442695, %v820_v55  ;;  %v823_v28 = vadd.f32 %v815_v38, %v356_v62  ;;  %v777_v18 = vpop.f32.mrb[19].mxu0  ;;  %v817_v33 = vpop.f32.mrb[18].mxu1  ;;  %v5555_v62 = vld [vmem:[#allocation56_spill] sm:$0xff]  ;;  %v5560_v55 = vld [vmem:[#allocation61_spill] sm:$0xff] }
 0x188   :  { %v3296_v13 = vmul.f32 -1.442695, %v821_v10  ;;  %v818_v12 = vpop.f32.mrb[19].mxu1  ;;  %v5562_v24 = vld [vmem:[#allocation63_spill] sm:$0xff]  ;;  %v5563_v33 = vld [vmem:[#allocation64_spill] sm:$0xff] }
 0x189   :  { %3387 = vpow2.f32 %v3295_v14  ;;  %v3297_v47 = vmul.f32 -1.442695, %v823_v28  ;;  %v5556_v14 = vld [vmem:[#allocation57_spill] sm:$0xff] }
 0x18a   :  { %3389 = vpow2.f32 %v3296_v13  ;;  %v5557_v13 = vld [vmem:[#allocation58_spill] sm:$0xff] }
 0x18b   :  { %3391 = vpow2.f32 %v3297_v47  ;;  %v5564_v47 = vld [vmem:[#allocation65_spill] sm:$0xff] }
 0x18c   :  { %3393 = vtanh.f32 %v822_v48  ;;  %v5561_v48 = vld [vmem:[#allocation62_spill] sm:$0xff] }
 0x193   :  { %v3388_v44 = vpop.eup %3387 }
 0x194   :  { %v3390_v37 = vpop.eup %3389  ;;  %v827_v34 = vadd.f32 1.0, %v3388_v44  ;;  %v5565_v44 = vld [vmem:[#allocation66_spill] sm:$0xff] }
 0x195   :  { %v833_v40 = vadd.f32 1.0, %v3390_v37  ;;  %v3392_v61 = vpop.eup %3391  ;;  %v5566_v37 = vld [vmem:[#allocation67_spill] sm:$0xff] }
 0x196   :  { %3395 = vrcp.f32 %v827_v34  ;;  %v3394_v42 = vpop.eup %3393  ;;  %v840_v18 = vadd.f32 1.0, %v3392_v61  ;;  %v5567_v34 = vld [vmem:[#allocation68_spill] sm:$0xff]  ;;  %v5569_v61 = vld [vmem:[#allocation70_spill] sm:$0xff] }
 0x197   :  { %3397 = vrcp.f32 %v833_v40  ;;  %v5568_v40 = vld [vmem:[#allocation69_spill] sm:$0xff] }
 0x198   :  { %3399 = vrcp.f32 %v840_v18 }
 0x1a0   :  { %v3396_v59 = vpop.eup %3395 }
 0x1a1   :  { %v3398_v56 = vpop.eup %3397  ;;  %v844_v38 = vmul.f32 %v3396_v59, %v3394_v42 }
 0x1a2   :  { %v843_v0 = vmul.f32 0.0, %v3398_v56  ;;  %v3400_v12 = vpop.eup %3399 }
 0x1a4   :  { %v4365_v26 = vadd.f32 %v844_v38, %v843_v0  ;;  %v5570_v0 = vld [vmem:[#allocation71_spill] sm:$0xff] }
 0x1a5   :  { %v883_v42 = vpop.f32.mrb[20].mxu0 }
 0x1a6   :  { %3401 = vtanh.f32 %v4365_v26  ;;  %v885_v59 = vpop.f32.mrb[21].mxu0  ;;  %v924_v56 = vpop.f32.mrb[20].mxu1 }
 0x1a7   :  { %v887_v38 = vpop.f32.mrb[22].mxu0  ;;  %v926_v18 = vpop.f32.mrb[21].mxu1 }
 0x1a8   :  { %v5578_v38 = vld [vmem:[#allocation79_spill] sm:$0xff] }
 0x1b0   :  { %v3402_v28 = vpop.eup %3401 }
 0x1b1   :  { %v847_v7 = vmul.f32 %v3402_v28, %v3400_v12  ;;  %v5571_v12 = vld [vmem:[#allocation72_spill] sm:$0xff]  ;;  %v888_v28 = vpop.f32.mrb[23].mxu0 }
 0x1b2   :  { %v5581_v28 = vld [vmem:[#allocation82_spill] sm:$0xff] }
 0x1b3   :  { %v848_v10 = vpack.c.bf16 %v847_v7, %v847_v7  ;;  %v928_v7 = vpop.f32.mrb[22].mxu1 }
 0x1b4   :  { %v5582_v7 = vld [vmem:[#allocation113_spill] sm:$0xff] }
 0x1b5   :  { %964 = vmatmul.mubr.bf16.vlgmr.msra.gmra.mrb[24].mxu0 %v848_v10  ;;  %1005 = vmatmul.mubr.bf16.vlgmr.msra.gmra.mrb[24].mxu1 %v848_v10 }
 0x1b6   :  { %1047 = vmatpush1.bf16.msra.mxu0 %v3967_v51  ;;  %1088 = vmatpush1.bf16.msra.mxu1 %v3970_v52 }
 0x1b7   :  { %1048 = vmatprep.subr.bf16.mxu0 %v3972_v53  ;;  %1089 = vmatprep.subr.bf16.mxu1 %v3975_v57 }
 0x1b8   :  { %1078 = vmatprep.mubr.bf16.mxu0 %v5496_v23  ;;  %1119 = vmatprep.mubr.bf16.mxu1 %v5496_v23 }
 0x1ba   :  { %1049 = vmatpush1.bf16.msra.mxu0 %v3978_v63  ;;  %1090 = vmatpush1.bf16.msra.mxu1 %v3982_v3 }
 0x1bb   :  { %1050 = vmatprep.subr.bf16.mxu0 %v3984_v4  ;;  %1091 = vmatprep.subr.bf16.mxu1 %v3988_v8 }
 0x1be   :  { %1051 = vmatpush1.bf16.msra.mxu0 %v3992_v15  ;;  %1092 = vmatpush1.bf16.msra.mxu1 %v3996_v16 }
 0x1bf   :  { %1052 = vmatprep.subr.bf16.mxu0 %v3998_v17  ;;  %1093 = vmatprep.subr.bf16.mxu1 %v4001_v21 }
 0x1c2   :  { %1053 = vmatpush1.bf16.msra.mxu0 %v4004_v27  ;;  %1094 = vmatpush1.bf16.msra.mxu1 %v4008_v30 }
 0x1c3   :  { %1054 = vmatprep.subr.bf16.mxu0 %v4010_v31  ;;  %1095 = vmatprep.subr.bf16.mxu1 %v4014_v35 }
 0x1c6   :  { %1055 = vmatpush1.bf16.msra.mxu0 %v4018_v43  ;;  %1096 = vmatpush1.bf16.msra.mxu1 %v4022_v45 }
 0x1c7   :  { %1056 = vmatprep.subr.bf16.mxu0 %v4024_v46  ;;  %1097 = vmatprep.subr.bf16.mxu1 %v4027_v50 }
 0x1ca   :  { %1057 = vmatpush1.bf16.msra.mxu0 %v4030_v60  ;;  %1098 = vmatpush1.bf16.msra.mxu1 %v4034_v1 }
 0x1cb   :  { %1058 = vmatprep.subr.bf16.mxu0 %v4036_v2  ;;  %1099 = vmatprep.subr.bf16.mxu1 %v4040_v9 }
 0x1ce   :  { %1059 = vmatpush1.bf16.msra.mxu0 %v4044_v19  ;;  %1100 = vmatpush1.bf16.msra.mxu1 %v4048_v20 }
 0x1cf   :  { %1060 = vmatprep.subr.bf16.mxu0 %v4050_v22  ;;  %1101 = vmatprep.subr.bf16.mxu1 %v4053_v25 }
 0x1d2   :  { %1061 = vmatpush1.bf16.msra.mxu0 %v4056_v29  ;;  %1102 = vmatpush1.bf16.msra.mxu1 %v4060_v32 }
 0x1d3   :  { %1158 = vmatprep.subr.bf16.mxu0 %v4071_v36  ;;  %1199 = vmatprep.subr.bf16.mxu1 %v4073_v41 }
 0x1d5   :  { %1079 = vmatmul.mubr.bf16.vlgmr.msra.gmra.mrb[28].mxu0 %v848_v10  ;;  %1120 = vmatmul.mubr.bf16.vlgmr.msra.gmra.mrb[28].mxu1 %v848_v10  ;;  %v5572_v10 = vld [vmem:[#allocation73_spill] sm:$0xff] }
 0x1d6   :  { %1159 = vmatpush1.bf16.msra.mxu0 %v4076_v49  ;;  %1200 = vmatpush1.bf16.msra.mxu1 %v4078_v54 }
 0x1d7   :  { %1160 = vmatprep.subr.bf16.mxu0 %v4083_v58  ;;  %1201 = vmatprep.subr.bf16.mxu1 %v4085_v5 }
 0x1d8   :  { %1190 = vmatprep.mubr.bf16.mxu0 %v5496_v23  ;;  %1231 = vmatprep.mubr.bf16.mxu1 %v5496_v23 }
 0x1da   :  { %1161 = vmatpush1.bf16.msra.mxu0 %v4088_v11  ;;  %1202 = vmatpush1.bf16.msra.mxu1 %v5555_v62  ;;  %v5585_v11 = vsub.s32 3, %v5582_v7 }
 0x1db   :  { %1162 = vmatprep.subr.bf16.mxu0 %v5556_v14  ;;  %1203 = vmatprep.subr.bf16.mxu1 %v5557_v13 }
 0x1de   :  { %1163 = vmatpush1.bf16.msra.mxu0 %v5558_v39  ;;  %1204 = vmatpush1.bf16.msra.mxu1 %v5559_v6 }
 0x1df   :  { %1164 = vmatprep.subr.bf16.mxu0 %v5560_v55  ;;  %1205 = vmatprep.subr.bf16.mxu1 %v5561_v48 }
 0x1e2   :  { %1165 = vmatpush1.bf16.msra.mxu0 %v5562_v24  ;;  %1206 = vmatpush1.bf16.msra.mxu1 %v5563_v33 }
 0x1e3   :  { %1166 = vmatprep.subr.bf16.mxu0 %v5564_v47  ;;  %1207 = vmatprep.subr.bf16.mxu1 %v5565_v44  ;;  %v5574_v44 = vld [vmem:[#allocation75_spill] sm:$0xff]  ;;  %v5577_v47 = vld [vmem:[#allocation78_spill] sm:$0xff] }
 0x1e6   :  { %1167 = vmatpush1.bf16.msra.mxu0 %v5566_v37  ;;  %1208 = vmatpush1.bf16.msra.mxu1 %v5567_v34  ;;  %v5573_v37 = vld [vmem:[#allocation74_spill] sm:$0xff]  ;;  %v929_v34 = vpop.f32.mrb[23].mxu1 }
 0x1e7   :  { %1168 = vmatprep.subr.bf16.mxu0 %v5568_v40  ;;  %1209 = vmatprep.subr.bf16.mxu1 %v5569_v61  ;;  %v5575_v40 = vld [vmem:[#allocation76_spill] sm:$0xff]  ;;  %v5576_v61 = vld [vmem:[#allocation77_spill] sm:$0xff]  ;;  %v712_v34 = vld [vmem:[%s5233_s6] sm:$0xf] }
 0x1ea   :  { %1169 = vmatpush1.bf16.msra.mxu0 %v5570_v0  ;;  %1210 = vmatpush1.bf16.msra.mxu1 %v5571_v12  ;;  %v5579_v0 = vld [vmem:[#allocation80_spill] sm:$0xff]  ;;  %v5580_v12 = vld [vmem:[#allocation81_spill] sm:$0xff] }
 0x1eb   :  { %1170 = vmatprep.subr.bf16.mxu0 %v5572_v10  ;;  %1211 = vmatprep.subr.bf16.mxu1 %v5573_v37 }
 0x1ee   :  { %1171 = vmatpush1.bf16.msra.mxu0 %v5574_v44  ;;  %1212 = vmatpush1.bf16.msra.mxu1 %v5575_v40  ;;  %v5583_v44 = vsub.s32 0, %v5582_v7 }
 0x1ef   :  { %1172 = vmatprep.subr.bf16.mxu0 %v5576_v61  ;;  %1213 = vmatprep.subr.bf16.mxu1 %v5577_v47  ;;  %v5584_v47 = vsub.s32 1, %v5582_v7 }
 0x1f0   :  { %v4441_v37 = vrot.slane %v712_v34, %v5583_v44 }
 0x1f1   :  { %v4445_v10 = vrot.slane %v712_v34, %v5584_v47  ;;  %v4451_v47 = vrot.slane %v712_v34, %v5585_v11 }
 0x1f2   :  { %1173 = vmatpush1.bf16.msra.mxu0 %v5578_v38  ;;  %1214 = vmatpush1.bf16.msra.mxu1 %v5579_v0 }
 0x1f3   :  { %1240 = vmatprep.subr.bf16.mxu0 %v5580_v12  ;;  %1281 = vmatprep.subr.bf16.mxu1 %v5581_v28 }
 0x288   :  { %v965_v40 = vpop.f32.mrb[24].mxu0  ;;  %v1006_v61 = vpop.f32.mrb[24].mxu1 }
 0x289   :  { %v966_v38 = vadd.f32 %v965_v40, %v883_v42  ;;  %v1007_v0 = vadd.f32 %v1006_v61, %v924_v56  ;;  %v967_v33 = vpop.f32.mrb[25].mxu0  ;;  %v1008_v12 = vpop.f32.mrb[25].mxu1 }
 0x28a   :  { %v968_v24 = vadd.f32 %v967_v33, %v885_v59  ;;  %v1009_v28 = vadd.f32 %v1008_v12, %v926_v18  ;;  %v969_v48 = vpop.f32.mrb[26].mxu0  ;;  %v1010_v55 = vpop.f32.mrb[26].mxu1  ;;  %v5586_v33 = vsub.s32 2, %v5582_v7 }
 0x28b   :  { %v1013_v6 = vadd.f32 %v966_v38, %v4441_v37  ;;  %v970_v39 = vpop.f32.mrb[27].mxu0  ;;  %v1011_v13 = vpop.f32.mrb[27].mxu1 }
 0x28c   :  { %v1014_v44 = vadd.f32 %v968_v24, %v4445_v10  ;;  %v1016_v40 = vadd.f32 %v1009_v28, %v4451_v47  ;;  %v4456_v48 = vrot.slane %v712_v34, %v5586_v33  ;;  %v5587_v28 = vld [vmem:[#allocation114_spill] sm:$0xff] }
 0x28d   :  { %v3298_v14 = vmul.f32 -1.442695, %v1013_v6 }
 0x28e   :  { %v3299_v62 = vmul.f32 -1.442695, %v1014_v44  ;;  %v3300_v55 = vmul.f32 -1.442695, %v1016_v40  ;;  %v1015_v39 = vadd.f32 %v1007_v0, %v4456_v48  ;;  %v5588_v0 = vld [vmem:[#allocation116_spill] sm:$0xff] }
 0x28f   :  { %3403 = vpow2.f32 %v3298_v14 }
 0x290   :  { %3405 = vpow2.f32 %v3299_v62 }
 0x291   :  { %3407 = vpow2.f32 %v3300_v55  ;;  %v5589_v55 = vld [vmem:[#allocation115_spill] sm:$0xff] }
 0x292   :  { %3409 = vtanh.f32 %v1015_v39 }
 0x299   :  { %v3404_v13 = vpop.eup %3403 }
 0x29a   :  { %v3406_v61 = vpop.eup %3405  ;;  %v1020_v24 = vadd.f32 1.0, %v3404_v13  ;;  %v5590_v13 = vld [vmem:[#allocation117_spill] sm:$0xff] }
 0x29b   :  { %v1026_v6 = vadd.f32 1.0, %v3406_v61  ;;  %v3408_v11 = vpop.eup %3407 }
 0x29c   :  { %3411 = vrcp.f32 %v1020_v24  ;;  %v3410_v14 = vpop.eup %3409  ;;  %v1033_v56 = vadd.f32 1.0, %v3408_v11 }
 0x29d   :  { %3413 = vrcp.f32 %v1026_v6 }
 0x29e   :  { %3415 = vrcp.f32 %v1033_v56  ;;  %v5591_v56 = vld [vmem:[#allocation83_spill] sm:$0xff] }
 0x2a6   :  { %v3412_v62 = vpop.eup %3411 }
 0x2a7   :  { %v3414_v42 = vpop.eup %3413  ;;  %v1037_v59 = vmul.f32 %v3412_v62, %v3410_v14 }
 0x2a8   :  { %v1036_v18 = vmul.f32 0.0, %v3414_v42  ;;  %v1080_v12 = vpop.f32.mrb[28].mxu0  ;;  %v1121_v38 = vpop.f32.mrb[28].mxu1 }
 0x2a9   :  { %v1128_v34 = vadd.f32 %v1080_v12, %v5587_v28  ;;  %v1130_v7 = vadd.f32 %v1121_v38, %v5588_v0  ;;  %v1082_v44 = vpop.f32.mrb[29].mxu0  ;;  %v1123_v40 = vpop.f32.mrb[29].mxu1 }
 0x2aa   :  { %v4461_v33 = vadd.f32 %v1037_v59, %v1036_v18  ;;  %v1129_v39 = vadd.f32 %v1082_v44, %v5589_v55  ;;  %v1131_v61 = vadd.f32 %v1123_v40, %v5590_v13  ;;  %v1084_v24 = vpop.f32.mrb[30].mxu0  ;;  %v1125_v6 = vpop.f32.mrb[30].mxu1  ;;  %v5594_v13 = vld [vmem:[#allocation86_spill] sm:$0xff] }
 0x2ab   :  { %v3301_v14 = vmul.f32 -1.442695, %v1128_v34  ;;  %v1085_v11 = vpop.f32.mrb[31].mxu0  ;;  %v1126_v62 = vpop.f32.mrb[31].mxu1  ;;  %v5592_v34 = vld [vmem:[#allocation84_spill] sm:$0xff]  ;;  %v5597_v24 = vld [vmem:[#allocation89_spill] sm:$0xff] }
 0x2ac   :  { %3417 = vtanh.f32 %v4461_v33  ;;  %v3302_v42 = vmul.f32 -1.442695, %v1129_v39  ;;  %v3303_v12 = vmul.f32 -1.442695, %v1131_v61  ;;  %v3416_v38 = vpop.eup %3415  ;;  %v5593_v39 = vld [vmem:[#allocation85_spill] sm:$0xff]  ;;  %v5595_v61 = vld [vmem:[#allocation87_spill] sm:$0xff] }
 0x2ad   :  { %3419 = vpow2.f32 %v3301_v14  ;;  %v5598_v6 = vld [vmem:[#allocation90_spill] sm:$0xff] }
 0x2ae   :  { %3421 = vpow2.f32 %v3302_v42  ;;  %v5599_v42 = vld [vmem:[#allocation91_spill] sm:$0xff] }
 0x2af   :  { %3423 = vpow2.f32 %v3303_v12  ;;  %v5600_v12 = vld [vmem:[#allocation92_spill] sm:$0xff] }
 0x2b0   :  { %3425 = vtanh.f32 %v1130_v7  ;;  %v5596_v7 = vld [vmem:[#allocation88_spill] sm:$0xff] }
 0x2b6   :  { %v3418_v28 = vpop.eup %3417 }
 0x2b7   :  { %v3420_v59 = vpop.eup %3419  ;;  %v1040_v18 = vmul.f32 %v3418_v28, %v3416_v38 }
 0x2b8   :  { %v3422_v0 = vpop.eup %3421  ;;  %v1135_v44 = vadd.f32 1.0, %v3420_v59 }
 0x2b9   :  { %v1141_v40 = vadd.f32 1.0, %v3422_v0  ;;  %v1157_v55 = vpack.c.bf16 %v1040_v18, %v1040_v18  ;;  %v3424_v14 = vpop.eup %3423  ;;  %v5601_v18 = vld [vmem:[#allocation93_spill] sm:$0xff]  ;;  %v5602_v0 = vld [vmem:[#allocation94_spill] sm:$0xff] }
 0x2ba   :  { %3427 = vrcp.f32 %v1135_v44  ;;  %v3426_v11 = vpop.eup %3425  ;;  %v1148_v59 = vadd.f32 1.0, %v3424_v14  ;;  %v5608_v14 = vld [vmem:[#allocation99_spill] sm:$0xff] }
 0x2bb   :  { %3429 = vrcp.f32 %v1141_v40  ;;  %1191 = vmatmul.mubr.bf16.vlgmr.msra.gmra.mrb[32].mxu0 %v1157_v55  ;;  %1232 = vmatmul.mubr.bf16.vlgmr.msra.gmra.mrb[32].mxu1 %v1157_v55  ;;  %v5604_v55 = vld [vmem:[#allocation95_spill] sm:$0xff] }
 0x2bc   :  { %1241 = vmatpush1.bf16.msra.mxu0 %v5591_v56  ;;  %1282 = vmatpush1.bf16.msra.mxu1 %v5592_v34  ;;  %3431 = vrcp.f32 %v1148_v59  ;;  %v5615_v59 = vld [vmem:[#allocation106_spill] sm:$0xff] }
 0x2bd   :  { %1242 = vmatprep.subr.bf16.mxu0 %v5593_v39  ;;  %1283 = vmatprep.subr.bf16.mxu1 %v5594_v13 }
 0x2be   :  { %1272 = vmatprep.mubr.bf16.mxu0 %v5496_v23  ;;  %1313 = vmatprep.mubr.bf16.mxu1 %v5496_v23 }
 0x2c0   :  { %1243 = vmatpush1.bf16.msra.mxu0 %v5595_v61  ;;  %1284 = vmatpush1.bf16.msra.mxu1 %v5596_v7 }
 0x2c1   :  { %1244 = vmatprep.subr.bf16.mxu0 %v5597_v24  ;;  %1285 = vmatprep.subr.bf16.mxu1 %v5598_v6  ;;  %v5605_v6 = vld [vmem:[#allocation96_spill] sm:$0xff]  ;;  %v5606_v24 = vld [vmem:[#allocation97_spill] sm:$0xff] }
 0x2c4   :  { %v3428_v62 = vpop.eup %3427  ;;  %1245 = vmatpush1.bf16.msra.mxu0 %v5599_v42  ;;  %1286 = vmatpush1.bf16.msra.mxu1 %v5600_v12  ;;  %v5607_v42 = vld [vmem:[#allocation98_spill] sm:$0xff] }
 0x2c5   :  { %v3430_v38 = vpop.eup %3429  ;;  %v1152_v28 = vmul.f32 %v3428_v62, %v3426_v11  ;;  %1246 = vmatprep.subr.bf16.mxu0 %v5601_v18  ;;  %1287 = vmatprep.subr.bf16.mxu1 %v5602_v0  ;;  %v5609_v11 = vld [vmem:[#allocation100_spill] sm:$0xff]  ;;  %v5610_v62 = vld [vmem:[#allocation101_spill] sm:$0xff] }
 0x2c6   :  { %v1151_v44 = vmul.f32 %v3430_v38, %v4365_v26  ;;  %v5611_v26 = vld [vmem:[#allocation102_spill] sm:$0xff]  ;;  %v5612_v38 = vld [vmem:[#allocation103_spill] sm:$0xff] }
 0x2c8   :  { %v4481_v40 = vadd.f32 %v1152_v28, %v1151_v44  ;;  %1247 = vmatpush1.bf16.msra.mxu0 %v5604_v55  ;;  %1288 = vmatpush1.bf16.msra.mxu1 %v5605_v6  ;;  %v5613_v28 = vld [vmem:[#allocation104_spill] sm:$0xff]  ;;  %v5614_v44 = vld [vmem:[#allocation105_spill] sm:$0xff]  ;;  %v5616_v6 = vld [vmem:[#allocation107_spill] sm:$0xff] }
 0x2c9   :  { %1248 = vmatprep.subr.bf16.mxu0 %v5606_v24  ;;  %1289 = vmatprep.subr.bf16.mxu1 %v5607_v42  ;;  %v3432_v24 = vpop.eup %3431  ;;  %v5617_v55 = vld [vmem:[#allocation108_spill] sm:$0xff] }
 0x2ca   :  { %5603 = vst [vmem:[#allocation113_spill] sm:$0xff] %v4481_v40  ;;  %3433 = vtanh.f32 %v4481_v40  ;;  %v5622_v40 = vld [vmem:[#allocation20_spill] sm:$0xff] }
 0x2cc   :  { %1249 = vmatpush1.bf16.msra.mxu0 %v5608_v14  ;;  %1290 = vmatpush1.bf16.msra.mxu1 %v5609_v11  ;;  %v5618_v14 = vld [vmem:[#allocation109_spill] sm:$0xff]  ;;  %v5619_v11 = vld [vmem:[#allocation110_spill] sm:$0xff] }
 0x2cd   :  { %1250 = vmatprep.subr.bf16.mxu0 %v5610_v62  ;;  %1291 = vmatprep.subr.bf16.mxu1 %v5611_v26  ;;  %v5620_v26 = vld [vmem:[#allocation111_spill] sm:$0xff] }
 0x2d0   :  { %1251 = vmatpush1.bf16.msra.mxu0 %v5612_v38  ;;  %1292 = vmatpush1.bf16.msra.mxu1 %v5613_v28  ;;  %v5621_v38 = vld [vmem:[#allocation112_spill] sm:$0xff] }
 0x2d1   :  { %1252 = vmatprep.subr.bf16.mxu0 %v5614_v44  ;;  %1293 = vmatprep.subr.bf16.mxu1 %v5615_v59  ;;  %v5623_v44 = vld [vmem:[#allocation21_spill] sm:$0xff] }
 0x2d4   :  { %v3434_v42 = vpop.eup %3433  ;;  %1253 = vmatpush1.bf16.msra.mxu0 %v5616_v6  ;;  %1294 = vmatpush1.bf16.msra.mxu1 %v5617_v55 }
 0x2d5   :  { %1254 = vmatprep.subr.bf16.mxu0 %v5618_v14  ;;  %1295 = vmatprep.subr.bf16.mxu1 %v5619_v11  ;;  %v1155_v62 = vmul.f32 %v3434_v42, %v3432_v24  ;;  %v5624_v24 = vld [vmem:[#allocation55_spill] sm:$0xff]  ;;  %v5625_v42 = vld [vmem:[#allocation56_spill] sm:$0xff] }
 0x2d7   :  { %v1156_v28 = vpack.c.bf16 %v1155_v62, %v1155_v62  ;;  %v5626_v62 = vld [vmem:[#allocation57_spill] sm:$0xff] }
 0x2d8   :  { %1255 = vmatpush1.bf16.msra.mxu0 %v5620_v26  ;;  %1296 = vmatpush1.bf16.msra.mxu1 %v5621_v38 }
 0x2d9   :  { %1355 = vmatprep.subr.bf16.mxu0 %v5622_v40  ;;  %1396 = vmatprep.subr.bf16.mxu1 %v5623_v44 }
 0x2db   :  { %1273 = vmatmul.mubr.bf16.vlgmr.msra.gmra.mrb[36].mxu0 %v1156_v28  ;;  %1314 = vmatmul.mubr.bf16.vlgmr.msra.gmra.mrb[36].mxu1 %v1156_v28 }
 0x2dc   :  { %1356 = vmatpush1.bf16.msra.mxu0 %v3967_v51  ;;  %1397 = vmatpush1.bf16.msra.mxu1 %v3970_v52 }
 0x2dd   :  { %1357 = vmatprep.subr.bf16.mxu0 %v3972_v53  ;;  %1398 = vmatprep.subr.bf16.mxu1 %v3975_v57 }
 0x2de   :  { %1387 = vmatprep.mubr.bf16.mxu0 %v5496_v23  ;;  %1428 = vmatprep.mubr.bf16.mxu1 %v5496_v23 }
 0x2e0   :  { %1358 = vmatpush1.bf16.msra.mxu0 %v3978_v63  ;;  %1399 = vmatpush1.bf16.msra.mxu1 %v3982_v3 }
 0x2e1   :  { %1359 = vmatprep.subr.bf16.mxu0 %v3984_v4  ;;  %1400 = vmatprep.subr.bf16.mxu1 %v3988_v8 }
 0x2e4   :  { %1360 = vmatpush1.bf16.msra.mxu0 %v3992_v15  ;;  %1401 = vmatpush1.bf16.msra.mxu1 %v3996_v16 }
 0x2e5   :  { %1361 = vmatprep.subr.bf16.mxu0 %v3998_v17  ;;  %1402 = vmatprep.subr.bf16.mxu1 %v4001_v21 }
 0x2e8   :  { %1362 = vmatpush1.bf16.msra.mxu0 %v4004_v27  ;;  %1403 = vmatpush1.bf16.msra.mxu1 %v4008_v30 }
 0x2e9   :  { %1363 = vmatprep.subr.bf16.mxu0 %v4010_v31  ;;  %1404 = vmatprep.subr.bf16.mxu1 %v4014_v35 }
 0x2ec   :  { %1364 = vmatpush1.bf16.msra.mxu0 %v4018_v43  ;;  %1405 = vmatpush1.bf16.msra.mxu1 %v4022_v45 }
 0x2ed   :  { %1365 = vmatprep.subr.bf16.mxu0 %v4024_v46  ;;  %1406 = vmatprep.subr.bf16.mxu1 %v4027_v50 }
 0x2f0   :  { %1366 = vmatpush1.bf16.msra.mxu0 %v4030_v60  ;;  %1407 = vmatpush1.bf16.msra.mxu1 %v4034_v1 }
 0x2f1   :  { %1367 = vmatprep.subr.bf16.mxu0 %v4036_v2  ;;  %1408 = vmatprep.subr.bf16.mxu1 %v4040_v9 }
 0x2f4   :  { %1368 = vmatpush1.bf16.msra.mxu0 %v4044_v19  ;;  %1409 = vmatpush1.bf16.msra.mxu1 %v4048_v20 }
 0x2f5   :  { %1369 = vmatprep.subr.bf16.mxu0 %v4050_v22  ;;  %1410 = vmatprep.subr.bf16.mxu1 %v4053_v25 }
 0x2f8   :  { %1370 = vmatpush1.bf16.msra.mxu0 %v4056_v29  ;;  %1411 = vmatpush1.bf16.msra.mxu1 %v4060_v32  ;;  %v5634_v32 = vld [vmem:[#allocation65_spill] sm:$0xff] }
 0x2f9   :  { %1467 = vmatprep.subr.bf16.mxu0 %v4071_v36  ;;  %1508 = vmatprep.subr.bf16.mxu1 %v4073_v41  ;;  %v5627_v41 = vld [vmem:[#allocation58_spill] sm:$0xff]  ;;  %v5633_v36 = vld [vmem:[#allocation64_spill] sm:$0xff] }
 0x2fb   :  { %1388 = vmatmul.mubr.bf16.vlgmr.msra.gmra.mrb[40].mxu0 %v1156_v28  ;;  %1429 = vmatmul.mubr.bf16.vlgmr.msra.gmra.mrb[40].mxu1 %v1156_v28  ;;  %v5628_v28 = vld [vmem:[#allocation59_spill] sm:$0xff] }
 0x2fc   :  { %1468 = vmatpush1.bf16.msra.mxu0 %v4076_v49  ;;  %1509 = vmatpush1.bf16.msra.mxu1 %v4078_v54  ;;  %v5629_v49 = vld [vmem:[#allocation60_spill] sm:$0xff]  ;;  %v5630_v54 = vld [vmem:[#allocation61_spill] sm:$0xff] }
 0x2fd   :  { %1469 = vmatprep.subr.bf16.mxu0 %v4083_v58  ;;  %1510 = vmatprep.subr.bf16.mxu1 %v4085_v5  ;;  %v5631_v58 = vld [vmem:[#allocation62_spill] sm:$0xff]  ;;  %v5632_v5 = vld [vmem:[#allocation63_spill] sm:$0xff] }
 0x2fe   :  { %1499 = vmatprep.mubr.bf16.mxu0 %v5496_v23  ;;  %1540 = vmatprep.mubr.bf16.mxu1 %v5496_v23 }
 0x300   :  { %1470 = vmatpush1.bf16.msra.mxu0 %v5624_v24  ;;  %1511 = vmatpush1.bf16.msra.mxu1 %v5625_v42  ;;  %v5635_v24 = vld [vmem:[#allocation66_spill] sm:$0xff]  ;;  %v5636_v42 = vld [vmem:[#allocation67_spill] sm:$0xff] }
 0x301   :  { %1471 = vmatprep.subr.bf16.mxu0 %v5626_v62  ;;  %1512 = vmatprep.subr.bf16.mxu1 %v5627_v41  ;;  %v5637_v62 = vld [vmem:[#allocation68_spill] sm:$0xff]  ;;  %v5638_v41 = vld [vmem:[#allocation69_spill] sm:$0xff] }
 0x304   :  { %1472 = vmatpush1.bf16.msra.mxu0 %v5628_v28  ;;  %1513 = vmatpush1.bf16.msra.mxu1 %v5629_v49  ;;  %v5639_v28 = vld [vmem:[#allocation70_spill] sm:$0xff]  ;;  %v5640_v49 = vld [vmem:[#allocation71_spill] sm:$0xff] }
 0x305   :  { %1473 = vmatprep.subr.bf16.mxu0 %v5630_v54  ;;  %1514 = vmatprep.subr.bf16.mxu1 %v5631_v58  ;;  %v5641_v54 = vld [vmem:[#allocation72_spill] sm:$0xff]  ;;  %v5642_v58 = vld [vmem:[#allocation73_spill] sm:$0xff] }
 0x308   :  { %1474 = vmatpush1.bf16.msra.mxu0 %v5632_v5  ;;  %1515 = vmatpush1.bf16.msra.mxu1 %v5633_v36  ;;  %v5643_v5 = vld [vmem:[#allocation74_spill] sm:$0xff]  ;;  %v5644_v36 = vld [vmem:[#allocation75_spill] sm:$0xff] }
 0x309   :  { %1475 = vmatprep.subr.bf16.mxu0 %v5634_v32  ;;  %1516 = vmatprep.subr.bf16.mxu1 %v5635_v24  ;;  %v5645_v32 = vld [vmem:[#allocation76_spill] sm:$0xff]  ;;  %v5646_v24 = vld [vmem:[#allocation77_spill] sm:$0xff] }
 0x30c   :  { %1476 = vmatpush1.bf16.msra.mxu0 %v5636_v42  ;;  %1517 = vmatpush1.bf16.msra.mxu1 %v5637_v62  ;;  %v5647_v42 = vld [vmem:[#allocation78_spill] sm:$0xff]  ;;  %v5648_v62 = vld [vmem:[#allocation79_spill] sm:$0xff] }
 0x30d   :  { %1477 = vmatprep.subr.bf16.mxu0 %v5638_v41  ;;  %1518 = vmatprep.subr.bf16.mxu1 %v5639_v28  ;;  %v5649_v41 = vld [vmem:[#allocation80_spill] sm:$0xff]  ;;  %v5650_v28 = vld [vmem:[#allocation81_spill] sm:$0xff] }
 0x310   :  { %1478 = vmatpush1.bf16.msra.mxu0 %v5640_v49  ;;  %1519 = vmatpush1.bf16.msra.mxu1 %v5641_v54  ;;  %v5651_v49 = vld [vmem:[#allocation82_spill] sm:$0xff] }
 0x311   :  { %1479 = vmatprep.subr.bf16.mxu0 %v5642_v58  ;;  %1520 = vmatprep.subr.bf16.mxu1 %v5643_v5 }
 0x314   :  { %1480 = vmatpush1.bf16.msra.mxu0 %v5644_v36  ;;  %1521 = vmatpush1.bf16.msra.mxu1 %v5645_v32 }
 0x315   :  { %1481 = vmatprep.subr.bf16.mxu0 %v5646_v24  ;;  %1522 = vmatprep.subr.bf16.mxu1 %v5647_v42 }
 0x318   :  { %1482 = vmatpush1.bf16.msra.mxu0 %v5648_v62  ;;  %1523 = vmatpush1.bf16.msra.mxu1 %v5649_v41 }
 0x319   :  { %1549 = vmatprep.subr.bf16.mxu0 %v5650_v28  ;;  %1590 = vmatprep.subr.bf16.mxu1 %v5651_v49 }
 0x38e   :  { %v1192_v54 = vpop.f32.mrb[32].mxu0  ;;  %v1233_v58 = vpop.f32.mrb[32].mxu1 }
 0x38f   :  { %v1194_v29 = vpop.f32.mrb[33].mxu0  ;;  %v1235_v5 = vpop.f32.mrb[33].mxu1 }
 0x390   :  { %v1196_v25 = vpop.f32.mrb[34].mxu0  ;;  %v1237_v36 = vpop.f32.mrb[34].mxu1 }
 0x391   :  { %v1197_v22 = vpop.f32.mrb[35].mxu0  ;;  %v1238_v32 = vpop.f32.mrb[35].mxu1 }
 0x3ae   :  { %v1274_v20 = vpop.f32.mrb[36].mxu0  ;;  %v1315_v24 = vpop.f32.mrb[36].mxu1 }
 0x3af   :  { %v1275_v19 = vadd.f32 %v1274_v20, %v1192_v54  ;;  %v1316_v42 = vadd.f32 %v1315_v24, %v1233_v58  ;;  %v1276_v9 = vpop.f32.mrb[37].mxu0  ;;  %v1317_v62 = vpop.f32.mrb[37].mxu1  ;;  %v5652_v24 = vld [vmem:[#allocation118_spill] sm:$0xff] }
 0x3b0   :  { %v1277_v2 = vadd.f32 %v1276_v9, %v1194_v29  ;;  %v1318_v41 = vadd.f32 %v1317_v62, %v1235_v5  ;;  %v1278_v1 = vpop.f32.mrb[38].mxu0  ;;  %v1319_v28 = vpop.f32.mrb[38].mxu1  ;;  %v5653_v62 = vld [vmem:[#allocation120_spill] sm:$0xff] }
 0x3b1   :  { %v1322_v49 = vadd.f32 %v1275_v19, %v4441_v37  ;;  %v1279_v60 = vpop.f32.mrb[39].mxu0  ;;  %v1320_v50 = vpop.f32.mrb[39].mxu1  ;;  %v1324_v32 = vadd.f32 %v1316_v42, %v4456_v48 }
 0x3b2   :  { %v1323_v46 = vadd.f32 %v1277_v2, %v4445_v10  ;;  %v1325_v22 = vadd.f32 %v1318_v41, %v4451_v47 }
 0x3b3   :  { %v3304_v25 = vmul.f32 -1.442695, %v1322_v49 }
 0x3b4   :  { %v3305_v36 = vmul.f32 -1.442695, %v1323_v46  ;;  %v3306_v20 = vmul.f32 -1.442695, %v1325_v22 }
 0x3b5   :  { %3435 = vpow2.f32 %v3304_v25 }
 0x3b6   :  { %3437 = vpow2.f32 %v3305_v36 }
 0x3b7   :  { %3439 = vpow2.f32 %v3306_v20  ;;  %v5654_v20 = vld [vmem:[#allocation119_spill] sm:$0xff] }
 0x3b8   :  { %3441 = vtanh.f32 %v1324_v32 }
 0x3bf   :  { %v3436_v54 = vpop.eup %3435 }
 0x3c0   :  { %v3438_v9 = vpop.eup %3437  ;;  %v1329_v29 = vadd.f32 1.0, %v3436_v54  ;;  %v5655_v54 = vld [vmem:[#allocation122_spill] sm:$0xff] }
 0x3c1   :  { %v1335_v1 = vadd.f32 1.0, %v3438_v9  ;;  %v3440_v50 = vpop.eup %3439 }
 0x3c2   :  { %3443 = vrcp.f32 %v1329_v29  ;;  %v3442_v60 = vpop.eup %3441  ;;  %v1342_v49 = vadd.f32 1.0, %v3440_v50 }
 0x3c3   :  { %3445 = vrcp.f32 %v1335_v1 }
 0x3c4   :  { %3447 = vrcp.f32 %v1342_v49  ;;  %v5656_v49 = vld [vmem:[#allocation89_spill] sm:$0xff] }
 0x3cc   :  { %v3444_v2 = vpop.eup %3443 }
 0x3cd   :  { %v3446_v19 = vpop.eup %3445  ;;  %v1346_v46 = vmul.f32 %v3444_v2, %v3442_v60 }
 0x3ce   :  { %v1345_v58 = vmul.f32 %v3446_v19, %v4461_v33  ;;  %v1389_v41 = vpop.f32.mrb[40].mxu0  ;;  %v1430_v5 = vpop.f32.mrb[40].mxu1 }
 0x3cf   :  { %v1437_v42 = vadd.f32 %v1389_v41, %v5652_v24  ;;  %v1439_v28 = vadd.f32 %v1430_v5, %v5653_v62  ;;  %v1391_v25 = vpop.f32.mrb[41].mxu0  ;;  %v1432_v36 = vpop.f32.mrb[41].mxu1 }
 0x3d0   :  { %v4579_v22 = vadd.f32 %v1346_v46, %v1345_v58  ;;  %v1438_v32 = vadd.f32 %v1391_v25, %v5654_v20  ;;  %v1440_v9 = vadd.f32 %v1432_v36, %v5655_v54  ;;  %v1393_v29 = vpop.f32.mrb[42].mxu0  ;;  %v1434_v1 = vpop.f32.mrb[42].mxu1  ;;  %v5658_v54 = vld [vmem:[#allocation91_spill] sm:$0xff] }
 0x3d1   :  { %v3307_v50 = vmul.f32 -1.442695, %v1437_v42  ;;  %v1394_v60 = vpop.f32.mrb[43].mxu0  ;;  %v1435_v33 = vpop.f32.mrb[43].mxu1  ;;  %v5657_v42 = vld [vmem:[#allocation90_spill] sm:$0xff] }
 0x3d2   :  { %v3308_v2 = vmul.f32 -1.442695, %v1438_v32  ;;  %3449 = vtanh.f32 %v4579_v22  ;;  %v3309_v19 = vmul.f32 -1.442695, %v1440_v9  ;;  %v3448_v41 = vpop.eup %3447 }
 0x3d3   :  { %3451 = vpow2.f32 %v3307_v50  ;;  %v5659_v50 = vld [vmem:[#allocation113_spill] sm:$0xff] }
 0x3d4   :  { %3453 = vpow2.f32 %v3308_v2  ;;  %v5660_v2 = vld [vmem:[#allocation95_spill] sm:$0xff] }
 0x3d5   :  { %3455 = vpow2.f32 %v3309_v19  ;;  %v5661_v19 = vld [vmem:[#allocation96_spill] sm:$0xff] }
 0x3d6   :  { %3457 = vtanh.f32 %v1439_v28 }
 0x3dc   :  { %v3450_v5 = vpop.eup %3449 }
 0x3dd   :  { %v3452_v46 = vpop.eup %3451  ;;  %v1349_v58 = vmul.f32 %v3450_v5, %v3448_v41  ;;  %v5662_v41 = vld [vmem:[#allocation97_spill] sm:$0xff]  ;;  %v5663_v5 = vld [vmem:[#allocation98_spill] sm:$0xff] }
 0x3de   :  { %v3454_v24 = vpop.eup %3453  ;;  %v1444_v62 = vadd.f32 1.0, %v3452_v46  ;;  %v5664_v46 = vld [vmem:[#allocation99_spill] sm:$0xff] }
 0x3df   :  { %v1450_v25 = vadd.f32 1.0, %v3454_v24  ;;  %v1466_v36 = vpack.c.bf16 %v1349_v58, %v1349_v58  ;;  %v3456_v28 = vpop.eup %3455  ;;  %v5665_v58 = vld [vmem:[#allocation100_spill] sm:$0xff]  ;;  %v5666_v24 = vld [vmem:[#allocation101_spill] sm:$0xff] }
 0x3e0   :  { %3459 = vrcp.f32 %v1444_v62  ;;  %v3458_v20 = vpop.eup %3457  ;;  %v1457_v1 = vadd.f32 1.0, %v3456_v28  ;;  %v5667_v62 = vld [vmem:[#allocation102_spill] sm:$0xff]  ;;  %v5670_v28 = vld [vmem:[#allocation105_spill] sm:$0xff] }
 0x3e1   :  { %3461 = vrcp.f32 %v1450_v25  ;;  %1500 = vmatmul.mubr.bf16.vlgmr.msra.gmra.mrb[44].mxu0 %v1466_v36  ;;  %1541 = vmatmul.mubr.bf16.vlgmr.msra.gmra.mrb[44].mxu1 %v1466_v36  ;;  %v5668_v25 = vld [vmem:[#allocation103_spill] sm:$0xff]  ;;  %v5669_v36 = vld [vmem:[#allocation104_spill] sm:$0xff] }
 0x3e2   :  { %1550 = vmatpush1.bf16.msra.mxu0 %v5591_v56  ;;  %1591 = vmatpush1.bf16.msra.mxu1 %v5592_v34  ;;  %3463 = vrcp.f32 %v1457_v1  ;;  %v5671_v1 = vld [vmem:[#allocation37_spill] sm:$0xff] }
 0x3e3   :  { %1551 = vmatprep.subr.bf16.mxu0 %v5593_v39  ;;  %1592 = vmatprep.subr.bf16.mxu1 %v5594_v13 }
 0x3e4   :  { %1581 = vmatprep.mubr.bf16.mxu0 %v5496_v23  ;;  %1622 = vmatprep.mubr.bf16.mxu1 %v5496_v23 }
 0x3e6   :  { %1552 = vmatpush1.bf16.msra.mxu0 %v5595_v61  ;;  %1593 = vmatpush1.bf16.msra.mxu1 %v5596_v7 }
 0x3e7   :  { %1553 = vmatprep.subr.bf16.mxu0 %v5656_v49  ;;  %1594 = vmatprep.subr.bf16.mxu1 %v5657_v42 }
 0x3ea   :  { %v3460_v32 = vpop.eup %3459  ;;  %1554 = vmatpush1.bf16.msra.mxu0 %v5658_v54  ;;  %1595 = vmatpush1.bf16.msra.mxu1 %v5600_v12 }
 0x3eb   :  { %v3462_v9 = vpop.eup %3461  ;;  %v1461_v29 = vmul.f32 %v3460_v32, %v3458_v20  ;;  %1555 = vmatprep.subr.bf16.mxu0 %v5601_v18  ;;  %1596 = vmatprep.subr.bf16.mxu1 %v5602_v0 }
 0x3ec   :  { %v1460_v60 = vmul.f32 %v3462_v9, %v5659_v50  ;;  %v3464_v20 = vpop.eup %3463  ;;  %v5672_v50 = vld [vmem:[#allocation38_spill] sm:$0xff] }
 0x3ee   :  { %v4599_v33 = vadd.f32 %v1461_v29, %v1460_v60  ;;  %1556 = vmatpush1.bf16.msra.mxu0 %v5660_v2  ;;  %1597 = vmatpush1.bf16.msra.mxu1 %v5661_v19  ;;  %v5673_v60 = vld [vmem:[#allocation39_spill] sm:$0xff] }
 0x3ef   :  { %1557 = vmatprep.subr.bf16.mxu0 %v5662_v41  ;;  %1598 = vmatprep.subr.bf16.mxu1 %v5663_v5 }
 0x3f0   :  { %3465 = vtanh.f32 %v4599_v33 }
 0x3f2   :  { %1558 = vmatpush1.bf16.msra.mxu0 %v5664_v46  ;;  %1599 = vmatpush1.bf16.msra.mxu1 %v5665_v58 }
 0x3f3   :  { %1559 = vmatprep.subr.bf16.mxu0 %v5666_v24  ;;  %1600 = vmatprep.subr.bf16.mxu1 %v5667_v62 }
 0x3f6   :  { %1560 = vmatpush1.bf16.msra.mxu0 %v5668_v25  ;;  %1601 = vmatpush1.bf16.msra.mxu1 %v5669_v36 }
 0x3f7   :  { %1561 = vmatprep.subr.bf16.mxu0 %v5670_v28  ;;  %1602 = vmatprep.subr.bf16.mxu1 %v5615_v59 }
 0x3fa   :  { %v3466_v32 = vpop.eup %3465  ;;  %1562 = vmatpush1.bf16.msra.mxu0 %v5616_v6  ;;  %1603 = vmatpush1.bf16.msra.mxu1 %v5617_v55 }
 0x3fb   :  { %1563 = vmatprep.subr.bf16.mxu0 %v5618_v14  ;;  %1604 = vmatprep.subr.bf16.mxu1 %v5619_v11  ;;  %v1464_v9 = vmul.f32 %v3466_v32, %v3464_v20  ;;  %v5674_v20 = vld [vmem:[#allocation40_spill] sm:$0xff]  ;;  %v5675_v32 = vld [vmem:[#allocation41_spill] sm:$0xff] }
 0x3fd   :  { %v1465_v29 = vpack.c.bf16 %v1464_v9, %v1464_v9  ;;  %v5676_v9 = vld [vmem:[#allocation42_spill] sm:$0xff] }
 0x3fe   :  { %1564 = vmatpush1.bf16.msra.mxu0 %v5620_v26  ;;  %1605 = vmatpush1.bf16.msra.mxu1 %v5621_v38 }
 0x3ff   :  { %1664 = vmatprep.subr.bf16.mxu0 %v5622_v40  ;;  %1705 = vmatprep.subr.bf16.mxu1 %v5623_v44 }
 0x401   :  { %1582 = vmatmul.mubr.bf16.vlgmr.msra.gmra.mrb[48].mxu0 %v1465_v29  ;;  %1623 = vmatmul.mubr.bf16.vlgmr.msra.gmra.mrb[48].mxu1 %v1465_v29 }
 0x402   :  { %1665 = vmatpush1.bf16.msra.mxu0 %v3967_v51  ;;  %1706 = vmatpush1.bf16.msra.mxu1 %v3970_v52 }
 0x403   :  { %1666 = vmatprep.subr.bf16.mxu0 %v3972_v53  ;;  %1707 = vmatprep.subr.bf16.mxu1 %v3975_v57 }
 0x404   :  { %1696 = vmatprep.mubr.bf16.mxu0 %v5496_v23  ;;  %1737 = vmatprep.mubr.bf16.mxu1 %v5496_v23 }
 0x406   :  { %1667 = vmatpush1.bf16.msra.mxu0 %v3978_v63  ;;  %1708 = vmatpush1.bf16.msra.mxu1 %v3982_v3 }
 0x407   :  { %1668 = vmatprep.subr.bf16.mxu0 %v3984_v4  ;;  %1709 = vmatprep.subr.bf16.mxu1 %v3988_v8 }
 0x40a   :  { %1669 = vmatpush1.bf16.msra.mxu0 %v3992_v15  ;;  %1710 = vmatpush1.bf16.msra.mxu1 %v3996_v16 }
 0x40b   :  { %1670 = vmatprep.subr.bf16.mxu0 %v3998_v17  ;;  %1711 = vmatprep.subr.bf16.mxu1 %v4001_v21 }
 0x40e   :  { %1671 = vmatpush1.bf16.msra.mxu0 %v4004_v27  ;;  %1712 = vmatpush1.bf16.msra.mxu1 %v4008_v30  ;;  %v5677_v30 = vld [vmem:[#allocation43_spill] sm:$0xff] }
 0x40f   :  { %1672 = vmatprep.subr.bf16.mxu0 %v4010_v31  ;;  %1713 = vmatprep.subr.bf16.mxu1 %v4014_v35  ;;  %v5678_v31 = vld [vmem:[#allocation44_spill] sm:$0xff]  ;;  %v5679_v35 = vld [vmem:[#allocation45_spill] sm:$0xff] }
 0x412   :  { %1673 = vmatpush1.bf16.msra.mxu0 %v4018_v43  ;;  %1714 = vmatpush1.bf16.msra.mxu1 %v4022_v45  ;;  %v5680_v43 = vld [vmem:[#allocation46_spill] sm:$0xff]  ;;  %v5681_v45 = vld [vmem:[#allocation47_spill] sm:$0xff] }
 0x413   :  { %1674 = vmatprep.subr.bf16.mxu0 %v5671_v1  ;;  %1715 = vmatprep.subr.bf16.mxu1 %v5672_v50  ;;  %v5682_v1 = vld [vmem:[#allocation48_spill] sm:$0xff]  ;;  %v5683_v50 = vld [vmem:[#allocation49_spill] sm:$0xff] }
 0x416   :  { %1675 = vmatpush1.bf16.msra.mxu0 %v5673_v60  ;;  %1716 = vmatpush1.bf16.msra.mxu1 %v5674_v20  ;;  %v5684_v60 = vld [vmem:[#allocation50_spill] sm:$0xff] }
 0x417   :  { %1676 = vmatprep.subr.bf16.mxu0 %v5675_v32  ;;  %1717 = vmatprep.subr.bf16.mxu1 %v5676_v9  ;;  %v5685_v32 = vld [vmem:[#allocation51_spill] sm:$0xff]  ;;  %v5686_v9 = vld [vmem:[#allocation52_spill] sm:$0xff] }
 0x41a   :  { %1677 = vmatpush1.bf16.msra.mxu0 %v5677_v30  ;;  %1718 = vmatpush1.bf16.msra.mxu1 %v5678_v31  ;;  %v5687_v30 = vld [vmem:[#allocation53_spill] sm:$0xff]  ;;  %v5688_v31 = vld [vmem:[#allocation54_spill] sm:$0xff] }
 0x41b   :  { %1678 = vmatprep.subr.bf16.mxu0 %v5679_v35  ;;  %1719 = vmatprep.subr.bf16.mxu1 %v5680_v43  ;;  %v5698_v43 = vld [vmem:[#allocation64_spill] sm:$0xff]  ;;  %v5699_v35 = vld [vmem:[#allocation65_spill] sm:$0xff] }
 0x41e   :  { %1679 = vmatpush1.bf16.msra.mxu0 %v5681_v45  ;;  %1720 = vmatpush1.bf16.msra.mxu1 %v5682_v1  ;;  %v5689_v45 = vld [vmem:[#allocation55_spill] sm:$0xff]  ;;  %v5690_v1 = vld [vmem:[#allocation56_spill] sm:$0xff] }
 0x41f   :  { %1776 = vmatprep.subr.bf16.mxu0 %v5683_v50  ;;  %1817 = vmatprep.subr.bf16.mxu1 %v5684_v60  ;;  %v5691_v50 = vld [vmem:[#allocation57_spill] sm:$0xff]  ;;  %v5692_v60 = vld [vmem:[#allocation58_spill] sm:$0xff] }
 0x421   :  { %1697 = vmatmul.mubr.bf16.vlgmr.msra.gmra.mrb[52].mxu0 %v1465_v29  ;;  %1738 = vmatmul.mubr.bf16.vlgmr.msra.gmra.mrb[52].mxu1 %v1465_v29  ;;  %v5693_v29 = vld [vmem:[#allocation59_spill] sm:$0xff] }
 0x422   :  { %1777 = vmatpush1.bf16.msra.mxu0 %v5685_v32  ;;  %1818 = vmatpush1.bf16.msra.mxu1 %v5686_v9  ;;  %v5694_v32 = vld [vmem:[#allocation60_spill] sm:$0xff]  ;;  %v5695_v9 = vld [vmem:[#allocation61_spill] sm:$0xff] }
 0x423   :  { %1778 = vmatprep.subr.bf16.mxu0 %v5687_v30  ;;  %1819 = vmatprep.subr.bf16.mxu1 %v5688_v31  ;;  %v5696_v30 = vld [vmem:[#allocation62_spill] sm:$0xff]  ;;  %v5697_v31 = vld [vmem:[#allocation63_spill] sm:$0xff] }
 0x424   :  { %1808 = vmatprep.mubr.bf16.mxu0 %v5496_v23  ;;  %1849 = vmatprep.mubr.bf16.mxu1 %v5496_v23 }
 0x426   :  { %1779 = vmatpush1.bf16.msra.mxu0 %v5689_v45  ;;  %1820 = vmatpush1.bf16.msra.mxu1 %v5690_v1  ;;  %v5700_v45 = vld [vmem:[#allocation66_spill] sm:$0xff]  ;;  %v5701_v1 = vld [vmem:[#allocation67_spill] sm:$0xff] }
 0x427   :  { %1780 = vmatprep.subr.bf16.mxu0 %v5691_v50  ;;  %1821 = vmatprep.subr.bf16.mxu1 %v5692_v60  ;;  %v5702_v50 = vld [vmem:[#allocation68_spill] sm:$0xff]  ;;  %v5703_v60 = vld [vmem:[#allocation69_spill] sm:$0xff] }
 0x42a   :  { %1781 = vmatpush1.bf16.msra.mxu0 %v5693_v29  ;;  %1822 = vmatpush1.bf16.msra.mxu1 %v5694_v32  ;;  %v5704_v29 = vld [vmem:[#allocation70_spill] sm:$0xff]  ;;  %v5705_v32 = vld [vmem:[#allocation71_spill] sm:$0xff] }
 0x42b   :  { %1782 = vmatprep.subr.bf16.mxu0 %v5695_v9  ;;  %1823 = vmatprep.subr.bf16.mxu1 %v5696_v30  ;;  %v5706_v9 = vld [vmem:[#allocation72_spill] sm:$0xff]  ;;  %v5707_v30 = vld [vmem:[#allocation73_spill] sm:$0xff] }
 0x42e   :  { %1783 = vmatpush1.bf16.msra.mxu0 %v5697_v31  ;;  %1824 = vmatpush1.bf16.msra.mxu1 %v5698_v43  ;;  %v5708_v31 = vld [vmem:[#allocation74_spill] sm:$0xff]  ;;  %v5709_v43 = vld [vmem:[#allocation75_spill] sm:$0xff] }
 0x42f   :  { %1784 = vmatprep.subr.bf16.mxu0 %v5699_v35  ;;  %1825 = vmatprep.subr.bf16.mxu1 %v5700_v45  ;;  %v5710_v35 = vld [vmem:[#allocation76_spill] sm:$0xff]  ;;  %v5711_v45 = vld [vmem:[#allocation77_spill] sm:$0xff] }
 0x432   :  { %1785 = vmatpush1.bf16.msra.mxu0 %v5701_v1  ;;  %1826 = vmatpush1.bf16.msra.mxu1 %v5702_v50  ;;  %v5712_v1 = vld [vmem:[#allocation78_spill] sm:$0xff]  ;;  %v5713_v50 = vld [vmem:[#allocation79_spill] sm:$0xff] }
 0x433   :  { %1786 = vmatprep.subr.bf16.mxu0 %v5703_v60  ;;  %1827 = vmatprep.subr.bf16.mxu1 %v5704_v29  ;;  %v5714_v60 = vld [vmem:[#allocation80_spill] sm:$0xff]  ;;  %v5715_v29 = vld [vmem:[#allocation81_spill] sm:$0xff] }
 0x436   :  { %1787 = vmatpush1.bf16.msra.mxu0 %v5705_v32  ;;  %1828 = vmatpush1.bf16.msra.mxu1 %v5706_v9  ;;  %v5716_v32 = vld [vmem:[#allocation82_spill] sm:$0xff] }
 0x437   :  { %1788 = vmatprep.subr.bf16.mxu0 %v5707_v30  ;;  %1829 = vmatprep.subr.bf16.mxu1 %v5708_v31 }
 0x43a   :  { %1789 = vmatpush1.bf16.msra.mxu0 %v5709_v43  ;;  %1830 = vmatpush1.bf16.msra.mxu1 %v5710_v35 }
 0x43b   :  { %1790 = vmatprep.subr.bf16.mxu0 %v5711_v45  ;;  %1831 = vmatprep.subr.bf16.mxu1 %v5712_v1 }
 0x43e   :  { %1791 = vmatpush1.bf16.msra.mxu0 %v5713_v50  ;;  %1832 = vmatpush1.bf16.msra.mxu1 %v5714_v60 }
 0x43f   :  { %1858 = vmatprep.subr.bf16.mxu0 %v5715_v29  ;;  %1899 = vmatprep.subr.bf16.mxu1 %v5716_v32 }
 0x4b4   :  { %v1501_v9 = vpop.f32.mrb[44].mxu0  ;;  %v1542_v30 = vpop.f32.mrb[44].mxu1 }
 0x4b5   :  { %v1503_v20 = vpop.f32.mrb[45].mxu0  ;;  %v1544_v31 = vpop.f32.mrb[45].mxu1 }
 0x4b6   :  { %v1505_v27 = vpop.f32.mrb[46].mxu0  ;;  %v1546_v43 = vpop.f32.mrb[46].mxu1 }
 0x4b7   :  { %v1506_v21 = vpop.f32.mrb[47].mxu0  ;;  %v1547_v35 = vpop.f32.mrb[47].mxu1 }
 0x4d4   :  { %v1583_v17 = vpop.f32.mrb[48].mxu0  ;;  %v1624_v45 = vpop.f32.mrb[48].mxu1 }
 0x4d5   :  { %v1584_v16 = vadd.f32 %v1583_v17, %v1501_v9  ;;  %v1625_v1 = vadd.f32 %v1624_v45, %v1542_v30  ;;  %v1585_v15 = vpop.f32.mrb[49].mxu0  ;;  %v1626_v50 = vpop.f32.mrb[49].mxu1  ;;  %v5718_v9 = vld [vmem:[#allocation124_spill] sm:$0xff] }
 0x4d6   :  { %v1586_v8 = vadd.f32 %v1585_v15, %v1503_v20  ;;  %v1627_v60 = vadd.f32 %v1626_v50, %v1544_v31  ;;  %v1587_v4 = vpop.f32.mrb[50].mxu0  ;;  %v1628_v29 = vpop.f32.mrb[50].mxu1 }
 0x4d7   :  { %v1631_v32 = vadd.f32 %v1584_v16, %v4441_v37  ;;  %v1588_v3 = vpop.f32.mrb[51].mxu0  ;;  %v1629_v63 = vpop.f32.mrb[51].mxu1  ;;  %v1633_v30 = vadd.f32 %v1625_v1, %v4456_v48 }
 0x4d8   :  { %v1632_v57 = vadd.f32 %v1586_v8, %v4445_v10  ;;  %v1634_v21 = vadd.f32 %v1627_v60, %v4451_v47 }
 0x4d9   :  { %v3310_v27 = vmul.f32 -1.442695, %v1631_v32  ;;  %v5717_v32 = vld [vmem:[#allocation121_spill] sm:$0xff] }
 0x4da   :  { %v3311_v43 = vmul.f32 -1.442695, %v1632_v57  ;;  %v3312_v17 = vmul.f32 -1.442695, %v1634_v21 }
 0x4db   :  { %3467 = vpow2.f32 %v3310_v27 }
 0x4dc   :  { %3469 = vpow2.f32 %v3311_v43 }
 0x4dd   :  { %3471 = vpow2.f32 %v3312_v17  ;;  %v5719_v17 = vld [vmem:[#allocation123_spill] sm:$0xff] }
 0x4de   :  { %3473 = vtanh.f32 %v1633_v30 }
 0x4e5   :  { %v3468_v35 = vpop.eup %3467 }
 0x4e6   :  { %v3470_v15 = vpop.eup %3469  ;;  %v1638_v31 = vadd.f32 1.0, %v3468_v35  ;;  %v5720_v35 = vld [vmem:[#allocation125_spill] sm:$0xff] }
 0x4e7   :  { %v1644_v4 = vadd.f32 1.0, %v3470_v15  ;;  %v3472_v63 = vpop.eup %3471 }
 0x4e8   :  { %3475 = vrcp.f32 %v1638_v31  ;;  %v3474_v3 = vpop.eup %3473  ;;  %v1651_v45 = vadd.f32 1.0, %v3472_v63 }
 0x4e9   :  { %3477 = vrcp.f32 %v1644_v4 }
 0x4ea   :  { %3479 = vrcp.f32 %v1651_v45 }
 0x4f2   :  { %v3476_v8 = vpop.eup %3475 }
 0x4f3   :  { %v3478_v16 = vpop.eup %3477  ;;  %v1655_v57 = vmul.f32 %v3476_v8, %v3474_v3 }
 0x4f4   :  { %v1654_v50 = vmul.f32 %v3478_v16, %v4579_v22  ;;  %v1698_v60 = vpop.f32.mrb[52].mxu0  ;;  %v1739_v20 = vpop.f32.mrb[52].mxu1 }
 0x4f5   :  { %v1746_v1 = vadd.f32 %v1698_v60, %v5717_v32  ;;  %v1748_v29 = vadd.f32 %v1739_v20, %v5718_v9  ;;  %v1700_v27 = vpop.f32.mrb[53].mxu0  ;;  %v1741_v43 = vpop.f32.mrb[53].mxu1 }
 0x4f6   :  { %v4697_v21 = vadd.f32 %v1655_v57, %v1654_v50  ;;  %v1747_v30 = vadd.f32 %v1700_v27, %v5719_v17  ;;  %v1749_v15 = vadd.f32 %v1741_v43, %v5720_v35  ;;  %v1702_v31 = vpop.f32.mrb[54].mxu0  ;;  %v1743_v4 = vpop.f32.mrb[54].mxu1 }
 0x4f7   :  { %v3313_v63 = vmul.f32 -1.442695, %v1746_v1  ;;  %v1703_v3 = vpop.f32.mrb[55].mxu0  ;;  %v1744_v22 = vpop.f32.mrb[55].mxu1 }
 0x4f8   :  { %v3314_v8 = vmul.f32 -1.442695, %v1747_v30  ;;  %3481 = vtanh.f32 %v4697_v21  ;;  %v3315_v16 = vmul.f32 -1.442695, %v1749_v15  ;;  %v3480_v60 = vpop.eup %3479  ;;  %v5721_v22 = vld [vmem:[#allocation22_spill] sm:$0xff] }
 0x4f9   :  { %3483 = vpow2.f32 %v3313_v63 }
 0x4fa   :  { %3485 = vpow2.f32 %v3314_v8  ;;  %v5722_v8 = vld [vmem:[#allocation23_spill] sm:$0xff] }
 0x4fb   :  { %3487 = vpow2.f32 %v3315_v16  ;;  %v5723_v16 = vld [vmem:[#allocation24_spill] sm:$0xff] }
 0x4fc   :  { %3489 = vtanh.f32 %v1748_v29 }
 0x502   :  { %v3482_v20 = vpop.eup %3481 }
 0x503   :  { %v3484_v57 = vpop.eup %3483  ;;  %v1658_v50 = vmul.f32 %v3482_v20, %v3480_v60  ;;  %v5724_v60 = vld [vmem:[#allocation25_spill] sm:$0xff]  ;;  %v5725_v20 = vld [vmem:[#allocation26_spill] sm:$0xff] }
 0x504   :  { %v3486_v32 = vpop.eup %3485  ;;  %v1753_v9 = vadd.f32 1.0, %v3484_v57  ;;  %v5726_v57 = vld [vmem:[#allocation27_spill] sm:$0xff] }
 0x505   :  { %v1759_v27 = vadd.f32 1.0, %v3486_v32  ;;  %v1775_v43 = vpack.c.bf16 %v1658_v50, %v1658_v50  ;;  %v3488_v45 = vpop.eup %3487  ;;  %v5727_v50 = vld [vmem:[#allocation28_spill] sm:$0xff]  ;;  %v5728_v32 = vld [vmem:[#allocation29_spill] sm:$0xff] }
 0x506   :  { %3491 = vrcp.f32 %v1753_v9  ;;  %v3490_v1 = vpop.eup %3489  ;;  %v1766_v35 = vadd.f32 1.0, %v3488_v45  ;;  %v5729_v9 = vld [vmem:[#allocation30_spill] sm:$0xff]  ;;  %v5732_v45 = vld [vmem:[#allocation33_spill] sm:$0xff] }
 0x507   :  { %3493 = vrcp.f32 %v1759_v27  ;;  %1809 = vmatmul.mubr.bf16.vlgmr.msra.gmra.mrb[56].mxu0 %v1775_v43  ;;  %1850 = vmatmul.mubr.bf16.vlgmr.msra.gmra.mrb[56].mxu1 %v1775_v43  ;;  %v5730_v27 = vld [vmem:[#allocation31_spill] sm:$0xff]  ;;  %v5731_v43 = vld [vmem:[#allocation32_spill] sm:$0xff] }
 0x508   :  { %1859 = vmatpush1.bf16.msra.mxu0 %v5591_v56  ;;  %1900 = vmatpush1.bf16.msra.mxu1 %v5592_v34  ;;  %3495 = vrcp.f32 %v1766_v35  ;;  %v5737_v35 = vld [vmem:[#allocation38_spill] sm:$0xff] }
 0x509   :  { %1860 = vmatprep.subr.bf16.mxu0 %v5593_v39  ;;  %1901 = vmatprep.subr.bf16.mxu1 %v5594_v13 }
 0x50a   :  { %1890 = vmatprep.mubr.bf16.mxu0 %v5496_v23  ;;  %1931 = vmatprep.mubr.bf16.mxu1 %v5496_v23 }
 0x50c   :  { %1861 = vmatpush1.bf16.msra.mxu0 %v5595_v61  ;;  %1902 = vmatpush1.bf16.msra.mxu1 %v5596_v7 }
 0x50d   :  { %1862 = vmatprep.subr.bf16.mxu0 %v5656_v49  ;;  %1903 = vmatprep.subr.bf16.mxu1 %v5657_v42 }
 0x510   :  { %v3492_v29 = vpop.eup %3491  ;;  %1863 = vmatpush1.bf16.msra.mxu0 %v5658_v54  ;;  %1904 = vmatpush1.bf16.msra.mxu1 %v5600_v12 }
 0x511   :  { %v3494_v17 = vpop.eup %3493  ;;  %v1770_v30 = vmul.f32 %v3492_v29, %v3490_v1  ;;  %1864 = vmatprep.subr.bf16.mxu0 %v5601_v18  ;;  %1905 = vmatprep.subr.bf16.mxu1 %v5602_v0  ;;  %v5733_v1 = vld [vmem:[#allocation34_spill] sm:$0xff]  ;;  %v5734_v29 = vld [vmem:[#allocation35_spill] sm:$0xff] }
 0x512   :  { %v1769_v15 = vmul.f32 %v3494_v17, %v4599_v33  ;;  %v3496_v33 = vpop.eup %3495  ;;  %v5735_v17 = vld [vmem:[#allocation36_spill] sm:$0xff] }
 0x514   :  { %v4717_v31 = vadd.f32 %v1770_v30, %v1769_v15  ;;  %1865 = vmatpush1.bf16.msra.mxu0 %v5660_v2  ;;  %1906 = vmatpush1.bf16.msra.mxu1 %v5661_v19  ;;  %v5736_v30 = vld [vmem:[#allocation37_spill] sm:$0xff]  ;;  %v5738_v15 = vld [vmem:[#allocation39_spill] sm:$0xff] }
 0x515   :  { %1866 = vmatprep.subr.bf16.mxu0 %v5662_v41  ;;  %1907 = vmatprep.subr.bf16.mxu1 %v5663_v5 }
 0x516   :  { %3497 = vtanh.f32 %v4717_v31 }
 0x518   :  { %1867 = vmatpush1.bf16.msra.mxu0 %v5664_v46  ;;  %1908 = vmatpush1.bf16.msra.mxu1 %v5665_v58 }
 0x519   :  { %1868 = vmatprep.subr.bf16.mxu0 %v5666_v24  ;;  %1909 = vmatprep.subr.bf16.mxu1 %v5667_v62 }
 0x51c   :  { %1869 = vmatpush1.bf16.msra.mxu0 %v5668_v25  ;;  %1910 = vmatpush1.bf16.msra.mxu1 %v5669_v36 }
 0x51d   :  { %1870 = vmatprep.subr.bf16.mxu0 %v5670_v28  ;;  %1911 = vmatprep.subr.bf16.mxu1 %v5615_v59 }
 0x520   :  { %v3498_v4 = vpop.eup %3497  ;;  %1871 = vmatpush1.bf16.msra.mxu0 %v5616_v6  ;;  %1912 = vmatpush1.bf16.msra.mxu1 %v5617_v55 }
 0x521   :  { %1872 = vmatprep.subr.bf16.mxu0 %v5618_v14  ;;  %1913 = vmatprep.subr.bf16.mxu1 %v5619_v11  ;;  %v1773_v63 = vmul.f32 %v3498_v4, %v3496_v33  ;;  %v5739_v33 = vld [vmem:[#allocation40_spill] sm:$0xff]  ;;  %v5740_v4 = vld [vmem:[#allocation41_spill] sm:$0xff] }
 0x523   :  { %v1774_v3 = vpack.c.bf16 %v1773_v63, %v1773_v63  ;;  %v5741_v63 = vld [vmem:[#allocation42_spill] sm:$0xff] }
 0x524   :  { %1873 = vmatpush1.bf16.msra.mxu0 %v5620_v26  ;;  %1914 = vmatpush1.bf16.msra.mxu1 %v5621_v38 }
 0x525   :  { %1973 = vmatprep.subr.bf16.mxu0 %v5622_v40  ;;  %2014 = vmatprep.subr.bf16.mxu1 %v5623_v44 }
 0x527   :  { %1891 = vmatmul.mubr.bf16.vlgmr.msra.gmra.mrb[60].mxu0 %v1774_v3  ;;  %1932 = vmatmul.mubr.bf16.vlgmr.msra.gmra.mrb[60].mxu1 %v1774_v3 }
 0x528   :  { %1974 = vmatpush1.bf16.msra.mxu0 %v3967_v51  ;;  %2015 = vmatpush1.bf16.msra.mxu1 %v3970_v52 }
 0x529   :  { %1975 = vmatprep.subr.bf16.mxu0 %v3972_v53  ;;  %2016 = vmatprep.subr.bf16.mxu1 %v5721_v22 }
 0x52a   :  { %2005 = vmatprep.mubr.bf16.mxu0 %v5496_v23  ;;  %2046 = vmatprep.mubr.bf16.mxu1 %v5496_v23 }
 0x52c   :  { %1976 = vmatpush1.bf16.msra.mxu0 %v5722_v8  ;;  %2017 = vmatpush1.bf16.msra.mxu1 %v5723_v16 }
 0x52d   :  { %1977 = vmatprep.subr.bf16.mxu0 %v5724_v60  ;;  %2018 = vmatprep.subr.bf16.mxu1 %v5725_v20 }
 0x530   :  { %1978 = vmatpush1.bf16.msra.mxu0 %v5726_v57  ;;  %2019 = vmatpush1.bf16.msra.mxu1 %v5727_v50 }
 0x531   :  { %1979 = vmatprep.subr.bf16.mxu0 %v5728_v32  ;;  %2020 = vmatprep.subr.bf16.mxu1 %v5729_v9 }
 0x534   :  { %1980 = vmatpush1.bf16.msra.mxu0 %v5730_v27  ;;  %2021 = vmatpush1.bf16.msra.mxu1 %v5731_v43  ;;  %v5742_v43 = vld [vmem:[#allocation43_spill] sm:$0xff] }
 0x535   :  { %1981 = vmatprep.subr.bf16.mxu0 %v5732_v45  ;;  %2022 = vmatprep.subr.bf16.mxu1 %v5733_v1  ;;  %v5743_v45 = vld [vmem:[#allocation44_spill] sm:$0xff]  ;;  %v5744_v1 = vld [vmem:[#allocation45_spill] sm:$0xff] }
 0x538   :  { %1982 = vmatpush1.bf16.msra.mxu0 %v5734_v29  ;;  %2023 = vmatpush1.bf16.msra.mxu1 %v5735_v17  ;;  %v5745_v29 = vld [vmem:[#allocation46_spill] sm:$0xff]  ;;  %v5746_v17 = vld [vmem:[#allocation47_spill] sm:$0xff] }
 0x539   :  { %1983 = vmatprep.subr.bf16.mxu0 %v5736_v30  ;;  %2024 = vmatprep.subr.bf16.mxu1 %v5737_v35  ;;  %v5747_v30 = vld [vmem:[#allocation48_spill] sm:$0xff]  ;;  %v5748_v35 = vld [vmem:[#allocation49_spill] sm:$0xff] }
 0x53c   :  { %1984 = vmatpush1.bf16.msra.mxu0 %v5738_v15  ;;  %2025 = vmatpush1.bf16.msra.mxu1 %v5739_v33  ;;  %v5749_v15 = vld [vmem:[#allocation50_spill] sm:$0xff] }
 0x53d   :  { %1985 = vmatprep.subr.bf16.mxu0 %v5740_v4  ;;  %2026 = vmatprep.subr.bf16.mxu1 %v5741_v63  ;;  %v5750_v4 = vld [vmem:[#allocation51_spill] sm:$0xff]  ;;  %v5751_v63 = vld [vmem:[#allocation52_spill] sm:$0xff] }
 0x540   :  { %1986 = vmatpush1.bf16.msra.mxu0 %v5742_v43  ;;  %2027 = vmatpush1.bf16.msra.mxu1 %v5743_v45  ;;  %v5752_v43 = vld [vmem:[#allocation53_spill] sm:$0xff]  ;;  %v5753_v45 = vld [vmem:[#allocation54_spill] sm:$0xff] }
 0x541   :  { %1987 = vmatprep.subr.bf16.mxu0 %v5744_v1  ;;  %2028 = vmatprep.subr.bf16.mxu1 %v5745_v29  ;;  %v5763_v29 = vld [vmem:[#allocation64_spill] sm:$0xff]  ;;  %v5764_v1 = vld [vmem:[#allocation65_spill] sm:$0xff] }
 0x544   :  { %1988 = vmatpush1.bf16.msra.mxu0 %v5746_v17  ;;  %2029 = vmatpush1.bf16.msra.mxu1 %v5747_v30  ;;  %v5754_v17 = vld [vmem:[#allocation55_spill] sm:$0xff]  ;;  %v5755_v30 = vld [vmem:[#allocation56_spill] sm:$0xff] }
 0x545   :  { %2085 = vmatprep.subr.bf16.mxu0 %v5748_v35  ;;  %2126 = vmatprep.subr.bf16.mxu1 %v5749_v15  ;;  %v5756_v35 = vld [vmem:[#allocation57_spill] sm:$0xff]  ;;  %v5757_v15 = vld [vmem:[#allocation58_spill] sm:$0xff] }
 0x547   :  { %2006 = vmatmul.mubr.bf16.vlgmr.msra.gmra.mrb[64].mxu0 %v1774_v3  ;;  %2047 = vmatmul.mubr.bf16.vlgmr.msra.gmra.mrb[64].mxu1 %v1774_v3  ;;  %v5758_v3 = vld [vmem:[#allocation59_spill] sm:$0xff] }
 0x548   :  { %2086 = vmatpush1.bf16.msra.mxu0 %v5750_v4  ;;  %2127 = vmatpush1.bf16.msra.mxu1 %v5751_v63  ;;  %v5759_v4 = vld [vmem:[#allocation60_spill] sm:$0xff]  ;;  %v5760_v63 = vld [vmem:[#allocation61_spill] sm:$0xff] }
 0x549   :  { %2087 = vmatprep.subr.bf16.mxu0 %v5752_v43  ;;  %2128 = vmatprep.subr.bf16.mxu1 %v5753_v45  ;;  %v5761_v43 = vld [vmem:[#allocation62_spill] sm:$0xff]  ;;  %v5762_v45 = vld [vmem:[#allocation63_spill] sm:$0xff] }
 0x54a   :  { %2117 = vmatprep.mubr.bf16.mxu0 %v5496_v23  ;;  %2158 = vmatprep.mubr.bf16.mxu1 %v5496_v23 }
 0x54c   :  { %2088 = vmatpush1.bf16.msra.mxu0 %v5754_v17  ;;  %2129 = vmatpush1.bf16.msra.mxu1 %v5755_v30  ;;  %v5765_v17 = vld [vmem:[#allocation66_spill] sm:$0xff]  ;;  %v5766_v30 = vld [vmem:[#allocation67_spill] sm:$0xff] }
 0x54d   :  { %2089 = vmatprep.subr.bf16.mxu0 %v5756_v35  ;;  %2130 = vmatprep.subr.bf16.mxu1 %v5757_v15  ;;  %v5767_v35 = vld [vmem:[#allocation68_spill] sm:$0xff]  ;;  %v5768_v15 = vld [vmem:[#allocation69_spill] sm:$0xff] }
 0x550   :  { %2090 = vmatpush1.bf16.msra.mxu0 %v5758_v3  ;;  %2131 = vmatpush1.bf16.msra.mxu1 %v5759_v4  ;;  %v5769_v3 = vld [vmem:[#allocation70_spill] sm:$0xff]  ;;  %v5770_v4 = vld [vmem:[#allocation71_spill] sm:$0xff] }
 0x551   :  { %2091 = vmatprep.subr.bf16.mxu0 %v5760_v63  ;;  %2132 = vmatprep.subr.bf16.mxu1 %v5761_v43  ;;  %v5771_v63 = vld [vmem:[#allocation72_spill] sm:$0xff]  ;;  %v5772_v43 = vld [vmem:[#allocation73_spill] sm:$0xff] }
 0x554   :  { %2092 = vmatpush1.bf16.msra.mxu0 %v5762_v45  ;;  %2133 = vmatpush1.bf16.msra.mxu1 %v5763_v29  ;;  %v5773_v45 = vld [vmem:[#allocation74_spill] sm:$0xff]  ;;  %v5774_v29 = vld [vmem:[#allocation75_spill] sm:$0xff] }
 0x555   :  { %2093 = vmatprep.subr.bf16.mxu0 %v5764_v1  ;;  %2134 = vmatprep.subr.bf16.mxu1 %v5765_v17  ;;  %v5775_v1 = vld [vmem:[#allocation76_spill] sm:$0xff]  ;;  %v5776_v17 = vld [vmem:[#allocation77_spill] sm:$0xff] }
 0x558   :  { %2094 = vmatpush1.bf16.msra.mxu0 %v5766_v30  ;;  %2135 = vmatpush1.bf16.msra.mxu1 %v5767_v35  ;;  %v5777_v30 = vld [vmem:[#allocation78_spill] sm:$0xff]  ;;  %v5778_v35 = vld [vmem:[#allocation79_spill] sm:$0xff] }
 0x559   :  { %2095 = vmatprep.subr.bf16.mxu0 %v5768_v15  ;;  %2136 = vmatprep.subr.bf16.mxu1 %v5769_v3  ;;  %v5779_v15 = vld [vmem:[#allocation80_spill] sm:$0xff]  ;;  %v5780_v3 = vld [vmem:[#allocation81_spill] sm:$0xff] }
 0x55c   :  { %2096 = vmatpush1.bf16.msra.mxu0 %v5770_v4  ;;  %2137 = vmatpush1.bf16.msra.mxu1 %v5771_v63  ;;  %v5781_v4 = vld [vmem:[#allocation82_spill] sm:$0xff] }
 0x55d   :  { %2097 = vmatprep.subr.bf16.mxu0 %v5772_v43  ;;  %2138 = vmatprep.subr.bf16.mxu1 %v5773_v45 }
 0x560   :  { %2098 = vmatpush1.bf16.msra.mxu0 %v5774_v29  ;;  %2139 = vmatpush1.bf16.msra.mxu1 %v5775_v1 }
 0x561   :  { %2099 = vmatprep.subr.bf16.mxu0 %v5776_v17  ;;  %2140 = vmatprep.subr.bf16.mxu1 %v5777_v30 }
 0x564   :  { %2100 = vmatpush1.bf16.msra.mxu0 %v5778_v35  ;;  %2141 = vmatpush1.bf16.msra.mxu1 %v5779_v15 }
 0x565   :  { %2167 = vmatprep.subr.bf16.mxu0 %v5780_v3  ;;  %2208 = vmatprep.subr.bf16.mxu1 %v5781_v4 }
 0x5da   :  { %v1810_v63 = vpop.f32.mrb[56].mxu0  ;;  %v1851_v43 = vpop.f32.mrb[56].mxu1 }
 0x5db   :  { %v1812_v33 = vpop.f32.mrb[57].mxu0  ;;  %v1853_v45 = vpop.f32.mrb[57].mxu1 }
 0x5dc   :  { %v1814_v27 = vpop.f32.mrb[58].mxu0  ;;  %v1855_v29 = vpop.f32.mrb[58].mxu1 }
 0x5dd   :  { %v1815_v9 = vpop.f32.mrb[59].mxu0  ;;  %v1856_v1 = vpop.f32.mrb[59].mxu1 }
 0x5fa   :  { %v1892_v32 = vpop.f32.mrb[60].mxu0  ;;  %v1933_v17 = vpop.f32.mrb[60].mxu1 }
 0x5fb   :  { %v1893_v50 = vadd.f32 %v1892_v32, %v1810_v63  ;;  %v1934_v30 = vadd.f32 %v1933_v17, %v1851_v43  ;;  %v1894_v57 = vpop.f32.mrb[61].mxu0  ;;  %v1935_v35 = vpop.f32.mrb[61].mxu1  ;;  %v5783_v63 = vld [vmem:[#allocation128_spill] sm:$0xff] }
 0x5fc   :  { %v1895_v20 = vadd.f32 %v1894_v57, %v1812_v33  ;;  %v1936_v15 = vadd.f32 %v1935_v35, %v1853_v45  ;;  %v1896_v60 = vpop.f32.mrb[62].mxu0  ;;  %v1937_v3 = vpop.f32.mrb[62].mxu1 }
 0x5fd   :  { %v1940_v4 = vadd.f32 %v1893_v50, %v4441_v37  ;;  %v1897_v16 = vpop.f32.mrb[63].mxu0  ;;  %v1938_v8 = vpop.f32.mrb[63].mxu1  ;;  %v1942_v43 = vadd.f32 %v1934_v30, %v4456_v48 }
 0x5fe   :  { %v1941_v22 = vadd.f32 %v1895_v20, %v4445_v10  ;;  %v1943_v9 = vadd.f32 %v1936_v15, %v4451_v47 }
 0x5ff   :  { %v3316_v27 = vmul.f32 -1.442695, %v1940_v4  ;;  %v5782_v4 = vld [vmem:[#allocation126_spill] sm:$0xff] }
 0x600   :  { %v3317_v29 = vmul.f32 -1.442695, %v1941_v22  ;;  %v3318_v32 = vmul.f32 -1.442695, %v1943_v9 }
 0x601   :  { %3499 = vpow2.f32 %v3316_v27 }
 0x602   :  { %3501 = vpow2.f32 %v3317_v29 }
 0x603   :  { %3503 = vpow2.f32 %v3318_v32  ;;  %v5784_v32 = vld [vmem:[#allocation127_spill] sm:$0xff] }
 0x604   :  { %3505 = vtanh.f32 %v1942_v43 }
 0x60b   :  { %v3500_v1 = vpop.eup %3499 }
 0x60c   :  { %v3502_v57 = vpop.eup %3501  ;;  %v1947_v45 = vadd.f32 1.0, %v3500_v1  ;;  %v5785_v1 = vld [vmem:[#allocation130_spill] sm:$0xff] }
 0x60d   :  { %v1953_v60 = vadd.f32 1.0, %v3502_v57  ;;  %v3504_v8 = vpop.eup %3503 }
 0x60e   :  { %3507 = vrcp.f32 %v1947_v45  ;;  %v3506_v16 = vpop.eup %3505  ;;  %v1960_v17 = vadd.f32 1.0, %v3504_v8 }
 0x60f   :  { %3509 = vrcp.f32 %v1953_v60 }
 0x610   :  { %3511 = vrcp.f32 %v1960_v17 }
 0x618   :  { %v3508_v20 = vpop.eup %3507 }
 0x619   :  { %v3510_v50 = vpop.eup %3509  ;;  %v1964_v22 = vmul.f32 %v3508_v20, %v3506_v16 }
 0x61a   :  { %v1963_v35 = vmul.f32 %v3510_v50, %v4697_v21  ;;  %v2007_v15 = vpop.f32.mrb[64].mxu0  ;;  %v2048_v33 = vpop.f32.mrb[64].mxu1 }
 0x61b   :  { %v2055_v30 = vadd.f32 %v2007_v15, %v5782_v4  ;;  %v2057_v3 = vadd.f32 %v2048_v33, %v5783_v63  ;;  %v2009_v27 = vpop.f32.mrb[65].mxu0  ;;  %v2050_v29 = vpop.f32.mrb[65].mxu1 }
 0x61c   :  { %v4815_v9 = vadd.f32 %v1964_v22, %v1963_v35  ;;  %v2056_v43 = vadd.f32 %v2009_v27, %v5784_v32  ;;  %v2058_v57 = vadd.f32 %v2050_v29, %v5785_v1  ;;  %v2011_v45 = vpop.f32.mrb[66].mxu0  ;;  %v2052_v60 = vpop.f32.mrb[66].mxu1 }
 0x61d   :  { %v3319_v8 = vmul.f32 -1.442695, %v2055_v30  ;;  %v2012_v16 = vpop.f32.mrb[67].mxu0  ;;  %v2053_v21 = vpop.f32.mrb[67].mxu1 }
 0x61e   :  { %v3320_v20 = vmul.f32 -1.442695, %v2056_v43  ;;  %3513 = vtanh.f32 %v4815_v9  ;;  %v3321_v50 = vmul.f32 -1.442695, %v2058_v57  ;;  %v3512_v15 = vpop.eup %3511  ;;  %v5786_v21 = vld [vmem:[#allocation22_spill] sm:$0xff] }
 0x61f   :  { %3515 = vpow2.f32 %v3319_v8 }
 0x620   :  { %3517 = vpow2.f32 %v3320_v20  ;;  %v5787_v20 = vld [vmem:[#allocation23_spill] sm:$0xff] }
 0x621   :  { %3519 = vpow2.f32 %v3321_v50  ;;  %v5788_v50 = vld [vmem:[#allocation24_spill] sm:$0xff] }
 0x622   :  { %3521 = vtanh.f32 %v2057_v3 }
 0x628   :  { %v3514_v33 = vpop.eup %3513 }
 0x629   :  { %v3516_v22 = vpop.eup %3515  ;;  %v1967_v35 = vmul.f32 %v3514_v33, %v3512_v15  ;;  %v5789_v15 = vld [vmem:[#allocation25_spill] sm:$0xff]  ;;  %v5790_v33 = vld [vmem:[#allocation26_spill] sm:$0xff] }
 0x62a   :  { %v3518_v4 = vpop.eup %3517  ;;  %v2062_v63 = vadd.f32 1.0, %v3516_v22  ;;  %v5791_v22 = vld [vmem:[#allocation27_spill] sm:$0xff] }
 0x62b   :  { %v2068_v27 = vadd.f32 1.0, %v3518_v4  ;;  %v2084_v29 = vpack.c.bf16 %v1967_v35, %v1967_v35  ;;  %v3520_v17 = vpop.eup %3519  ;;  %v5792_v35 = vld [vmem:[#allocation28_spill] sm:$0xff]  ;;  %v5793_v4 = vld [vmem:[#allocation29_spill] sm:$0xff] }
 0x62c   :  { %3523 = vrcp.f32 %v2062_v63  ;;  %v3522_v30 = vpop.eup %3521  ;;  %v2075_v1 = vadd.f32 1.0, %v3520_v17  ;;  %v5794_v63 = vld [vmem:[#allocation30_spill] sm:$0xff]  ;;  %v5797_v17 = vld [vmem:[#allocation33_spill] sm:$0xff] }
 0x62d   :  { %3525 = vrcp.f32 %v2068_v27  ;;  %2118 = vmatmul.mubr.bf16.vlgmr.msra.gmra.mrb[68].mxu0 %v2084_v29  ;;  %2159 = vmatmul.mubr.bf16.vlgmr.msra.gmra.mrb[68].mxu1 %v2084_v29  ;;  %v5795_v27 = vld [vmem:[#allocation31_spill] sm:$0xff]  ;;  %v5796_v29 = vld [vmem:[#allocation32_spill] sm:$0xff] }
 0x62e   :  { %2168 = vmatpush1.bf16.msra.mxu0 %v5591_v56  ;;  %2209 = vmatpush1.bf16.msra.mxu1 %v5592_v34  ;;  %3527 = vrcp.f32 %v2075_v1  ;;  %v5802_v1 = vld [vmem:[#allocation38_spill] sm:$0xff] }
 0x62f   :  { %2169 = vmatprep.subr.bf16.mxu0 %v5593_v39  ;;  %2210 = vmatprep.subr.bf16.mxu1 %v5594_v13 }
 0x630   :  { %2199 = vmatprep.mubr.bf16.mxu0 %v5496_v23  ;;  %2240 = vmatprep.mubr.bf16.mxu1 %v5496_v23 }
 0x632   :  { %2170 = vmatpush1.bf16.msra.mxu0 %v5595_v61  ;;  %2211 = vmatpush1.bf16.msra.mxu1 %v5596_v7 }
 0x633   :  { %2171 = vmatprep.subr.bf16.mxu0 %v5656_v49  ;;  %2212 = vmatprep.subr.bf16.mxu1 %v5657_v42 }
 0x636   :  { %v3524_v3 = vpop.eup %3523  ;;  %2172 = vmatpush1.bf16.msra.mxu0 %v5658_v54  ;;  %2213 = vmatpush1.bf16.msra.mxu1 %v5600_v12 }
 0x637   :  { %v3526_v32 = vpop.eup %3525  ;;  %v2079_v43 = vmul.f32 %v3524_v3, %v3522_v30  ;;  %2173 = vmatprep.subr.bf16.mxu0 %v5601_v18  ;;  %2214 = vmatprep.subr.bf16.mxu1 %v5602_v0  ;;  %v5798_v30 = vld [vmem:[#allocation34_spill] sm:$0xff]  ;;  %v5799_v3 = vld [vmem:[#allocation35_spill] sm:$0xff] }
 0x638   :  { %v2078_v57 = vmul.f32 %v3526_v32, %v4717_v31  ;;  %v3528_v31 = vpop.eup %3527  ;;  %v5800_v32 = vld [vmem:[#allocation36_spill] sm:$0xff] }
 0x63a   :  { %v4835_v45 = vadd.f32 %v2079_v43, %v2078_v57  ;;  %2174 = vmatpush1.bf16.msra.mxu0 %v5660_v2  ;;  %2215 = vmatpush1.bf16.msra.mxu1 %v5661_v19  ;;  %v5801_v43 = vld [vmem:[#allocation37_spill] sm:$0xff]  ;;  %v5803_v57 = vld [vmem:[#allocation39_spill] sm:$0xff] }
 0x63b   :  { %2175 = vmatprep.subr.bf16.mxu0 %v5662_v41  ;;  %2216 = vmatprep.subr.bf16.mxu1 %v5663_v5 }
 0x63c   :  { %3529 = vtanh.f32 %v4835_v45 }
 0x63e   :  { %2176 = vmatpush1.bf16.msra.mxu0 %v5664_v46  ;;  %2217 = vmatpush1.bf16.msra.mxu1 %v5665_v58 }
 0x63f   :  { %2177 = vmatprep.subr.bf16.mxu0 %v5666_v24  ;;  %2218 = vmatprep.subr.bf16.mxu1 %v5667_v62 }
 0x642   :  { %2178 = vmatpush1.bf16.msra.mxu0 %v5668_v25  ;;  %2219 = vmatpush1.bf16.msra.mxu1 %v5669_v36 }
 0x643   :  { %2179 = vmatprep.subr.bf16.mxu0 %v5670_v28  ;;  %2220 = vmatprep.subr.bf16.mxu1 %v5615_v59 }
 0x646   :  { %v3530_v60 = vpop.eup %3529  ;;  %2180 = vmatpush1.bf16.msra.mxu0 %v5616_v6  ;;  %2221 = vmatpush1.bf16.msra.mxu1 %v5617_v55 }
 0x647   :  { %2181 = vmatprep.subr.bf16.mxu0 %v5618_v14  ;;  %2222 = vmatprep.subr.bf16.mxu1 %v5619_v11  ;;  %v2082_v8 = vmul.f32 %v3530_v60, %v3528_v31  ;;  %v5804_v31 = vld [vmem:[#allocation40_spill] sm:$0xff]  ;;  %v5805_v60 = vld [vmem:[#allocation41_spill] sm:$0xff] }
 0x649   :  { %v2083_v16 = vpack.c.bf16 %v2082_v8, %v2082_v8  ;;  %v5806_v8 = vld [vmem:[#allocation42_spill] sm:$0xff] }
 0x64a   :  { %2182 = vmatpush1.bf16.msra.mxu0 %v5620_v26  ;;  %2223 = vmatpush1.bf16.msra.mxu1 %v5621_v38 }
 0x64b   :  { %2282 = vmatprep.subr.bf16.mxu0 %v5622_v40  ;;  %2323 = vmatprep.subr.bf16.mxu1 %v5623_v44 }
 0x64d   :  { %2200 = vmatmul.mubr.bf16.vlgmr.msra.gmra.mrb[72].mxu0 %v2083_v16  ;;  %2241 = vmatmul.mubr.bf16.vlgmr.msra.gmra.mrb[72].mxu1 %v2083_v16 }
 0x64e   :  { %2283 = vmatpush1.bf16.msra.mxu0 %v3967_v51  ;;  %2324 = vmatpush1.bf16.msra.mxu1 %v3970_v52 }
 0x64f   :  { %2284 = vmatprep.subr.bf16.mxu0 %v3972_v53  ;;  %2325 = vmatprep.subr.bf16.mxu1 %v5786_v21 }
 0x650   :  { %2314 = vmatprep.mubr.bf16.mxu0 %v5496_v23  ;;  %2355 = vmatprep.mubr.bf16.mxu1 %v5496_v23 }
 0x652   :  { %2285 = vmatpush1.bf16.msra.mxu0 %v5787_v20  ;;  %2326 = vmatpush1.bf16.msra.mxu1 %v5788_v50 }
 0x653   :  { %2286 = vmatprep.subr.bf16.mxu0 %v5789_v15  ;;  %2327 = vmatprep.subr.bf16.mxu1 %v5790_v33 }
 0x656   :  { %2287 = vmatpush1.bf16.msra.mxu0 %v5791_v22  ;;  %2328 = vmatpush1.bf16.msra.mxu1 %v5792_v35 }
 0x657   :  { %2288 = vmatprep.subr.bf16.mxu0 %v5793_v4  ;;  %2329 = vmatprep.subr.bf16.mxu1 %v5794_v63 }
 0x65a   :  { %2289 = vmatpush1.bf16.msra.mxu0 %v5795_v27  ;;  %2330 = vmatpush1.bf16.msra.mxu1 %v5796_v29  ;;  %v5807_v29 = vld [vmem:[#allocation43_spill] sm:$0xff] }
 0x65b   :  { %2290 = vmatprep.subr.bf16.mxu0 %v5797_v17  ;;  %2331 = vmatprep.subr.bf16.mxu1 %v5798_v30  ;;  %v5808_v17 = vld [vmem:[#allocation44_spill] sm:$0xff]  ;;  %v5809_v30 = vld [vmem:[#allocation45_spill] sm:$0xff] }
 0x65e   :  { %2291 = vmatpush1.bf16.msra.mxu0 %v5799_v3  ;;  %2332 = vmatpush1.bf16.msra.mxu1 %v5800_v32  ;;  %v5810_v3 = vld [vmem:[#allocation46_spill] sm:$0xff]  ;;  %v5811_v32 = vld [vmem:[#allocation47_spill] sm:$0xff] }
 0x65f   :  { %2292 = vmatprep.subr.bf16.mxu0 %v5801_v43  ;;  %2333 = vmatprep.subr.bf16.mxu1 %v5802_v1  ;;  %v5812_v43 = vld [vmem:[#allocation48_spill] sm:$0xff]  ;;  %v5813_v1 = vld [vmem:[#allocation49_spill] sm:$0xff] }
 0x662   :  { %2293 = vmatpush1.bf16.msra.mxu0 %v5803_v57  ;;  %2334 = vmatpush1.bf16.msra.mxu1 %v5804_v31  ;;  %v5814_v57 = vld [vmem:[#allocation50_spill] sm:$0xff] }
 0x663   :  { %2294 = vmatprep.subr.bf16.mxu0 %v5805_v60  ;;  %2335 = vmatprep.subr.bf16.mxu1 %v5806_v8  ;;  %v5815_v60 = vld [vmem:[#allocation51_spill] sm:$0xff]  ;;  %v5816_v8 = vld [vmem:[#allocation52_spill] sm:$0xff] }
 0x666   :  { %2295 = vmatpush1.bf16.msra.mxu0 %v5807_v29  ;;  %2336 = vmatpush1.bf16.msra.mxu1 %v5808_v17  ;;  %v5817_v29 = vld [vmem:[#allocation53_spill] sm:$0xff]  ;;  %v5818_v17 = vld [vmem:[#allocation54_spill] sm:$0xff] }
 0x667   :  { %2296 = vmatprep.subr.bf16.mxu0 %v5809_v30  ;;  %2337 = vmatprep.subr.bf16.mxu1 %v5810_v3  ;;  %v5828_v3 = vld [vmem:[#allocation64_spill] sm:$0xff]  ;;  %v5829_v30 = vld [vmem:[#allocation65_spill] sm:$0xff] }
 0x66a   :  { %2297 = vmatpush1.bf16.msra.mxu0 %v5811_v32  ;;  %2338 = vmatpush1.bf16.msra.mxu1 %v5812_v43  ;;  %v5819_v32 = vld [vmem:[#allocation55_spill] sm:$0xff]  ;;  %v5820_v43 = vld [vmem:[#allocation56_spill] sm:$0xff] }
 0x66b   :  { %2394 = vmatprep.subr.bf16.mxu0 %v5813_v1  ;;  %2435 = vmatprep.subr.bf16.mxu1 %v5814_v57  ;;  %v5821_v1 = vld [vmem:[#allocation57_spill] sm:$0xff]  ;;  %v5822_v57 = vld [vmem:[#allocation58_spill] sm:$0xff] }
 0x66d   :  { %2315 = vmatmul.mubr.bf16.vlgmr.msra.gmra.mrb[76].mxu0 %v2083_v16  ;;  %2356 = vmatmul.mubr.bf16.vlgmr.msra.gmra.mrb[76].mxu1 %v2083_v16  ;;  %v5823_v16 = vld [vmem:[#allocation59_spill] sm:$0xff] }
 0x66e   :  { %2395 = vmatpush1.bf16.msra.mxu0 %v5815_v60  ;;  %2436 = vmatpush1.bf16.msra.mxu1 %v5816_v8  ;;  %v5824_v60 = vld [vmem:[#allocation60_spill] sm:$0xff]  ;;  %v5825_v8 = vld [vmem:[#allocation61_spill] sm:$0xff] }
 0x66f   :  { %2396 = vmatprep.subr.bf16.mxu0 %v5817_v29  ;;  %2437 = vmatprep.subr.bf16.mxu1 %v5818_v17  ;;  %v5826_v29 = vld [vmem:[#allocation62_spill] sm:$0xff]  ;;  %v5827_v17 = vld [vmem:[#allocation63_spill] sm:$0xff] }
 0x670   :  { %2426 = vmatprep.mubr.bf16.mxu0 %v5496_v23  ;;  %2467 = vmatprep.mubr.bf16.mxu1 %v5496_v23 }
 0x672   :  { %2397 = vmatpush1.bf16.msra.mxu0 %v5819_v32  ;;  %2438 = vmatpush1.bf16.msra.mxu1 %v5820_v43  ;;  %v5830_v32 = vld [vmem:[#allocation66_spill] sm:$0xff]  ;;  %v5831_v43 = vld [vmem:[#allocation67_spill] sm:$0xff] }
 0x673   :  { %2398 = vmatprep.subr.bf16.mxu0 %v5821_v1  ;;  %2439 = vmatprep.subr.bf16.mxu1 %v5822_v57  ;;  %v5832_v1 = vld [vmem:[#allocation68_spill] sm:$0xff]  ;;  %v5833_v57 = vld [vmem:[#allocation69_spill] sm:$0xff] }
 0x676   :  { %2399 = vmatpush1.bf16.msra.mxu0 %v5823_v16  ;;  %2440 = vmatpush1.bf16.msra.mxu1 %v5824_v60  ;;  %v5834_v16 = vld [vmem:[#allocation70_spill] sm:$0xff]  ;;  %v5835_v60 = vld [vmem:[#allocation71_spill] sm:$0xff] }
 0x677   :  { %2400 = vmatprep.subr.bf16.mxu0 %v5825_v8  ;;  %2441 = vmatprep.subr.bf16.mxu1 %v5826_v29  ;;  %v5836_v8 = vld [vmem:[#allocation72_spill] sm:$0xff]  ;;  %v5837_v29 = vld [vmem:[#allocation73_spill] sm:$0xff] }
 0x67a   :  { %2401 = vmatpush1.bf16.msra.mxu0 %v5827_v17  ;;  %2442 = vmatpush1.bf16.msra.mxu1 %v5828_v3  ;;  %v5838_v17 = vld [vmem:[#allocation74_spill] sm:$0xff]  ;;  %v5839_v3 = vld [vmem:[#allocation75_spill] sm:$0xff] }
 0x67b   :  { %2402 = vmatprep.subr.bf16.mxu0 %v5829_v30  ;;  %2443 = vmatprep.subr.bf16.mxu1 %v5830_v32  ;;  %v5840_v30 = vld [vmem:[#allocation76_spill] sm:$0xff]  ;;  %v5841_v32 = vld [vmem:[#allocation77_spill] sm:$0xff] }
 0x67e   :  { %2403 = vmatpush1.bf16.msra.mxu0 %v5831_v43  ;;  %2444 = vmatpush1.bf16.msra.mxu1 %v5832_v1  ;;  %v5842_v43 = vld [vmem:[#allocation78_spill] sm:$0xff]  ;;  %v5843_v1 = vld [vmem:[#allocation79_spill] sm:$0xff] }
 0x67f   :  { %2404 = vmatprep.subr.bf16.mxu0 %v5833_v57  ;;  %2445 = vmatprep.subr.bf16.mxu1 %v5834_v16  ;;  %v5844_v57 = vld [vmem:[#allocation80_spill] sm:$0xff]  ;;  %v5845_v16 = vld [vmem:[#allocation81_spill] sm:$0xff] }
 0x682   :  { %2405 = vmatpush1.bf16.msra.mxu0 %v5835_v60  ;;  %2446 = vmatpush1.bf16.msra.mxu1 %v5836_v8  ;;  %v5846_v60 = vld [vmem:[#allocation82_spill] sm:$0xff] }
 0x683   :  { %2406 = vmatprep.subr.bf16.mxu0 %v5837_v29  ;;  %2447 = vmatprep.subr.bf16.mxu1 %v5838_v17 }
 0x686   :  { %2407 = vmatpush1.bf16.msra.mxu0 %v5839_v3  ;;  %2448 = vmatpush1.bf16.msra.mxu1 %v5840_v30 }
 0x687   :  { %2408 = vmatprep.subr.bf16.mxu0 %v5841_v32  ;;  %2449 = vmatprep.subr.bf16.mxu1 %v5842_v43 }
 0x68a   :  { %2409 = vmatpush1.bf16.msra.mxu0 %v5843_v1  ;;  %2450 = vmatpush1.bf16.msra.mxu1 %v5844_v57 }
 0x68b   :  { %2476 = vmatprep.subr.bf16.mxu0 %v5845_v16  ;;  %2517 = vmatprep.subr.bf16.mxu1 %v5846_v60 }
 0x700   :  { %v2119_v8 = vpop.f32.mrb[68].mxu0  ;;  %v2160_v29 = vpop.f32.mrb[68].mxu1 }
 0x701   :  { %v2121_v31 = vpop.f32.mrb[69].mxu0  ;;  %v2162_v17 = vpop.f32.mrb[69].mxu1 }
 0x702   :  { %v2123_v27 = vpop.f32.mrb[70].mxu0  ;;  %v2164_v3 = vpop.f32.mrb[70].mxu1 }
 0x703   :  { %v2124_v63 = vpop.f32.mrb[71].mxu0  ;;  %v2165_v30 = vpop.f32.mrb[71].mxu1 }
 0x720   :  { %v2201_v4 = vpop.f32.mrb[72].mxu0  ;;  %v2242_v32 = vpop.f32.mrb[72].mxu1 }
 0x721   :  { %v2202_v35 = vadd.f32 %v2201_v4, %v2119_v8  ;;  %v2243_v43 = vadd.f32 %v2242_v32, %v2160_v29  ;;  %v2203_v22 = vpop.f32.mrb[73].mxu0  ;;  %v2244_v1 = vpop.f32.mrb[73].mxu1  ;;  %v5848_v8 = vld [vmem:[#allocation132_spill] sm:$0xff] }
 0x722   :  { %v2204_v33 = vadd.f32 %v2203_v22, %v2121_v31  ;;  %v2245_v57 = vadd.f32 %v2244_v1, %v2162_v17  ;;  %v2205_v15 = vpop.f32.mrb[74].mxu0  ;;  %v2246_v16 = vpop.f32.mrb[74].mxu1 }
 0x723   :  { %v2249_v60 = vadd.f32 %v2202_v35, %v4441_v37  ;;  %v2206_v50 = vpop.f32.mrb[75].mxu0  ;;  %v2247_v20 = vpop.f32.mrb[75].mxu1  ;;  %v2251_v29 = vadd.f32 %v2243_v43, %v4456_v48 }
 0x724   :  { %v2250_v21 = vadd.f32 %v2204_v33, %v4445_v10  ;;  %v2252_v63 = vadd.f32 %v2245_v57, %v4451_v47 }
 0x725   :  { %v3322_v27 = vmul.f32 -1.442695, %v2249_v60  ;;  %v5847_v60 = vld [vmem:[#allocation129_spill] sm:$0xff] }
 0x726   :  { %v3323_v3 = vmul.f32 -1.442695, %v2250_v21  ;;  %v3324_v4 = vmul.f32 -1.442695, %v2252_v63 }
 0x727   :  { %3531 = vpow2.f32 %v3322_v27 }
 0x728   :  { %3533 = vpow2.f32 %v3323_v3 }
 0x729   :  { %3535 = vpow2.f32 %v3324_v4  ;;  %v5849_v4 = vld [vmem:[#allocation131_spill] sm:$0xff] }
 0x72a   :  { %3537 = vtanh.f32 %v2251_v29 }
 0x731   :  { %v3532_v30 = vpop.eup %3531 }
 0x732   :  { %v3534_v22 = vpop.eup %3533  ;;  %v2256_v17 = vadd.f32 1.0, %v3532_v30  ;;  %v5850_v30 = vld [vmem:[#allocation133_spill] sm:$0xff] }
 0x733   :  { %v2262_v15 = vadd.f32 1.0, %v3534_v22  ;;  %v3536_v20 = vpop.eup %3535 }
 0x734   :  { %3539 = vrcp.f32 %v2256_v17  ;;  %v3538_v50 = vpop.eup %3537  ;;  %v2269_v32 = vadd.f32 1.0, %v3536_v20 }
 0x735   :  { %3541 = vrcp.f32 %v2262_v15 }
 0x736   :  { %3543 = vrcp.f32 %v2269_v32 }
 0x73e   :  { %v3540_v33 = vpop.eup %3539 }
 0x73f   :  { %v3542_v35 = vpop.eup %3541  ;;  %v2273_v21 = vmul.f32 %v3540_v33, %v3538_v50 }
 0x740   :  { %v2272_v1 = vmul.f32 %v3542_v35, %v4815_v9  ;;  %v2316_v57 = vpop.f32.mrb[76].mxu0  ;;  %v2357_v31 = vpop.f32.mrb[76].mxu1 }
 0x741   :  { %v2364_v43 = vadd.f32 %v2316_v57, %v5847_v60  ;;  %v2366_v16 = vadd.f32 %v2357_v31, %v5848_v8  ;;  %v2318_v27 = vpop.f32.mrb[77].mxu0  ;;  %v2359_v3 = vpop.f32.mrb[77].mxu1 }
 0x742   :  { %v4933_v63 = vadd.f32 %v2273_v21, %v2272_v1  ;;  %v2365_v29 = vadd.f32 %v2318_v27, %v5849_v4  ;;  %v2367_v22 = vadd.f32 %v2359_v3, %v5850_v30  ;;  %v2320_v17 = vpop.f32.mrb[78].mxu0  ;;  %v2361_v15 = vpop.f32.mrb[78].mxu1 }
 0x743   :  { %v3325_v20 = vmul.f32 -1.442695, %v2364_v43  ;;  %v2321_v50 = vpop.f32.mrb[79].mxu0  ;;  %v2362_v9 = vpop.f32.mrb[79].mxu1 }
 0x744   :  { %v3326_v33 = vmul.f32 -1.442695, %v2365_v29  ;;  %3545 = vtanh.f32 %v4933_v63  ;;  %v3327_v35 = vmul.f32 -1.442695, %v2367_v22  ;;  %v3544_v57 = vpop.eup %3543  ;;  %v5851_v9 = vld [vmem:[#allocation22_spill] sm:$0xff] }
 0x745   :  { %3547 = vpow2.f32 %v3325_v20 }
 0x746   :  { %3549 = vpow2.f32 %v3326_v33  ;;  %v5852_v33 = vld [vmem:[#allocation23_spill] sm:$0xff] }
 0x747   :  { %3551 = vpow2.f32 %v3327_v35  ;;  %v5853_v35 = vld [vmem:[#allocation24_spill] sm:$0xff] }
 0x748   :  { %3553 = vtanh.f32 %v2366_v16 }
 0x74e   :  { %v3546_v31 = vpop.eup %3545 }
 0x74f   :  { %v3548_v21 = vpop.eup %3547  ;;  %v2276_v1 = vmul.f32 %v3546_v31, %v3544_v57  ;;  %v5854_v57 = vld [vmem:[#allocation25_spill] sm:$0xff]  ;;  %v5855_v31 = vld [vmem:[#allocation26_spill] sm:$0xff] }
 0x750   :  { %v3550_v60 = vpop.eup %3549  ;;  %v2371_v8 = vadd.f32 1.0, %v3548_v21  ;;  %v5856_v21 = vld [vmem:[#allocation27_spill] sm:$0xff] }
 0x751   :  { %v2377_v27 = vadd.f32 1.0, %v3550_v60  ;;  %v2393_v3 = vpack.c.bf16 %v2276_v1, %v2276_v1  ;;  %v3552_v32 = vpop.eup %3551  ;;  %v5857_v1 = vld [vmem:[#allocation28_spill] sm:$0xff]  ;;  %v5858_v60 = vld [vmem:[#allocation29_spill] sm:$0xff] }
 0x752   :  { %3555 = vrcp.f32 %v2371_v8  ;;  %v3554_v43 = vpop.eup %3553  ;;  %v2384_v30 = vadd.f32 1.0, %v3552_v32  ;;  %v5859_v8 = vld [vmem:[#allocation30_spill] sm:$0xff]  ;;  %v5862_v32 = vld [vmem:[#allocation33_spill] sm:$0xff] }
 0x753   :  { %3557 = vrcp.f32 %v2377_v27  ;;  %2427 = vmatmul.mubr.bf16.vlgmr.msra.gmra.mrb[80].mxu0 %v2393_v3  ;;  %2468 = vmatmul.mubr.bf16.vlgmr.msra.gmra.mrb[80].mxu1 %v2393_v3  ;;  %v5860_v27 = vld [vmem:[#allocation31_spill] sm:$0xff]  ;;  %v5861_v3 = vld [vmem:[#allocation32_spill] sm:$0xff] }
 0x754   :  { %2477 = vmatpush1.bf16.msra.mxu0 %v5591_v56  ;;  %2518 = vmatpush1.bf16.msra.mxu1 %v5592_v34  ;;  %3559 = vrcp.f32 %v2384_v30  ;;  %v5867_v30 = vld [vmem:[#allocation38_spill] sm:$0xff] }
 0x755   :  { %2478 = vmatprep.subr.bf16.mxu0 %v5593_v39  ;;  %2519 = vmatprep.subr.bf16.mxu1 %v5594_v13 }
 0x756   :  { %2508 = vmatprep.mubr.bf16.mxu0 %v5496_v23  ;;  %2549 = vmatprep.mubr.bf16.mxu1 %v5496_v23 }
 0x758   :  { %2479 = vmatpush1.bf16.msra.mxu0 %v5595_v61  ;;  %2520 = vmatpush1.bf16.msra.mxu1 %v5596_v7 }
 0x759   :  { %2480 = vmatprep.subr.bf16.mxu0 %v5656_v49  ;;  %2521 = vmatprep.subr.bf16.mxu1 %v5657_v42 }
 0x75c   :  { %v3556_v16 = vpop.eup %3555  ;;  %2481 = vmatpush1.bf16.msra.mxu0 %v5658_v54  ;;  %2522 = vmatpush1.bf16.msra.mxu1 %v5600_v12 }
 0x75d   :  { %v3558_v4 = vpop.eup %3557  ;;  %v2388_v29 = vmul.f32 %v3556_v16, %v3554_v43  ;;  %2482 = vmatprep.subr.bf16.mxu0 %v5601_v18  ;;  %2523 = vmatprep.subr.bf16.mxu1 %v5602_v0  ;;  %v5863_v43 = vld [vmem:[#allocation34_spill] sm:$0xff]  ;;  %v5864_v16 = vld [vmem:[#allocation35_spill] sm:$0xff] }
 0x75e   :  { %v2387_v22 = vmul.f32 %v3558_v4, %v4835_v45  ;;  %v3560_v45 = vpop.eup %3559  ;;  %v5865_v4 = vld [vmem:[#allocation36_spill] sm:$0xff] }
 0x760   :  { %v4953_v17 = vadd.f32 %v2388_v29, %v2387_v22  ;;  %2483 = vmatpush1.bf16.msra.mxu0 %v5660_v2  ;;  %2524 = vmatpush1.bf16.msra.mxu1 %v5661_v19  ;;  %v5866_v29 = vld [vmem:[#allocation37_spill] sm:$0xff]  ;;  %v5868_v22 = vld [vmem:[#allocation39_spill] sm:$0xff] }
 0x761   :  { %2484 = vmatprep.subr.bf16.mxu0 %v5662_v41  ;;  %2525 = vmatprep.subr.bf16.mxu1 %v5663_v5 }
 0x762   :  { %3561 = vtanh.f32 %v4953_v17 }
 0x764   :  { %2485 = vmatpush1.bf16.msra.mxu0 %v5664_v46  ;;  %2526 = vmatpush1.bf16.msra.mxu1 %v5665_v58 }
 0x765   :  { %2486 = vmatprep.subr.bf16.mxu0 %v5666_v24  ;;  %2527 = vmatprep.subr.bf16.mxu1 %v5667_v62 }
 0x768   :  { %2487 = vmatpush1.bf16.msra.mxu0 %v5668_v25  ;;  %2528 = vmatpush1.bf16.msra.mxu1 %v5669_v36 }
 0x769   :  { %2488 = vmatprep.subr.bf16.mxu0 %v5670_v28  ;;  %2529 = vmatprep.subr.bf16.mxu1 %v5615_v59 }
 0x76c   :  { %v3562_v15 = vpop.eup %3561  ;;  %2489 = vmatpush1.bf16.msra.mxu0 %v5616_v6  ;;  %2530 = vmatpush1.bf16.msra.mxu1 %v5617_v55 }
 0x76d   :  { %2490 = vmatprep.subr.bf16.mxu0 %v5618_v14  ;;  %2531 = vmatprep.subr.bf16.mxu1 %v5619_v11  ;;  %v2391_v20 = vmul.f32 %v3562_v15, %v3560_v45  ;;  %v5869_v45 = vld [vmem:[#allocation40_spill] sm:$0xff]  ;;  %v5870_v15 = vld [vmem:[#allocation41_spill] sm:$0xff] }
 0x76f   :  { %v2392_v50 = vpack.c.bf16 %v2391_v20, %v2391_v20  ;;  %v5871_v20 = vld [vmem:[#allocation42_spill] sm:$0xff] }
 0x770   :  { %2491 = vmatpush1.bf16.msra.mxu0 %v5620_v26  ;;  %2532 = vmatpush1.bf16.msra.mxu1 %v5621_v38 }
 0x771   :  { %2591 = vmatprep.subr.bf16.mxu0 %v5622_v40  ;;  %2632 = vmatprep.subr.bf16.mxu1 %v5623_v44 }
 0x773   :  { %2509 = vmatmul.mubr.bf16.vlgmr.msra.gmra.mrb[84].mxu0 %v2392_v50  ;;  %2550 = vmatmul.mubr.bf16.vlgmr.msra.gmra.mrb[84].mxu1 %v2392_v50 }
 0x774   :  { %2592 = vmatpush1.bf16.msra.mxu0 %v3967_v51  ;;  %2633 = vmatpush1.bf16.msra.mxu1 %v3970_v52 }
 0x775   :  { %2593 = vmatprep.subr.bf16.mxu0 %v3972_v53  ;;  %2634 = vmatprep.subr.bf16.mxu1 %v5851_v9 }
 0x776   :  { %2623 = vmatprep.mubr.bf16.mxu0 %v5496_v23  ;;  %2664 = vmatprep.mubr.bf16.mxu1 %v5496_v23 }
 0x778   :  { %2594 = vmatpush1.bf16.msra.mxu0 %v5852_v33  ;;  %2635 = vmatpush1.bf16.msra.mxu1 %v5853_v35 }
 0x779   :  { %2595 = vmatprep.subr.bf16.mxu0 %v5854_v57  ;;  %2636 = vmatprep.subr.bf16.mxu1 %v5855_v31 }
 0x77c   :  { %2596 = vmatpush1.bf16.msra.mxu0 %v5856_v21  ;;  %2637 = vmatpush1.bf16.msra.mxu1 %v5857_v1 }
 0x77d   :  { %2597 = vmatprep.subr.bf16.mxu0 %v5858_v60  ;;  %2638 = vmatprep.subr.bf16.mxu1 %v5859_v8 }
 0x780   :  { %2598 = vmatpush1.bf16.msra.mxu0 %v5860_v27  ;;  %2639 = vmatpush1.bf16.msra.mxu1 %v5861_v3  ;;  %v5872_v3 = vld [vmem:[#allocation43_spill] sm:$0xff] }
 0x781   :  { %2599 = vmatprep.subr.bf16.mxu0 %v5862_v32  ;;  %2640 = vmatprep.subr.bf16.mxu1 %v5863_v43  ;;  %v5873_v32 = vld [vmem:[#allocation44_spill] sm:$0xff]  ;;  %v5874_v43 = vld [vmem:[#allocation45_spill] sm:$0xff] }
 0x784   :  { %2600 = vmatpush1.bf16.msra.mxu0 %v5864_v16  ;;  %2641 = vmatpush1.bf16.msra.mxu1 %v5865_v4  ;;  %v5875_v16 = vld [vmem:[#allocation46_spill] sm:$0xff]  ;;  %v5876_v4 = vld [vmem:[#allocation47_spill] sm:$0xff] }
 0x785   :  { %2601 = vmatprep.subr.bf16.mxu0 %v5866_v29  ;;  %2642 = vmatprep.subr.bf16.mxu1 %v5867_v30  ;;  %v5877_v29 = vld [vmem:[#allocation48_spill] sm:$0xff]  ;;  %v5878_v30 = vld [vmem:[#allocation49_spill] sm:$0xff] }
 0x788   :  { %2602 = vmatpush1.bf16.msra.mxu0 %v5868_v22  ;;  %2643 = vmatpush1.bf16.msra.mxu1 %v5869_v45  ;;  %v5879_v22 = vld [vmem:[#allocation50_spill] sm:$0xff] }
 0x789   :  { %2603 = vmatprep.subr.bf16.mxu0 %v5870_v15  ;;  %2644 = vmatprep.subr.bf16.mxu1 %v5871_v20  ;;  %v5880_v15 = vld [vmem:[#allocation51_spill] sm:$0xff]  ;;  %v5881_v20 = vld [vmem:[#allocation52_spill] sm:$0xff] }
 0x78c   :  { %2604 = vmatpush1.bf16.msra.mxu0 %v5872_v3  ;;  %2645 = vmatpush1.bf16.msra.mxu1 %v5873_v32  ;;  %v5882_v3 = vld [vmem:[#allocation53_spill] sm:$0xff]  ;;  %v5883_v32 = vld [vmem:[#allocation54_spill] sm:$0xff] }
 0x78d   :  { %2605 = vmatprep.subr.bf16.mxu0 %v5874_v43  ;;  %2646 = vmatprep.subr.bf16.mxu1 %v5875_v16  ;;  %v5893_v16 = vld [vmem:[#allocation64_spill] sm:$0xff]  ;;  %v5894_v43 = vld [vmem:[#allocation65_spill] sm:$0xff] }
 0x790   :  { %2606 = vmatpush1.bf16.msra.mxu0 %v5876_v4  ;;  %2647 = vmatpush1.bf16.msra.mxu1 %v5877_v29  ;;  %v5884_v4 = vld [vmem:[#allocation55_spill] sm:$0xff]  ;;  %v5885_v29 = vld [vmem:[#allocation56_spill] sm:$0xff] }
 0x791   :  { %2703 = vmatprep.subr.bf16.mxu0 %v5878_v30  ;;  %2744 = vmatprep.subr.bf16.mxu1 %v5879_v22  ;;  %v5886_v30 = vld [vmem:[#allocation57_spill] sm:$0xff]  ;;  %v5887_v22 = vld [vmem:[#allocation58_spill] sm:$0xff] }
 0x793   :  { %2624 = vmatmul.mubr.bf16.vlgmr.msra.gmra.mrb[88].mxu0 %v2392_v50  ;;  %2665 = vmatmul.mubr.bf16.vlgmr.msra.gmra.mrb[88].mxu1 %v2392_v50  ;;  %v5888_v50 = vld [vmem:[#allocation59_spill] sm:$0xff] }
 0x794   :  { %2704 = vmatpush1.bf16.msra.mxu0 %v5880_v15  ;;  %2745 = vmatpush1.bf16.msra.mxu1 %v5881_v20  ;;  %v5889_v15 = vld [vmem:[#allocation60_spill] sm:$0xff]  ;;  %v5890_v20 = vld [vmem:[#allocation61_spill] sm:$0xff] }
 0x795   :  { %2705 = vmatprep.subr.bf16.mxu0 %v5882_v3  ;;  %2746 = vmatprep.subr.bf16.mxu1 %v5883_v32  ;;  %v5891_v3 = vld [vmem:[#allocation62_spill] sm:$0xff]  ;;  %v5892_v32 = vld [vmem:[#allocation63_spill] sm:$0xff] }
 0x796   :  { %2735 = vmatprep.mubr.bf16.mxu0 %v5496_v23  ;;  %2776 = vmatprep.mubr.bf16.mxu1 %v5496_v23 }
 0x798   :  { %2706 = vmatpush1.bf16.msra.mxu0 %v5884_v4  ;;  %2747 = vmatpush1.bf16.msra.mxu1 %v5885_v29  ;;  %v5895_v4 = vld [vmem:[#allocation66_spill] sm:$0xff]  ;;  %v5896_v29 = vld [vmem:[#allocation67_spill] sm:$0xff] }
 0x799   :  { %2707 = vmatprep.subr.bf16.mxu0 %v5886_v30  ;;  %2748 = vmatprep.subr.bf16.mxu1 %v5887_v22  ;;  %v5897_v30 = vld [vmem:[#allocation68_spill] sm:$0xff]  ;;  %v5898_v22 = vld [vmem:[#allocation69_spill] sm:$0xff] }
 0x79c   :  { %2708 = vmatpush1.bf16.msra.mxu0 %v5888_v50  ;;  %2749 = vmatpush1.bf16.msra.mxu1 %v5889_v15  ;;  %v5899_v50 = vld [vmem:[#allocation70_spill] sm:$0xff]  ;;  %v5900_v15 = vld [vmem:[#allocation71_spill] sm:$0xff] }
 0x79d   :  { %2709 = vmatprep.subr.bf16.mxu0 %v5890_v20  ;;  %2750 = vmatprep.subr.bf16.mxu1 %v5891_v3  ;;  %v5901_v20 = vld [vmem:[#allocation72_spill] sm:$0xff]  ;;  %v5902_v3 = vld [vmem:[#allocation73_spill] sm:$0xff] }
 0x7a0   :  { %2710 = vmatpush1.bf16.msra.mxu0 %v5892_v32  ;;  %2751 = vmatpush1.bf16.msra.mxu1 %v5893_v16  ;;  %v5903_v32 = vld [vmem:[#allocation74_spill] sm:$0xff]  ;;  %v5904_v16 = vld [vmem:[#allocation75_spill] sm:$0xff] }
 0x7a1   :  { %2711 = vmatprep.subr.bf16.mxu0 %v5894_v43  ;;  %2752 = vmatprep.subr.bf16.mxu1 %v5895_v4  ;;  %v5905_v43 = vld [vmem:[#allocation76_spill] sm:$0xff]  ;;  %v5906_v4 = vld [vmem:[#allocation77_spill] sm:$0xff] }
 0x7a4   :  { %2712 = vmatpush1.bf16.msra.mxu0 %v5896_v29  ;;  %2753 = vmatpush1.bf16.msra.mxu1 %v5897_v30  ;;  %v5907_v29 = vld [vmem:[#allocation78_spill] sm:$0xff]  ;;  %v5908_v30 = vld [vmem:[#allocation79_spill] sm:$0xff] }
 0x7a5   :  { %2713 = vmatprep.subr.bf16.mxu0 %v5898_v22  ;;  %2754 = vmatprep.subr.bf16.mxu1 %v5899_v50  ;;  %v5909_v22 = vld [vmem:[#allocation80_spill] sm:$0xff]  ;;  %v5910_v50 = vld [vmem:[#allocation81_spill] sm:$0xff] }
 0x7a8   :  { %2714 = vmatpush1.bf16.msra.mxu0 %v5900_v15  ;;  %2755 = vmatpush1.bf16.msra.mxu1 %v5901_v20  ;;  %v5911_v15 = vld [vmem:[#allocation82_spill] sm:$0xff] }
 0x7a9   :  { %2715 = vmatprep.subr.bf16.mxu0 %v5902_v3  ;;  %2756 = vmatprep.subr.bf16.mxu1 %v5903_v32 }
 0x7ac   :  { %2716 = vmatpush1.bf16.msra.mxu0 %v5904_v16  ;;  %2757 = vmatpush1.bf16.msra.mxu1 %v5905_v43 }
 0x7ad   :  { %2717 = vmatprep.subr.bf16.mxu0 %v5906_v4  ;;  %2758 = vmatprep.subr.bf16.mxu1 %v5907_v29 }
 0x7b0   :  { %2718 = vmatpush1.bf16.msra.mxu0 %v5908_v30  ;;  %2759 = vmatpush1.bf16.msra.mxu1 %v5909_v22 }
 0x7b1   :  { %2785 = vmatprep.subr.bf16.mxu0 %v5910_v50  ;;  %2826 = vmatprep.subr.bf16.mxu1 %v5911_v15 }
 0x826   :  { %v2428_v20 = vpop.f32.mrb[80].mxu0  ;;  %v2469_v3 = vpop.f32.mrb[80].mxu1 }
 0x827   :  { %v2430_v45 = vpop.f32.mrb[81].mxu0  ;;  %v2471_v32 = vpop.f32.mrb[81].mxu1 }
 0x828   :  { %v2432_v27 = vpop.f32.mrb[82].mxu0  ;;  %v2473_v16 = vpop.f32.mrb[82].mxu1 }
 0x829   :  { %v2433_v8 = vpop.f32.mrb[83].mxu0  ;;  %v2474_v43 = vpop.f32.mrb[83].mxu1 }
 0x846   :  { %v2510_v60 = vpop.f32.mrb[84].mxu0  ;;  %v2551_v4 = vpop.f32.mrb[84].mxu1 }
 0x847   :  { %v2511_v1 = vadd.f32 %v2510_v60, %v2428_v20  ;;  %v2552_v29 = vadd.f32 %v2551_v4, %v2469_v3  ;;  %v2512_v21 = vpop.f32.mrb[85].mxu0  ;;  %v2553_v30 = vpop.f32.mrb[85].mxu1  ;;  %v5913_v20 = vld [vmem:[#allocation136_spill] sm:$0xff] }
 0x848   :  { %v2513_v31 = vadd.f32 %v2512_v21, %v2430_v45  ;;  %v2554_v22 = vadd.f32 %v2553_v30, %v2471_v32  ;;  %v2514_v57 = vpop.f32.mrb[86].mxu0  ;;  %v2555_v50 = vpop.f32.mrb[86].mxu1 }
 0x849   :  { %v2558_v15 = vadd.f32 %v2511_v1, %v4441_v37  ;;  %v2515_v35 = vpop.f32.mrb[87].mxu0  ;;  %v2556_v33 = vpop.f32.mrb[87].mxu1  ;;  %v2560_v3 = vadd.f32 %v2552_v29, %v4456_v48 }
 0x84a   :  { %v2559_v9 = vadd.f32 %v2513_v31, %v4445_v10  ;;  %v2561_v8 = vadd.f32 %v2554_v22, %v4451_v47 }
 0x84b   :  { %v3328_v27 = vmul.f32 -1.442695, %v2558_v15  ;;  %v5912_v15 = vld [vmem:[#allocation134_spill] sm:$0xff] }
 0x84c   :  { %v3329_v16 = vmul.f32 -1.442695, %v2559_v9  ;;  %v3330_v60 = vmul.f32 -1.442695, %v2561_v8 }
 0x84d   :  { %3563 = vpow2.f32 %v3328_v27 }
 0x84e   :  { %3565 = vpow2.f32 %v3329_v16 }
 0x84f   :  { %3567 = vpow2.f32 %v3330_v60  ;;  %v5914_v60 = vld [vmem:[#allocation135_spill] sm:$0xff] }
 0x850   :  { %3569 = vtanh.f32 %v2560_v3 }
 0x857   :  { %v3564_v43 = vpop.eup %3563 }
 0x858   :  { %v3566_v21 = vpop.eup %3565  ;;  %v2565_v32 = vadd.f32 1.0, %v3564_v43  ;;  %v5915_v43 = vld [vmem:[#allocation138_spill] sm:$0xff] }
 0x859   :  { %v2571_v57 = vadd.f32 1.0, %v3566_v21  ;;  %v3568_v33 = vpop.eup %3567 }
 0x85a   :  { %3571 = vrcp.f32 %v2565_v32  ;;  %v3570_v35 = vpop.eup %3569  ;;  %v2578_v4 = vadd.f32 1.0, %v3568_v33 }
 0x85b   :  { %3573 = vrcp.f32 %v2571_v57 }
 0x85c   :  { %3575 = vrcp.f32 %v2578_v4 }
 0x864   :  { %v3572_v31 = vpop.eup %3571 }
 0x865   :  { %v3574_v1 = vpop.eup %3573  ;;  %v2582_v9 = vmul.f32 %v3572_v31, %v3570_v35 }
 0x866   :  { %v2581_v30 = vmul.f32 %v3574_v1, %v4933_v63  ;;  %v2625_v22 = vpop.f32.mrb[88].mxu0  ;;  %v2666_v45 = vpop.f32.mrb[88].mxu1 }
 0x867   :  { %v2673_v29 = vadd.f32 %v2625_v22, %v5912_v15  ;;  %v2675_v50 = vadd.f32 %v2666_v45, %v5913_v20  ;;  %v2627_v27 = vpop.f32.mrb[89].mxu0  ;;  %v2668_v16 = vpop.f32.mrb[89].mxu1 }
 0x868   :  { %v5051_v8 = vadd.f32 %v2582_v9, %v2581_v30  ;;  %v2674_v3 = vadd.f32 %v2627_v27, %v5914_v60  ;;  %v2676_v21 = vadd.f32 %v2668_v16, %v5915_v43  ;;  %v2629_v32 = vpop.f32.mrb[90].mxu0  ;;  %v2670_v57 = vpop.f32.mrb[90].mxu1 }
 0x869   :  { %v3331_v33 = vmul.f32 -1.442695, %v2673_v29  ;;  %v2630_v35 = vpop.f32.mrb[91].mxu0  ;;  %v2671_v63 = vpop.f32.mrb[91].mxu1 }
 0x86a   :  { %v3332_v31 = vmul.f32 -1.442695, %v2674_v3  ;;  %3577 = vtanh.f32 %v5051_v8  ;;  %v3333_v1 = vmul.f32 -1.442695, %v2676_v21  ;;  %v3576_v22 = vpop.eup %3575  ;;  %v5916_v63 = vld [vmem:[#allocation22_spill] sm:$0xff] }
 0x86b   :  { %3579 = vpow2.f32 %v3331_v33 }
 0x86c   :  { %3581 = vpow2.f32 %v3332_v31  ;;  %v5917_v31 = vld [vmem:[#allocation23_spill] sm:$0xff] }
 0x86d   :  { %3583 = vpow2.f32 %v3333_v1  ;;  %v5918_v1 = vld [vmem:[#allocation24_spill] sm:$0xff] }
 0x86e   :  { %3585 = vtanh.f32 %v2675_v50 }
 0x874   :  { %v3578_v45 = vpop.eup %3577 }
 0x875   :  { %v3580_v9 = vpop.eup %3579  ;;  %v2585_v30 = vmul.f32 %v3578_v45, %v3576_v22  ;;  %v5921_v22 = vld [vmem:[#allocation27_spill] sm:$0xff] }
 0x876   :  { %v3582_v15 = vpop.eup %3581  ;;  %v2680_v20 = vadd.f32 1.0, %v3580_v9  ;;  %v5925_v45 = vld [vmem:[#allocation31_spill] sm:$0xff]  ;;  %v5926_v9 = vld [vmem:[#allocation32_spill] sm:$0xff] }
 0x877   :  { %v2686_v27 = vadd.f32 1.0, %v3582_v15  ;;  %v2702_v16 = vpack.c.bf16 %v2585_v30, %v2585_v30  ;;  %v3584_v4 = vpop.eup %3583  ;;  %v5927_v30 = vld [vmem:[#allocation33_spill] sm:$0xff]  ;;  %v5928_v15 = vld [vmem:[#allocation34_spill] sm:$0xff] }
 0x878   :  { %3587 = vrcp.f32 %v2680_v20  ;;  %v3586_v29 = vpop.eup %3585  ;;  %v2693_v43 = vadd.f32 1.0, %v3584_v4  ;;  %v5929_v20 = vld [vmem:[#allocation35_spill] sm:$0xff]  ;;  %v5932_v4 = vld [vmem:[#allocation38_spill] sm:$0xff] }
 0x879   :  { %3589 = vrcp.f32 %v2686_v27  ;;  %2736 = vmatmul.mubr.bf16.vlgmr.msra.gmra.mrb[92].mxu0 %v2702_v16  ;;  %2777 = vmatmul.mubr.bf16.vlgmr.msra.gmra.mrb[92].mxu1 %v2702_v16  ;;  %v5930_v27 = vld [vmem:[#allocation36_spill] sm:$0xff]  ;;  %v5931_v16 = vld [vmem:[#allocation37_spill] sm:$0xff] }
 0x87a   :  { %2786 = vmatpush1.bf16.msra.mxu0 %v5591_v56  ;;  %2827 = vmatpush1.bf16.msra.mxu1 %v5592_v34  ;;  %3591 = vrcp.f32 %v2693_v43  ;;  %v5937_v43 = vld [vmem:[#allocation43_spill] sm:$0xff] }
 0x87b   :  { %2787 = vmatprep.subr.bf16.mxu0 %v5593_v39  ;;  %2828 = vmatprep.subr.bf16.mxu1 %v5594_v13 }
 0x87c   :  { %2817 = vmatprep.mubr.bf16.mxu0 %v5496_v23  ;;  %2858 = vmatprep.mubr.bf16.mxu1 %v5496_v23 }
 0x87e   :  { %2788 = vmatpush1.bf16.msra.mxu0 %v5595_v61  ;;  %2829 = vmatpush1.bf16.msra.mxu1 %v5596_v7 }
 0x87f   :  { %2789 = vmatprep.subr.bf16.mxu0 %v5656_v49  ;;  %2830 = vmatprep.subr.bf16.mxu1 %v5657_v42 }
 0x882   :  { %v3588_v50 = vpop.eup %3587  ;;  %2790 = vmatpush1.bf16.msra.mxu0 %v5658_v54  ;;  %2831 = vmatpush1.bf16.msra.mxu1 %v5600_v12 }
 0x883   :  { %v3590_v60 = vpop.eup %3589  ;;  %v2697_v3 = vmul.f32 %v3588_v50, %v3586_v29  ;;  %2791 = vmatprep.subr.bf16.mxu0 %v5601_v18  ;;  %2832 = vmatprep.subr.bf16.mxu1 %v5602_v0  ;;  %v5933_v29 = vld [vmem:[#allocation39_spill] sm:$0xff]  ;;  %v5934_v50 = vld [vmem:[#allocation40_spill] sm:$0xff] }
 0x884   :  { %v2696_v21 = vmul.f32 %v3590_v60, %v4953_v17  ;;  %v3592_v17 = vpop.eup %3591  ;;  %v5935_v60 = vld [vmem:[#allocation41_spill] sm:$0xff] }
 0x886   :  { %v5071_v32 = vadd.f32 %v2697_v3, %v2696_v21  ;;  %2792 = vmatpush1.bf16.msra.mxu0 %v5660_v2  ;;  %2833 = vmatpush1.bf16.msra.mxu1 %v5661_v19  ;;  %v5936_v3 = vld [vmem:[#allocation42_spill] sm:$0xff]  ;;  %v5938_v21 = vld [vmem:[#allocation44_spill] sm:$0xff] }
 0x887   :  { %2793 = vmatprep.subr.bf16.mxu0 %v5662_v41  ;;  %2834 = vmatprep.subr.bf16.mxu1 %v5663_v5 }
 0x888   :  { %3593 = vtanh.f32 %v5071_v32 }
 0x88a   :  { %2794 = vmatpush1.bf16.msra.mxu0 %v5664_v46  ;;  %2835 = vmatpush1.bf16.msra.mxu1 %v5665_v58 }
 0x88b   :  { %2795 = vmatprep.subr.bf16.mxu0 %v5666_v24  ;;  %2836 = vmatprep.subr.bf16.mxu1 %v5667_v62 }
 0x88e   :  { %2796 = vmatpush1.bf16.msra.mxu0 %v5668_v25  ;;  %2837 = vmatpush1.bf16.msra.mxu1 %v5669_v36 }
 0x88f   :  { %2797 = vmatprep.subr.bf16.mxu0 %v5670_v28  ;;  %2838 = vmatprep.subr.bf16.mxu1 %v5615_v59 }
 0x892   :  { %v3594_v57 = vpop.eup %3593  ;;  %2798 = vmatpush1.bf16.msra.mxu0 %v5616_v6  ;;  %2839 = vmatpush1.bf16.msra.mxu1 %v5617_v55 }
 0x893   :  { %2799 = vmatprep.subr.bf16.mxu0 %v5618_v14  ;;  %2840 = vmatprep.subr.bf16.mxu1 %v5619_v11  ;;  %v2700_v33 = vmul.f32 %v3594_v57, %v3592_v17  ;;  %v5939_v17 = vld [vmem:[#allocation45_spill] sm:$0xff]  ;;  %v5940_v57 = vld [vmem:[#allocation46_spill] sm:$0xff] }
 0x895   :  { %v2701_v35 = vpack.c.bf16 %v2700_v33, %v2700_v33  ;;  %v5941_v33 = vld [vmem:[#allocation47_spill] sm:$0xff] }
 0x896   :  { %2800 = vmatpush1.bf16.msra.mxu0 %v5620_v26  ;;  %2841 = vmatpush1.bf16.msra.mxu1 %v5621_v38 }
 0x897   :  { %2900 = vmatprep.subr.bf16.mxu0 %v5622_v40  ;;  %2941 = vmatprep.subr.bf16.mxu1 %v5623_v44  ;;  %v5919_v40 = vld [vmem:[#allocation25_spill] sm:$0xff]  ;;  %v5920_v44 = vld [vmem:[#allocation26_spill] sm:$0xff] }
 0x899   :  { %2818 = vmatmul.mubr.bf16.vlgmr.msra.gmra.mrb[96].mxu0 %v2701_v35  ;;  %2859 = vmatmul.mubr.bf16.vlgmr.msra.gmra.mrb[96].mxu1 %v2701_v35 }
 0x89a   :  { %2901 = vmatpush1.bf16.msra.mxu0 %v3967_v51  ;;  %2942 = vmatpush1.bf16.msra.mxu1 %v3970_v52  ;;  %v5922_v51 = vld [vmem:[#allocation28_spill] sm:$0xff]  ;;  %v5923_v52 = vld [vmem:[#allocation29_spill] sm:$0xff] }
 0x89b   :  { %2902 = vmatprep.subr.bf16.mxu0 %v3972_v53  ;;  %2943 = vmatprep.subr.bf16.mxu1 %v5916_v63  ;;  %v5924_v53 = vld [vmem:[#allocation30_spill] sm:$0xff]  ;;  %v5942_v63 = vld [vmem:[#allocation48_spill] sm:$0xff] }
 0x89c   :  { %2932 = vmatprep.mubr.bf16.mxu0 %v5496_v23  ;;  %2973 = vmatprep.mubr.bf16.mxu1 %v5496_v23 }
 0x89e   :  { %2903 = vmatpush1.bf16.msra.mxu0 %v5917_v31  ;;  %2944 = vmatpush1.bf16.msra.mxu1 %v5918_v1  ;;  %v5943_v31 = vld [vmem:[#allocation49_spill] sm:$0xff]  ;;  %v5944_v1 = vld [vmem:[#allocation50_spill] sm:$0xff] }
 0x89f   :  { %2904 = vmatprep.subr.bf16.mxu0 %v5919_v40  ;;  %2945 = vmatprep.subr.bf16.mxu1 %v5920_v44  ;;  %v5945_v40 = vld [vmem:[#allocation51_spill] sm:$0xff]  ;;  %v5946_v44 = vld [vmem:[#allocation52_spill] sm:$0xff] }
 0x8a2   :  { %2905 = vmatpush1.bf16.msra.mxu0 %v5921_v22  ;;  %2946 = vmatpush1.bf16.msra.mxu1 %v5922_v51  ;;  %v5947_v22 = vld [vmem:[#allocation53_spill] sm:$0xff]  ;;  %v5948_v51 = vld [vmem:[#allocation54_spill] sm:$0xff] }
 0x8a3   :  { %2906 = vmatprep.subr.bf16.mxu0 %v5923_v52  ;;  %2947 = vmatprep.subr.bf16.mxu1 %v5924_v53  ;;  %v5949_v52 = vld [vmem:[#allocation55_spill] sm:$0xff]  ;;  %v5950_v53 = vld [vmem:[#allocation56_spill] sm:$0xff] }
 0x8a6   :  { %2907 = vmatpush1.bf16.msra.mxu0 %v5925_v45  ;;  %2948 = vmatpush1.bf16.msra.mxu1 %v5926_v9  ;;  %v5951_v45 = vld [vmem:[#allocation57_spill] sm:$0xff]  ;;  %v5952_v9 = vld [vmem:[#allocation58_spill] sm:$0xff] }
 0x8a7   :  { %2908 = vmatprep.subr.bf16.mxu0 %v5927_v30  ;;  %2949 = vmatprep.subr.bf16.mxu1 %v5928_v15  ;;  %v5954_v30 = vld [vmem:[#allocation60_spill] sm:$0xff]  ;;  %v5955_v15 = vld [vmem:[#allocation61_spill] sm:$0xff] }
 0x8aa   :  { %2909 = vmatpush1.bf16.msra.mxu0 %v5929_v20  ;;  %2950 = vmatpush1.bf16.msra.mxu1 %v5930_v27  ;;  %v5956_v20 = vld [vmem:[#allocation62_spill] sm:$0xff]  ;;  %v5957_v27 = vld [vmem:[#allocation63_spill] sm:$0xff] }
 0x8ab   :  { %2910 = vmatprep.subr.bf16.mxu0 %v5931_v16  ;;  %2951 = vmatprep.subr.bf16.mxu1 %v5932_v4  ;;  %v5958_v16 = vld [vmem:[#allocation64_spill] sm:$0xff]  ;;  %v5959_v4 = vld [vmem:[#allocation65_spill] sm:$0xff] }
 0x8ae   :  { %2911 = vmatpush1.bf16.msra.mxu0 %v5933_v29  ;;  %2952 = vmatpush1.bf16.msra.mxu1 %v5934_v50  ;;  %v5960_v29 = vld [vmem:[#allocation66_spill] sm:$0xff]  ;;  %v5961_v50 = vld [vmem:[#allocation67_spill] sm:$0xff] }
 0x8af   :  { %2912 = vmatprep.subr.bf16.mxu0 %v5935_v60  ;;  %2953 = vmatprep.subr.bf16.mxu1 %v5936_v3  ;;  %v5962_v60 = vld [vmem:[#allocation68_spill] sm:$0xff]  ;;  %v5963_v3 = vld [vmem:[#allocation69_spill] sm:$0xff] }
 0x8b2   :  { %2913 = vmatpush1.bf16.msra.mxu0 %v5937_v43  ;;  %2954 = vmatpush1.bf16.msra.mxu1 %v5938_v21  ;;  %v5964_v43 = vld [vmem:[#allocation70_spill] sm:$0xff]  ;;  %v5965_v21 = vld [vmem:[#allocation71_spill] sm:$0xff] }
 0x8b3   :  { %2914 = vmatprep.subr.bf16.mxu0 %v5939_v17  ;;  %2955 = vmatprep.subr.bf16.mxu1 %v5940_v57  ;;  %v5966_v17 = vld [vmem:[#allocation72_spill] sm:$0xff]  ;;  %v5967_v57 = vld [vmem:[#allocation73_spill] sm:$0xff] }
 0x8b6   :  { %2915 = vmatpush1.bf16.msra.mxu0 %v5941_v33  ;;  %2956 = vmatpush1.bf16.msra.mxu1 %v5942_v63  ;;  %v5968_v33 = vld [vmem:[#allocation74_spill] sm:$0xff]  ;;  %v5969_v63 = vld [vmem:[#allocation75_spill] sm:$0xff] }
 0x8b7   :  { %3012 = vmatprep.subr.bf16.mxu0 %v5943_v31  ;;  %3053 = vmatprep.subr.bf16.mxu1 %v5944_v1  ;;  %v5970_v31 = vld [vmem:[#allocation76_spill] sm:$0xff]  ;;  %v5971_v1 = vld [vmem:[#allocation77_spill] sm:$0xff] }
 0x8b9   :  { %2933 = vmatmul.mubr.bf16.vlgmr.msra.gmra.mrb[100].mxu0 %v2701_v35  ;;  %2974 = vmatmul.mubr.bf16.vlgmr.msra.gmra.mrb[100].mxu1 %v2701_v35  ;;  %v5953_v35 = vld [vmem:[#allocation59_spill] sm:$0xff] }
 0x8ba   :  { %3013 = vmatpush1.bf16.msra.mxu0 %v5945_v40  ;;  %3054 = vmatpush1.bf16.msra.mxu1 %v5946_v44  ;;  %v5972_v40 = vld [vmem:[#allocation78_spill] sm:$0xff]  ;;  %v5973_v44 = vld [vmem:[#allocation79_spill] sm:$0xff] }
 0x8bb   :  { %3014 = vmatprep.subr.bf16.mxu0 %v5947_v22  ;;  %3055 = vmatprep.subr.bf16.mxu1 %v5948_v51  ;;  %v5974_v22 = vld [vmem:[#allocation80_spill] sm:$0xff]  ;;  %v5975_v51 = vld [vmem:[#allocation81_spill] sm:$0xff] }
 0x8bc   :  { %3044 = vmatprep.mubr.bf16.mxu0 %v5496_v23  ;;  %3085 = vmatprep.mubr.bf16.mxu1 %v5496_v23 }
 0x8be   :  { %3015 = vmatpush1.bf16.msra.mxu0 %v5949_v52  ;;  %3056 = vmatpush1.bf16.msra.mxu1 %v5950_v53  ;;  %v5976_v52 = vld [vmem:[#allocation82_spill] sm:$0xff] }
 0x8bf   :  { %3016 = vmatprep.subr.bf16.mxu0 %v5951_v45  ;;  %3057 = vmatprep.subr.bf16.mxu1 %v5952_v9 }
 0x8c2   :  { %3017 = vmatpush1.bf16.msra.mxu0 %v5953_v35  ;;  %3058 = vmatpush1.bf16.msra.mxu1 %v5954_v30 }
 0x8c3   :  { %3018 = vmatprep.subr.bf16.mxu0 %v5955_v15  ;;  %3059 = vmatprep.subr.bf16.mxu1 %v5956_v20 }
 0x8c6   :  { %3019 = vmatpush1.bf16.msra.mxu0 %v5957_v27  ;;  %3060 = vmatpush1.bf16.msra.mxu1 %v5958_v16 }
 0x8c7   :  { %3020 = vmatprep.subr.bf16.mxu0 %v5959_v4  ;;  %3061 = vmatprep.subr.bf16.mxu1 %v5960_v29 }
 0x8ca   :  { %3021 = vmatpush1.bf16.msra.mxu0 %v5961_v50  ;;  %3062 = vmatpush1.bf16.msra.mxu1 %v5962_v60 }
 0x8cb   :  { %3022 = vmatprep.subr.bf16.mxu0 %v5963_v3  ;;  %3063 = vmatprep.subr.bf16.mxu1 %v5964_v43 }
 0x8ce   :  { %3023 = vmatpush1.bf16.msra.mxu0 %v5965_v21  ;;  %3064 = vmatpush1.bf16.msra.mxu1 %v5966_v17 }
 0x8cf   :  { %3024 = vmatprep.subr.bf16.mxu0 %v5967_v57  ;;  %3065 = vmatprep.subr.bf16.mxu1 %v5968_v33 }
 0x8d2   :  { %3025 = vmatpush1.bf16.msra.mxu0 %v5969_v63  ;;  %3066 = vmatpush1.bf16.msra.mxu1 %v5970_v31 }
 0x8d3   :  { %3026 = vmatprep.subr.bf16.mxu0 %v5971_v1  ;;  %3067 = vmatprep.subr.bf16.mxu1 %v5972_v40 }
 0x8d6   :  { %3027 = vmatpush1.bf16.msra.mxu0 %v5973_v44  ;;  %3068 = vmatpush1.bf16.msra.mxu1 %v5974_v22 }
 0x8d7   :  { %3094 = vmatprep.subr.bf16.mxu0 %v5975_v51  ;;  %3135 = vmatprep.subr.bf16.mxu1 %v5976_v52 }
 0x94c   :  { %v2737_v53 = vpop.f32.mrb[92].mxu0  ;;  %v2778_v45 = vpop.f32.mrb[92].mxu1 }
 0x94d   :  { %v2739_v9 = vpop.f32.mrb[93].mxu0  ;;  %v2780_v35 = vpop.f32.mrb[93].mxu1 }
 0x94e   :  { %v2741_v30 = vpop.f32.mrb[94].mxu0  ;;  %v2782_v15 = vpop.f32.mrb[94].mxu1 }
 0x94f   :  { %v2742_v20 = vpop.f32.mrb[95].mxu0  ;;  %v2783_v27 = vpop.f32.mrb[95].mxu1 }
 0x96c   :  { %v2819_v16 = vpop.f32.mrb[96].mxu0  ;;  %v2860_v4 = vpop.f32.mrb[96].mxu1 }
 0x96d   :  { %v2820_v29 = vadd.f32 %v2819_v16, %v2737_v53  ;;  %v2861_v50 = vadd.f32 %v2860_v4, %v2778_v45  ;;  %v2821_v60 = vpop.f32.mrb[97].mxu0  ;;  %v2862_v3 = vpop.f32.mrb[97].mxu1 }
 0x96e   :  { %v2822_v43 = vadd.f32 %v2821_v60, %v2739_v9  ;;  %v2863_v21 = vadd.f32 %v2862_v3, %v2780_v35  ;;  %v2823_v17 = vpop.f32.mrb[98].mxu0  ;;  %v2864_v57 = vpop.f32.mrb[98].mxu1 }
 0x96f   :  { %v2867_v33 = vadd.f32 %v2820_v29, %v4441_v37  ;;  %v2824_v63 = vpop.f32.mrb[99].mxu0  ;;  %v2865_v31 = vpop.f32.mrb[99].mxu1  ;;  %v2869_v52 = vadd.f32 %v2861_v50, %v4456_v48 }
 0x970   :  { %v2868_v1 = vadd.f32 %v2822_v43, %v4445_v10  ;;  %v2870_v22 = vadd.f32 %v2863_v21, %v4451_v47  ;;  %v5977_v43 = vld [vmem:[#allocation137_spill] sm:$0xff]  ;;  %v5978_v21 = vld [vmem:[#allocation140_spill] sm:$0xff]  ;;  %v5979_v31 = vld [vmem:[#allocation139_spill] sm:$0xff] }
 0x971   :  { %v3334_v40 = vmul.f32 -1.442695, %v2867_v33 }
 0x972   :  { %v3335_v44 = vmul.f32 -1.442695, %v2868_v1  ;;  %v3336_v51 = vmul.f32 -1.442695, %v2870_v22 }
 0x973   :  { %3595 = vpow2.f32 %v3334_v40  ;;  %v5980_v40 = vld [vmem:[#allocation141_spill] sm:$0xff] }
 0x974   :  { %3597 = vpow2.f32 %v3335_v44 }
 0x975   :  { %3599 = vpow2.f32 %v3336_v51 }
 0x976   :  { %3601 = vtanh.f32 %v2869_v52 }
 0x97d   :  { %v3596_v53 = vpop.eup %3595 }
 0x97e   :  { %v3598_v45 = vpop.eup %3597  ;;  %v2874_v9 = vadd.f32 1.0, %v3596_v53 }
 0x97f   :  { %v2880_v35 = vadd.f32 1.0, %v3598_v45  ;;  %v3600_v30 = vpop.eup %3599 }
 0x980   :  { %3603 = vrcp.f32 %v2874_v9  ;;  %v3602_v15 = vpop.eup %3601  ;;  %v2887_v4 = vadd.f32 1.0, %v3600_v30 }
 0x981   :  { %3605 = vrcp.f32 %v2880_v35 }
 0x982   :  { %3607 = vrcp.f32 %v2887_v4 }
 0x98a   :  { %v3604_v20 = vpop.eup %3603 }
 0x98b   :  { %v3606_v27 = vpop.eup %3605  ;;  %v2891_v16 = vmul.f32 %v3604_v20, %v3602_v15 }
 0x98c   :  { %v2890_v29 = vmul.f32 %v3606_v27, %v5051_v8  ;;  %v2934_v60 = vpop.f32.mrb[100].mxu0  ;;  %v2975_v3 = vpop.f32.mrb[100].mxu1 }
 0x98d   :  { %v2982_v50 = vadd.f32 %v2934_v60, %v5977_v43  ;;  %v2984_v17 = vadd.f32 %v2975_v3, %v5978_v21  ;;  %v2936_v57 = vpop.f32.mrb[101].mxu0  ;;  %v2977_v33 = vpop.f32.mrb[101].mxu1  ;;  %v3219_v43 = vld [vmem:[#allocation12 + $0x70] sm:$0xff] }
 0x98e   :  { %v5169_v63 = vadd.f32 %v2891_v16, %v2890_v29  ;;  %v2983_v1 = vadd.f32 %v2936_v57, %v5979_v31  ;;  %v2985_v44 = vadd.f32 %v2977_v33, %v5980_v40  ;;  %v2938_v22 = vpop.f32.mrb[102].mxu0  ;;  %v2979_v51 = vpop.f32.mrb[102].mxu1 }
 0x98f   :  { %v3337_v52 = vmul.f32 -1.442695, %v2982_v50  ;;  %v2939_v53 = vpop.f32.mrb[103].mxu0  ;;  %v2980_v8 = vpop.f32.mrb[103].mxu1  ;;  %v3220_v50 = vld [vmem:[#allocation12 + $0x78] sm:$0xff] }
 0x990   :  { %v3338_v45 = vmul.f32 -1.442695, %v2983_v1  ;;  %3609 = vtanh.f32 %v5169_v63  ;;  %v3339_v9 = vmul.f32 -1.442695, %v2985_v44  ;;  %v3608_v35 = vpop.eup %3607  ;;  %v3228_v21 = vpack.c.bf16 %v3220_v50, %v3219_v43 }
 0x991   :  { %3611 = vpow2.f32 %v3337_v52 }
 0x992   :  { %3613 = vpow2.f32 %v3338_v45 }
 0x993   :  { %3615 = vpow2.f32 %v3339_v9 }
 0x994   :  { %3617 = vtanh.f32 %v2984_v17 }
 0x99a   :  { %v3610_v30 = vpop.eup %3609 }
 0x99b   :  { %v3612_v15 = vpop.eup %3611  ;;  %v2894_v20 = vmul.f32 %v3610_v30, %v3608_v35 }
 0x99c   :  { %v3614_v27 = vpop.eup %3613  ;;  %v2989_v16 = vadd.f32 1.0, %v3612_v15 }
 0x99d   :  { %v2995_v29 = vadd.f32 1.0, %v3614_v27  ;;  %v3011_v60 = vpack.c.bf16 %v2894_v20, %v2894_v20  ;;  %v3616_v4 = vpop.eup %3615 }
 0x99e   :  { %3619 = vrcp.f32 %v2989_v16 }
 0x99f   :  { %3621 = vrcp.f32 %v2995_v29  ;;  %3045 = vmatmul.mubr.bf16.vlgmr.msra.gmra.mrb[104].mxu0 %v3011_v60  ;;  %3086 = vmatmul.mubr.bf16.vlgmr.msra.gmra.mrb[104].mxu1 %v3011_v60 }
 0x9a0   :  { %3095 = vmatpush1.bf16.msra.mxu0 %v5591_v56  ;;  %3136 = vmatpush1.bf16.msra.mxu1 %v5592_v34  ;;  %v3618_v56 = vpop.eup %3617 }
 0x9a1   :  { %3096 = vmatprep.subr.bf16.mxu0 %v5593_v39  ;;  %3137 = vmatprep.subr.bf16.mxu1 %v5594_v13  ;;  %v3002_v13 = vadd.f32 1.0, %v3616_v4 }
 0x9a2   :  { %3126 = vmatprep.mubr.bf16.mxu0 %v5496_v23  ;;  %3167 = vmatprep.mubr.bf16.mxu1 %v5496_v23 }
 0x9a3   :  { %3623 = vrcp.f32 %v3002_v13 }
 0x9a4   :  { %3097 = vmatpush1.bf16.msra.mxu0 %v5595_v61  ;;  %3138 = vmatpush1.bf16.msra.mxu1 %v5596_v7 }
 0x9a5   :  { %3098 = vmatprep.subr.bf16.mxu0 %v5656_v49  ;;  %3139 = vmatprep.subr.bf16.mxu1 %v5657_v42  ;;  %v3205_v49 = vld [vmem:[#allocation12] sm:$0xff] }
 0x9a8   :  { %v3620_v3 = vpop.eup %3619  ;;  %3099 = vmatpush1.bf16.msra.mxu0 %v5658_v54  ;;  %3140 = vmatpush1.bf16.msra.mxu1 %v5600_v12  ;;  %v3818_v54 = vmov 0.0  }
 0x9a9   :  { %v3622_v34 = vpop.eup %3621  ;;  %v3006_v39 = vmul.f32 %v3620_v3, %v3618_v56  ;;  %3100 = vmatprep.subr.bf16.mxu0 %v5601_v18  ;;  %3141 = vmatprep.subr.bf16.mxu1 %v5602_v0 }
 0x9aa   :  { %v3005_v23 = vmul.f32 %v3622_v34, %v5071_v32 }
 0x9ac   :  { %v3007_v61 = vadd.f32 %v3006_v39, %v3005_v23  ;;  %3101 = vmatpush1.bf16.msra.mxu0 %v5660_v2  ;;  %3142 = vmatpush1.bf16.msra.mxu1 %v5661_v19  ;;  %v3210_v2 = vld [vmem:[#allocation12 + $0x28] sm:$0xff] }
 0x9ad   :  { %3102 = vmatprep.subr.bf16.mxu0 %v5662_v41  ;;  %3143 = vmatprep.subr.bf16.mxu1 %v5663_v5  ;;  %v3624_v7 = vpop.eup %3623  ;;  %v3213_v5 = vld [vmem:[#allocation12 + $0x40] sm:$0xff] }
 0x9ae   :  { %3625 = vtanh.f32 %v3007_v61 }
 0x9b0   :  { %3103 = vmatpush1.bf16.msra.mxu0 %v5664_v46  ;;  %3144 = vmatpush1.bf16.msra.mxu1 %v5665_v58  ;;  %v3214_v46 = vld [vmem:[#allocation12 + $0x48] sm:$0xff] }
 0x9b1   :  { %3104 = vmatprep.subr.bf16.mxu0 %v5666_v24  ;;  %3145 = vmatprep.subr.bf16.mxu1 %v5667_v62  ;;  %v3225_v58 = vpack.c.bf16 %v3214_v46, %v3213_v5  ;;  %v3215_v24 = vld [vmem:[#allocation12 + $0x50] sm:$0xff]  ;;  %v3216_v62 = vld [vmem:[#allocation12 + $0x58] sm:$0xff] }
 0x9b4   :  { %3105 = vmatpush1.bf16.msra.mxu0 %v5668_v25  ;;  %3146 = vmatpush1.bf16.msra.mxu1 %v5669_v36  ;;  %v3226_v25 = vpack.c.bf16 %v3216_v62, %v3215_v24  ;;  %v3217_v36 = vld [vmem:[#allocation12 + $0x60] sm:$0xff] }
 0x9b5   :  { %3106 = vmatprep.subr.bf16.mxu0 %v5670_v28  ;;  %3147 = vmatprep.subr.bf16.mxu1 %v5615_v59  ;;  %v3206_v59 = vld [vmem:[#allocation12 + $0x8] sm:$0xff] }
 0x9b6   :  { %v3221_v42 = vpack.c.bf16 %v3206_v59, %v3205_v49  ;;  %v3218_v28 = vld [vmem:[#allocation12 + $0x68] sm:$0xff] }
 0x9b7   :  { %v3227_v32 = vpack.c.bf16 %v3218_v28, %v3217_v36 }
 0x9b8   :  { %v3626_v12 = vpop.eup %3625  ;;  %3107 = vmatpush1.bf16.msra.mxu0 %v5616_v6  ;;  %3148 = vmatpush1.bf16.msra.mxu1 %v5617_v55  ;;  %v3207_v6 = vld [vmem:[#allocation12 + $0x10] sm:$0xff]  ;;  %v3208_v55 = vld [vmem:[#allocation12 + $0x18] sm:$0xff] }
 0x9b9   :  { %3108 = vmatprep.subr.bf16.mxu0 %v5618_v14  ;;  %3149 = vmatprep.subr.bf16.mxu1 %v5619_v11  ;;  %v3009_v18 = vmul.f32 %v3626_v12, %v3624_v7  ;;  %v3222_v14 = vpack.c.bf16 %v3208_v55, %v3207_v6  ;;  %v3209_v11 = vld [vmem:[#allocation12 + $0x20] sm:$0xff] }
 0x9ba   :  { %v3223_v19 = vpack.c.bf16 %v3210_v2, %v3209_v11  ;;  %v3343_v55 = vld [vmem:[%s5235_s8] ss:$0 sm:$0xff] }
 0x9bb   :  { %v3010_v0 = vpack.c.bf16 %v3009_v18, %v3009_v18 }
 0x9bc   :  { %3109 = vmatpush1.bf16.msra.mxu0 %v5620_v26  ;;  %3150 = vmatpush1.bf16.msra.mxu1 %v5621_v38  ;;  %v3211_v26 = vld [vmem:[#allocation12 + $0x30] sm:$0xff]  ;;  %v3212_v38 = vld [vmem:[#allocation12 + $0x38] sm:$0xff] }
 0x9bd   :  { %3353 = vmatprep.subr.bf16.mxu0 %v3818_v54  ;;  %v3224_v41 = vpack.c.bf16 %v3212_v38, %v3211_v26 }
 0x9bf   :  { %3127 = vmatmul.mubr.bf16.vlgmr.msra.gmra.mrb[108].mxu0 %v3010_v0  ;;  %3168 = vmatmul.mubr.bf16.vlgmr.msra.gmra.mrb[108].mxu1 %v3010_v0 }
 0x9c0   :  { %3354 = vmatpush3.bf16.msra.mxu0 %v3221_v42  ;;  %3369 = vmatprep.mubr.msk.bf16.mxu0 %vm3819_vm0, %v3818_v54 }
 0x9c1   :  { %3355 = vmatprep.subr.bf16.mxu0 %v3818_v54 }
 0x9c4   :  { %3356 = vmatpush3.bf16.msra.mxu0 %v3222_v14 }
 0x9c5   :  { %3357 = vmatprep.subr.bf16.mxu0 %v3818_v54 }
 0x9c8   :  { %3358 = vmatpush3.bf16.msra.mxu0 %v3223_v19 }
 0x9c9   :  { %3359 = vmatprep.subr.bf16.mxu0 %v3818_v54 }
 0x9cc   :  { %3360 = vmatpush3.bf16.msra.mxu0 %v3224_v41 }
 0x9cd   :  { %3361 = vmatprep.subr.bf16.mxu0 %v3818_v54 }
 0x9d0   :  { %3362 = vmatpush3.bf16.msra.mxu0 %v3225_v58 }
 0x9d1   :  { %3363 = vmatprep.subr.bf16.mxu0 %v3818_v54 }
 0x9d4   :  { %3364 = vmatpush3.bf16.msra.mxu0 %v3226_v25 }
 0x9d5   :  { %3365 = vmatprep.subr.bf16.mxu0 %v3818_v54 }
 0x9d8   :  { %3366 = vmatpush3.bf16.msra.mxu0 %v3227_v32 }
 0x9d9   :  { %3367 = vmatprep.subr.bf16.mxu0 %v3818_v54 }
 0x9dc   :  { %3368 = vmatpush3.bf16.msra.mxu0 %v3228_v21 }
 0xa72   :  { %v3046_v17 = vpop.f32.mrb[104].mxu0  ;;  %v3087_v57 = vpop.f32.mrb[104].mxu1 }
 0xa73   :  { %v3048_v33 = vpop.f32.mrb[105].mxu0  ;;  %v3089_v31 = vpop.f32.mrb[105].mxu1 }
 0xa74   :  { %v3050_v1 = vpop.f32.mrb[106].mxu0  ;;  %v3091_v40 = vpop.f32.mrb[106].mxu1 }
 0xa75   :  { %v3051_v44 = vpop.f32.mrb[107].mxu0  ;;  %v3092_v22 = vpop.f32.mrb[107].mxu1 }
 0xa92   :  { %v3128_v51 = vpop.f32.mrb[108].mxu0  ;;  %v3169_v52 = vpop.f32.mrb[108].mxu1 }
 0xa93   :  { %v3129_v53 = vadd.f32 %v3128_v51, %v3046_v17  ;;  %v3170_v8 = vadd.f32 %v3169_v52, %v3087_v57  ;;  %v3130_v45 = vpop.f32.mrb[109].mxu0  ;;  %v3171_v9 = vpop.f32.mrb[109].mxu1 }
 0xa94   :  { %v3131_v35 = vadd.f32 %v3130_v45, %v3048_v33  ;;  %v3172_v30 = vadd.f32 %v3171_v9, %v3089_v31  ;;  %v3132_v15 = vpop.f32.mrb[110].mxu0  ;;  %v3173_v20 = vpop.f32.mrb[110].mxu1 }
 0xa95   :  { %v3176_v27 = vadd.f32 %v3129_v53, %v4441_v37  ;;  %v3133_v16 = vpop.f32.mrb[111].mxu0  ;;  %v3174_v29 = vpop.f32.mrb[111].mxu1  ;;  %v3178_v39 = vadd.f32 %v3170_v8, %v4456_v48 }
 0xa96   :  { %v3177_v60 = vadd.f32 %v3131_v35, %v4445_v10  ;;  %v3179_v3 = vadd.f32 %v3172_v30, %v4451_v47 }
 0xa97   :  { %v3340_v4 = vmul.f32 -1.442695, %v3176_v27 }
 0xa98   :  { %v3341_v56 = vmul.f32 -1.442695, %v3177_v60  ;;  %v3342_v34 = vmul.f32 -1.442695, %v3179_v3 }
 0xa99   :  { %3627 = vpow2.f32 %v3340_v4 }
 0xa9a   :  { %3629 = vpow2.f32 %v3341_v56 }
 0xa9b   :  { %3631 = vpow2.f32 %v3342_v34 }
 0xa9c   :  { %3633 = vtanh.f32 %v3178_v39 }
 0xaa3   :  { %v3628_v13 = vpop.eup %3627 }
 0xaa4   :  { %v3630_v23 = vpop.eup %3629  ;;  %v3183_v61 = vadd.f32 1.0, %v3628_v13 }
 0xaa5   :  { %v3189_v7 = vadd.f32 1.0, %v3630_v23  ;;  %v3632_v37 = vpop.eup %3631 }
 0xaa6   :  { %3635 = vrcp.f32 %v3183_v61  ;;  %v3634_v12 = vpop.eup %3633  ;;  %v3196_v49 = vadd.f32 1.0, %v3632_v37 }
 0xaa7   :  { %3637 = vrcp.f32 %v3189_v7 }
 0xaa8   :  { %3639 = vrcp.f32 %v3196_v49 }
 0xab0   :  { %v3636_v10 = vpop.eup %3635 }
 0xab1   :  { %v3638_v18 = vpop.eup %3637  ;;  %v3200_v0 = vmul.f32 %v3636_v10, %v3634_v12 }
 0xab2   :  { %v3199_v59 = vmul.f32 %v3638_v18, %v5169_v63  ;;  %v3640_v48 = vpop.eup %3639 }
 0xab4   :  { %v3201_v47 = vadd.f32 %v3200_v0, %v3199_v59 }
 0xab6   :  { %3641 = vtanh.f32 %v3201_v47 }
 0xac0   :  { %v3642_v42 = vpop.eup %3641 }
 0xac1   :  { %v3203_v54 = vmul.f32 %v3642_v42, %v3640_v48 }
 0xac3   :  { %v3204_v6 = vpack.c.bf16 %v3203_v54, %v3203_v54 }
 0xac5   :  { %3370 = vmatmul.mubr.bf16.vlgmr.msra.gmra.mrb[112].mxu0 %v3204_v6 }
 0xb98   :  { %v3270_v14 = vpop.f32.mrb[112].mxu0 }
 0xb99   :  { %v3271_v11 = vadd.f32 %v3343_v55, %v3270_v14  ;;  %v3371_v2 = vpop.f32.mrb[113].mxu0 }
 0xb9a   :  { %v3273_v19 = vpop.f32.mrb[114].mxu0 }
 0xb9b   :  { %3276 = vst [vmem:[#allocation14] sm:$0xff] %v3271_v11  ;;  %v3372_v63 = vpop.f32.mrb[115].mxu0 }
 0xb9c   :  { %3786 = shalt.err (!%p3783_p10)
}
 0xb9d   :  { %s3787_s8 = scalar_lea.hbm %s5236_s9, 128 }
 0xb9e   :  { %p3788_p11 = scmp.ne.s32.totalorder %s5236_s9, %s3787_s8  ;;  %p3791_p12 = scmp.lt.u32.totalorder %s3787_s8, %s5236_s9 }
 0xba0   :  { %p3793_p13 = pnand %p3791_p12, %p3788_p11 }
 0xba2   :  { %3796 = shalt.err (!%p3793_p13)
}
 0xba3   :  { %3286 = dma.vmem_to_hbm [thread:$0]  %s3284_s21, 128, %s5236_s9, [#allocation5]  }
 0xba4   :  { %3805 = dma.done.wait [#allocation5], 128  }
 0xba5   :  { %3806 = vsyncadd [#allocation5], 4294967168 }
 0xba6   :  { %3290 = vsyncpa [#allocation4], 1 }
 0xba7   :  { %3291 = vsyncpa [#allocation7], 1 }
 0xba8   :  { %3292 = vsyncpa [#allocation10], 1 }
 0xba9   :  { %3293 = vsyncpa [#allocation13], 1 }
 0xbaa   :  { %3294 = vsyncpa [#allocation5], 1 }

</bundles_post_ra>
